<compile_context>
chip_gen: v6e
topology: v6e:2x2x1
jax: 0.10.0
libtpu: 0.0.40
codegen_flags: <defaults>
</compile_context>

<pallas_src>
import functools

import jax
import jax.numpy as jnp
from jax import lax
from jax.experimental import pallas as pl
from jax.experimental.pallas import tpu as pltpu


# ------------------------------ fused kernel ---------------------------------
def _fused_attention_kernel(x_ref, ctx_ref, wq_ref, wkv_ref, wo_ref, bo_ref,
                            o_ref, acc_ref, *, B, N, M, heads, dim_head, scale):
    inner = heads * dim_head

    # ---- projections on batch-folded rows (bf16 MXU operands, f32 acc) ------
    x = x_ref[...].astype(jnp.bfloat16)        # (B*N, query_dim)
    ctx = ctx_ref[...].astype(jnp.bfloat16)    # (B*M, context_dim)

    q = jnp.dot(x, wq_ref[...], preferred_element_type=jnp.float32)      # (B*N, inner)
    kv = jnp.dot(ctx, wkv_ref[...], preferred_element_type=jnp.float32)  # (B*M, 2*inner)

    # Single cast to bf16 (and single scale pass on q) before the head loop.
    q_bf = (q * scale).astype(jnp.bfloat16)
    k_bf = kv[:, :inner].astype(jnp.bfloat16)   # in-kernel "chunk(2, dim=-1)"
    v_bf = kv[:, inner:].astype(jnp.bfloat16)

    def _softmax_rows(sim):                     # f32 softmax, EUP reciprocal
        sim = sim - jnp.max(sim, axis=-1, keepdims=True)
        e = jnp.exp(sim)
        inv = pl.reciprocal(jnp.sum(e, axis=-1, keepdims=True), approx=True)
        return (e * inv).astype(jnp.bfloat16)

    n_pairs, odd = divmod(heads, 2)
    dn = (((1,), (1,)), ((), ()))               # contract last dims, no k.T

    for b in range(B):
        rq = pl.ds(b * N, N)                    # this batch's query rows
        q_rows = q_bf[b * N:(b + 1) * N, :]     # (N, inner)
        k_rows = k_bf[b * M:(b + 1) * M, :]     # (M, inner)
        v_rows = v_bf[b * M:(b + 1) * M, :]

        # ---- head pairs: 128-lane-aligned slabs, fused pair softmax ---------
        for pidx in range(n_pairs):
            c0 = pidx * 2 * dim_head
            q_s = q_rows[:, c0:c0 + 2 * dim_head]    # (N, 2*dim_head) slab
            k_s = k_rows[:, c0:c0 + 2 * dim_head]
            v_s = v_rows[:, c0:c0 + 2 * dim_head]

            sim0 = lax.dot_general(q_s[:, :dim_head], k_s[:, :dim_head], dn,
                                   preferred_element_type=jnp.float32)   # (N, M)
            sim1 = lax.dot_general(q_s[:, dim_head:], k_s[:, dim_head:], dn,
                                   preferred_element_type=jnp.float32)   # (N, M)
            attn = _softmax_rows(jnp.concatenate([sim0, sim1], axis=0))  # (2N, M)

            acc_ref[rq, pl.ds(c0, dim_head)] = jnp.dot(
                attn[:N], v_s[:, :dim_head], preferred_element_type=jnp.float32)
            acc_ref[rq, pl.ds(c0 + dim_head, dim_head)] = jnp.dot(
                attn[N:], v_s[:, dim_head:], preferred_element_type=jnp.float32)

        # ---- trailing head if `heads` is odd ---------------------------------
        if odd:
            c0 = 2 * n_pairs * dim_head
            q_s = q_rows[:, c0:c0 + dim_head]
            k_s = k_rows[:, c0:c0 + dim_head]
            v_s = v_rows[:, c0:c0 + dim_head]
            sim = lax.dot_general(q_s, k_s, dn, preferred_element_type=jnp.float32)
            attn = _softmax_rows(sim)
            acc_ref[rq, pl.ds(c0, dim_head)] = jnp.dot(
                attn, v_s, preferred_element_type=jnp.float32)

    # ---- output projection from the lane-dense scratch ----------------------
    o = acc_ref[...].astype(jnp.bfloat16)                                 # (B*N, inner)
    y = jnp.dot(o, wo_ref[...], preferred_element_type=jnp.float32) + bo_ref[...]
    o_ref[...] = y.astype(o_ref.dtype)


def attention_forward(params, x, context=None, mask=None, *, heads, dim_head):
    """Pallas equivalent of Attention.forward (DropPath(0.0) == identity)."""
    assert mask is None  # TODO(synk): mask path not implemented (module default)
    if context is None:
        context = x                      # self-attention: context defaults to x
    B, N, dq = x.shape
    _, M, dc = context.shape
    inner = heads * dim_head
    scale = dim_head ** -0.5

    # Fold batch into rows (free contiguous reshapes) so every projection dot
    # sees B*N / B*M rows instead of N.
    x2d = x.reshape(B * N, dq)
    ctx2d = context.reshape(B * M, dc)

    kernel = functools.partial(_fused_attention_kernel, B=B, N=N, M=M,
                               heads=heads, dim_head=dim_head, scale=scale)
    out2d = pl.pallas_call(
        kernel,
        out_shape=jax.ShapeDtypeStruct((B * N, dq), x.dtype),
        grid=(1,),
        in_specs=[
            pl.BlockSpec((B * N, dq), lambda i: (0, 0)),
            pl.BlockSpec((B * M, dc), lambda i: (0, 0)),
            pl.BlockSpec((dq, inner), lambda i: (0, 0)),
            pl.BlockSpec((dc, 2 * inner), lambda i: (0, 0)),
            pl.BlockSpec((inner, dq), lambda i: (0, 0)),
            pl.BlockSpec((1, dq), lambda i: (0, 0)),
        ],
        out_specs=pl.BlockSpec((B * N, dq), lambda i: (0, 0)),
        scratch_shapes=[pltpu.VMEM((B * N, inner), jnp.float32)],
        compiler_params=pltpu.CompilerParams(
            dimension_semantics=("arbitrary",),
            vmem_limit_bytes=32 * 1024 * 1024),
    )(x2d, ctx2d, params['wq'], params['wkv'], params['wo'], params['bo'])
    return out2d.reshape(B, N, dq)


# ------------------------------ pure-JAX reference ----------------------------
def attention_reference(params, x, context=None, *, heads, dim_head):
    """Reference mirroring the kernel's bf16-operand / f32-accumulation math."""
    f32 = lambda a: a.astype(jnp.float32)
    bf = lambda a: a.astype(jnp.bfloat16)

    if context is None:
        context = x
    B, N, _ = x.shape
    inner = heads * dim_head
    scale = dim_head ** -0.5

    q = jnp.einsum('bnd,de->bne', f32(bf(x)), f32(params['wq']))
    kv = jnp.einsum('bmd,de->bme', f32(bf(context)), f32(params['wkv']))
    q = f32(bf(q * scale))
    k, v = jnp.split(kv, 2, axis=-1)
    k, v = f32(bf(k)), f32(bf(v))

    def split_heads(t):
        b, l, _ = t.shape
        return t.reshape(b, l, heads, dim_head).transpose(0, 2, 1, 3)

    qh, kh, vh = split_heads(q), split_heads(k), split_heads(v)
    sim = jnp.einsum('bhnd,bhmd->bhnm', qh, kh)
    attn = jax.nn.softmax(sim, axis=-1)
    o = jnp.einsum('bhnm,bhmd->bhnd', f32(bf(attn)), vh)
    o = o.transpose(0, 2, 1, 3).reshape(B, N, inner)
    return jnp.einsum('bne,ed->bnd', f32(bf(o)), f32(params['wo'])) + params['bo']


# ------------------------------ parameter init --------------------------------
def init_params(key, query_dim, context_dim, heads, dim_head):
    inner = heads * dim_head
    k1, k2, k3, k4 = jax.random.split(key, 4)

    def lin_w(k, din, dout):
        return jax.random.normal(k, (din, dout), jnp.float32) * (din ** -0.5)

    return {
        # Weights stored (in, out) == torch Linear weight.T; bf16 for the MXU.
        'wq': lin_w(k1, query_dim, inner).astype(jnp.bfloat16),
        'wkv': lin_w(k2, context_dim, 2 * inner).astype(jnp.bfloat16),
        'wo': lin_w(k3, inner, query_dim).astype(jnp.bfloat16),
        'bo': jax.random.normal(k4, (1, query_dim), jnp.float32) * 0.02,
    }


# ------------------------------------ main -------------------------------------
if __name__ == "__main__":
    key = jax.random.PRNGKey(0)
    kp, kx, kc = jax.random.split(key, 3)

    B, N, M = 2, 16, 32          # batch, query seq, context seq
    QUERY_DIM = 128
    CONTEXT_DIM = 128
    HEADS, DIM_HEAD = 8, 64      # module defaults (inner_dim = 512)

    params = init_params(kp, QUERY_DIM, CONTEXT_DIM, HEADS, DIM_HEAD)
    x = jax.random.normal(kx, (B, N, QUERY_DIM), jnp.float32)
    ctx = jax.random.normal(kc, (B, M, CONTEXT_DIM), jnp.float32)

    # Cross-attention path.
    out = jax.block_until_ready(
        attention_forward(params, x, ctx, heads=HEADS, dim_head=DIM_HEAD))
    ref = attention_reference(params, x, ctx, heads=HEADS, dim_head=DIM_HEAD)
    assert out.shape == (B, N, QUERY_DIM), out.shape
    assert bool(jnp.all(jnp.isfinite(out)))
    assert bool(jnp.allclose(out, ref, atol=5e-2, rtol=5e-2))

    # Self-attention path (context defaults to x).
    out_self = jax.block_until_ready(
        attention_forward(params, x, None, heads=HEADS, dim_head=DIM_HEAD))
    ref_self = attention_reference(params, x, None, heads=HEADS, dim_head=DIM_HEAD)
    assert bool(jnp.all(jnp.isfinite(out_self)))
    assert bool(jnp.allclose(out_self, ref_self, atol=5e-2, rtol=5e-2))

    print("KERNEL_OK")
</pallas_src>

<mosaic_0001>
module attributes {stable_mosaic.version = 11 : i64} {
  func.func @_fused_attention_kernel(%arg0: i32, %arg1: memref<32x128xf32, #tpu.memory_space<vmem>>, %arg2: memref<64x128xf32, #tpu.memory_space<vmem>>, %arg3: memref<128x512xbf16, #tpu.memory_space<vmem>>, %arg4: memref<128x1024xbf16, #tpu.memory_space<vmem>>, %arg5: memref<512x128xbf16, #tpu.memory_space<vmem>>, %arg6: memref<1x128xf32, #tpu.memory_space<vmem>>, %arg7: memref<32x128xf32, #tpu.memory_space<vmem>>, %arg8: memref<32x512xf32, #tpu.memory_space<vmem>>) attributes {dimension_semantics = [#tpu.dimension_semantics<arbitrary>], iteration_bounds = array<i64: 1>, scalar_prefetch = 0 : i64, scratch_operands = 1 : i64, tpu.core_type = #tpu.core_type<tc>, window_params = [{pipeline_mode = #tpu.pipeline_mode<synchronous>, transform_indices = @transform_0, window_bounds = array<i64: 32, 128>}, {pipeline_mode = #tpu.pipeline_mode<synchronous>, transform_indices = @transform_1, window_bounds = array<i64: 64, 128>}, {pipeline_mode = #tpu.pipeline_mode<synchronous>, transform_indices = @transform_2, window_bounds = array<i64: 128, 512>}, {pipeline_mode = #tpu.pipeline_mode<synchronous>, transform_indices = @transform_3, window_bounds = array<i64: 128, 1024>}, {pipeline_mode = #tpu.pipeline_mode<synchronous>, transform_indices = @transform_4, window_bounds = array<i64: 512, 128>}, {pipeline_mode = #tpu.pipeline_mode<synchronous>, transform_indices = @transform_5, window_bounds = array<i64: 1, 128>}, {pipeline_mode = #tpu.pipeline_mode<synchronous>, transform_indices = @transform_6, window_bounds = array<i64: 32, 128>}]} {
    %c0 = arith.constant 0 : index
    %c0_0 = arith.constant 0 : index
    %0 = vector.load %arg1[%c0, %c0_0] : memref<32x128xf32, #tpu.memory_space<vmem>>, vector<32x128xf32>
    %1 = arith.truncf %0 : vector<32x128xf32> to vector<32x128xbf16>
    %c0_1 = arith.constant 0 : index
    %c0_2 = arith.constant 0 : index
    %2 = vector.load %arg2[%c0_1, %c0_2] : memref<64x128xf32, #tpu.memory_space<vmem>>, vector<64x128xf32>
    %3 = arith.truncf %2 : vector<64x128xf32> to vector<64x128xbf16>
    %c0_3 = arith.constant 0 : index
    %c0_4 = arith.constant 0 : index
    %4 = vector.load %arg3[%c0_3, %c0_4] : memref<128x512xbf16, #tpu.memory_space<vmem>>, vector<128x512xbf16>
    %cst = arith.constant dense<0.000000e+00> : vector<32x512xf32>
    %5 = tpu.matmul %1, %4, %cst {dimension_numbers = #tpu.dot_dimension_numbers<[1], [0], [0], [1], [0, 0, 1, 1], [], []>} : vector<32x128xbf16>, vector<128x512xbf16>, vector<32x512xf32> -> vector<32x512xf32>
    %c0_5 = arith.constant 0 : index
    %c0_6 = arith.constant 0 : index
    %6 = vector.load %arg4[%c0_5, %c0_6] : memref<128x1024xbf16, #tpu.memory_space<vmem>>, vector<128x1024xbf16>
    %cst_7 = arith.constant dense<0.000000e+00> : vector<64x1024xf32>
    %7 = tpu.matmul %3, %6, %cst_7 {dimension_numbers = #tpu.dot_dimension_numbers<[1], [0], [0], [1], [0, 0, 1, 1], [], []>} : vector<64x128xbf16>, vector<128x1024xbf16>, vector<64x1024xf32> -> vector<64x1024xf32>
    %cst_8 = arith.constant 1.250000e-01 : f32
    %8 = vector.broadcast %cst_8 : f32 to vector<32x512xf32>
    %9 = arith.mulf %5, %8 : vector<32x512xf32>
    %10 = arith.truncf %9 : vector<32x512xf32> to vector<32x512xbf16>
    %11 = vector.extract_strided_slice %7 {offsets = [0, 0], sizes = [64, 512], strides = [1, 1]} : vector<64x1024xf32> to vector<64x512xf32>
    %12 = arith.truncf %11 : vector<64x512xf32> to vector<64x512xbf16>
    %13 = vector.extract_strided_slice %7 {offsets = [0, 512], sizes = [64, 512], strides = [1, 1]} : vector<64x1024xf32> to vector<64x512xf32>
    %14 = arith.truncf %13 : vector<64x512xf32> to vector<64x512xbf16>
    %15 = vector.extract_strided_slice %10 {offsets = [0, 0], sizes = [16, 512], strides = [1, 1]} : vector<32x512xbf16> to vector<16x512xbf16>
    %16 = vector.extract_strided_slice %12 {offsets = [0, 0], sizes = [32, 512], strides = [1, 1]} : vector<64x512xbf16> to vector<32x512xbf16>
    %17 = vector.extract_strided_slice %14 {offsets = [0, 0], sizes = [32, 512], strides = [1, 1]} : vector<64x512xbf16> to vector<32x512xbf16>
    %18 = vector.extract_strided_slice %15 {offsets = [0, 0], sizes = [16, 128], strides = [1, 1]} : vector<16x512xbf16> to vector<16x128xbf16>
    %19 = vector.extract_strided_slice %16 {offsets = [0, 0], sizes = [32, 128], strides = [1, 1]} : vector<32x512xbf16> to vector<32x128xbf16>
    %20 = vector.extract_strided_slice %17 {offsets = [0, 0], sizes = [32, 128], strides = [1, 1]} : vector<32x512xbf16> to vector<32x128xbf16>
    %21 = vector.extract_strided_slice %18 {offsets = [0, 0], sizes = [16, 64], strides = [1, 1]} : vector<16x128xbf16> to vector<16x64xbf16>
    %22 = vector.extract_strided_slice %19 {offsets = [0, 0], sizes = [32, 64], strides = [1, 1]} : vector<32x128xbf16> to vector<32x64xbf16>
    %cst_9 = arith.constant dense<0.000000e+00> : vector<16x32xf32>
    %23 = tpu.matmul %21, %22, %cst_9 {dimension_numbers = #tpu.dot_dimension_numbers<[1], [1], [0], [0], [0, 0, 1, 0], [], []>} : vector<16x64xbf16>, vector<32x64xbf16>, vector<16x32xf32> -> vector<16x32xf32>
    %24 = vector.extract_strided_slice %18 {offsets = [0, 64], sizes = [16, 64], strides = [1, 1]} : vector<16x128xbf16> to vector<16x64xbf16>
    %25 = vector.extract_strided_slice %19 {offsets = [0, 64], sizes = [32, 64], strides = [1, 1]} : vector<32x128xbf16> to vector<32x64xbf16>
    %cst_10 = arith.constant dense<0.000000e+00> : vector<16x32xf32>
    %26 = tpu.matmul %24, %25, %cst_10 {dimension_numbers = #tpu.dot_dimension_numbers<[1], [1], [0], [0], [0, 0, 1, 0], [], []>} : vector<16x64xbf16>, vector<32x64xbf16>, vector<16x32xf32> -> vector<16x32xf32>
    %27 = tpu.concatenate %23, %26 in 0 : vector<16x32xf32>, vector<16x32xf32> -> vector<32x32xf32>
    %cst_11 = arith.constant dense<0xFF800000> : vector<32xf32>
    %28 = vector.multi_reduction <maximumf>, %27, %cst_11 [1] : vector<32x32xf32> to vector<32xf32>
    %29 = vector.shape_cast %28 : vector<32xf32> to vector<32x1xf32>
    %30 = vector.broadcast %29 : vector<32x1xf32> to vector<32x32xf32>
    %31 = arith.subf %27, %30 : vector<32x32xf32>
    %32 = math.exp %31 : vector<32x32xf32>
    %cst_12 = arith.constant dense<0.000000e+00> : vector<32xf32>
    %33 = vector.multi_reduction <add>, %32, %cst_12 [1] : vector<32x32xf32> to vector<32xf32>
    %34 = vector.shape_cast %33 : vector<32xf32> to vector<32x1xf32>
    %35 = tpu.reciprocal %34 {approx = true} : vector<32x1xf32> -> vector<32x1xf32>
    %36 = vector.broadcast %35 : vector<32x1xf32> to vector<32x32xf32>
    %37 = arith.mulf %32, %36 : vector<32x32xf32>
    %38 = arith.truncf %37 : vector<32x32xf32> to vector<32x32xbf16>
    %39 = vector.extract_strided_slice %38 {offsets = [0, 0], sizes = [16, 32], strides = [1, 1]} : vector<32x32xbf16> to vector<16x32xbf16>
    %40 = vector.extract_strided_slice %20 {offsets = [0, 0], sizes = [32, 64], strides = [1, 1]} : vector<32x128xbf16> to vector<32x64xbf16>
    %cst_13 = arith.constant dense<0.000000e+00> : vector<16x64xf32>
    %41 = tpu.matmul %39, %40, %cst_13 {dimension_numbers = #tpu.dot_dimension_numbers<[1], [0], [0], [1], [0, 0, 1, 1], [], []>} : vector<16x32xbf16>, vector<32x64xbf16>, vector<16x64xf32> -> vector<16x64xf32>
    %c0_14 = arith.constant 0 : index
    %c0_15 = arith.constant 0 : index
    %42 = vector.load %arg8[%c0_14, %c0_15] : memref<32x512xf32, #tpu.memory_space<vmem>>, vector<16x64xf32>
    tpu.vector_store %arg8[%c0_14, %c0_15], %41 {strides = array<i32>} : memref<32x512xf32, #tpu.memory_space<vmem>>, vector<16x64xf32>,
    %43 = vector.extract_strided_slice %38 {offsets = [16, 0], sizes = [16, 32], strides = [1, 1]} : vector<32x32xbf16> to vector<16x32xbf16>
    %44 = vector.extract_strided_slice %20 {offsets = [0, 64], sizes = [32, 64], strides = [1, 1]} : vector<32x128xbf16> to vector<32x64xbf16>
    %cst_16 = arith.constant dense<0.000000e+00> : vector<16x64xf32>
    %45 = tpu.matmul %43, %44, %cst_16 {dimension_numbers = #tpu.dot_dimension_numbers<[1], [0], [0], [1], [0, 0, 1, 1], [], []>} : vector<16x32xbf16>, vector<32x64xbf16>, vector<16x64xf32> -> vector<16x64xf32>
    %c0_17 = arith.constant 0 : index
    %c64 = arith.constant 64 : index
    %46 = vector.load %arg8[%c0_17, %c64] : memref<32x512xf32, #tpu.memory_space<vmem>>, vector<16x64xf32>
    tpu.vector_store %arg8[%c0_17, %c64], %45 {strides = array<i32>} : memref<32x512xf32, #tpu.memory_space<vmem>>, vector<16x64xf32>,
    %47 = vector.extract_strided_slice %15 {offsets = [0, 128], sizes = [16, 128], strides = [1, 1]} : vector<16x512xbf16> to vector<16x128xbf16>
    %48 = vector.extract_strided_slice %16 {offsets = [0, 128], sizes = [32, 128], strides = [1, 1]} : vector<32x512xbf16> to vector<32x128xbf16>
    %49 = vector.extract_strided_slice %17 {offsets = [0, 128], sizes = [32, 128], strides = [1, 1]} : vector<32x512xbf16> to vector<32x128xbf16>
    %50 = vector.extract_strided_slice %47 {offsets = [0, 0], sizes = [16, 64], strides = [1, 1]} : vector<16x128xbf16> to vector<16x64xbf16>
    %51 = vector.extract_strided_slice %48 {offsets = [0, 0], sizes = [32, 64], strides = [1, 1]} : vector<32x128xbf16> to vector<32x64xbf16>
    %cst_18 = arith.constant dense<0.000000e+00> : vector<16x32xf32>
    %52 = tpu.matmul %50, %51, %cst_18 {dimension_numbers = #tpu.dot_dimension_numbers<[1], [1], [0], [0], [0, 0, 1, 0], [], []>} : vector<16x64xbf16>, vector<32x64xbf16>, vector<16x32xf32> -> vector<16x32xf32>
    %53 = vector.extract_strided_slice %47 {offsets = [0, 64], sizes = [16, 64], strides = [1, 1]} : vector<16x128xbf16> to vector<16x64xbf16>
    %54 = vector.extract_strided_slice %48 {offsets = [0, 64], sizes = [32, 64], strides = [1, 1]} : vector<32x128xbf16> to vector<32x64xbf16>
    %cst_19 = arith.constant dense<0.000000e+00> : vector<16x32xf32>
    %55 = tpu.matmul %53, %54, %cst_19 {dimension_numbers = #tpu.dot_dimension_numbers<[1], [1], [0], [0], [0, 0, 1, 0], [], []>} : vector<16x64xbf16>, vector<32x64xbf16>, vector<16x32xf32> -> vector<16x32xf32>
    %56 = tpu.concatenate %52, %55 in 0 : vector<16x32xf32>, vector<16x32xf32> -> vector<32x32xf32>
    %cst_20 = arith.constant dense<0xFF800000> : vector<32xf32>
    %57 = vector.multi_reduction <maximumf>, %56, %cst_20 [1] : vector<32x32xf32> to vector<32xf32>
    %58 = vector.shape_cast %57 : vector<32xf32> to vector<32x1xf32>
    %59 = vector.broadcast %58 : vector<32x1xf32> to vector<32x32xf32>
    %60 = arith.subf %56, %59 : vector<32x32xf32>
    %61 = math.exp %60 : vector<32x32xf32>
    %cst_21 = arith.constant dense<0.000000e+00> : vector<32xf32>
    %62 = vector.multi_reduction <add>, %61, %cst_21 [1] : vector<32x32xf32> to vector<32xf32>
    %63 = vector.shape_cast %62 : vector<32xf32> to vector<32x1xf32>
    %64 = tpu.reciprocal %63 {approx = true} : vector<32x1xf32> -> vector<32x1xf32>
    %65 = vector.broadcast %64 : vector<32x1xf32> to vector<32x32xf32>
    %66 = arith.mulf %61, %65 : vector<32x32xf32>
    %67 = arith.truncf %66 : vector<32x32xf32> to vector<32x32xbf16>
    %68 = vector.extract_strided_slice %67 {offsets = [0, 0], sizes = [16, 32], strides = [1, 1]} : vector<32x32xbf16> to vector<16x32xbf16>
    %69 = vector.extract_strided_slice %49 {offsets = [0, 0], sizes = [32, 64], strides = [1, 1]} : vector<32x128xbf16> to vector<32x64xbf16>
    %cst_22 = arith.constant dense<0.000000e+00> : vector<16x64xf32>
    %70 = tpu.matmul %68, %69, %cst_22 {dimension_numbers = #tpu.dot_dimension_numbers<[1], [0], [0], [1], [0, 0, 1, 1], [], []>} : vector<16x32xbf16>, vector<32x64xbf16>, vector<16x64xf32> -> vector<16x64xf32>
    %c0_23 = arith.constant 0 : index
    %c128 = arith.constant 128 : index
    %71 = vector.load %arg8[%c0_23, %c128] : memref<32x512xf32, #tpu.memory_space<vmem>>, vector<16x64xf32>
    tpu.vector_store %arg8[%c0_23, %c128], %70 {strides = array<i32>} : memref<32x512xf32, #tpu.memory_space<vmem>>, vector<16x64xf32>,
    %72 = vector.extract_strided_slice %67 {offsets = [16, 0], sizes = [16, 32], strides = [1, 1]} : vector<32x32xbf16> to vector<16x32xbf16>
    %73 = vector.extract_strided_slice %49 {offsets = [0, 64], sizes = [32, 64], strides = [1, 1]} : vector<32x128xbf16> to vector<32x64xbf16>
    %cst_24 = arith.constant dense<0.000000e+00> : vector<16x64xf32>
    %74 = tpu.matmul %72, %73, %cst_24 {dimension_numbers = #tpu.dot_dimension_numbers<[1], [0], [0], [1], [0, 0, 1, 1], [], []>} : vector<16x32xbf16>, vector<32x64xbf16>, vector<16x64xf32> -> vector<16x64xf32>
    %c0_25 = arith.constant 0 : index
    %c192 = arith.constant 192 : index
    %75 = vector.load %arg8[%c0_25, %c192] : memref<32x512xf32, #tpu.memory_space<vmem>>, vector<16x64xf32>
    tpu.vector_store %arg8[%c0_25, %c192], %74 {strides = array<i32>} : memref<32x512xf32, #tpu.memory_space<vmem>>, vector<16x64xf32>,
    %76 = vector.extract_strided_slice %15 {offsets = [0, 256], sizes = [16, 128], strides = [1, 1]} : vector<16x512xbf16> to vector<16x128xbf16>
    %77 = vector.extract_strided_slice %16 {offsets = [0, 256], sizes = [32, 128], strides = [1, 1]} : vector<32x512xbf16> to vector<32x128xbf16>
    %78 = vector.extract_strided_slice %17 {offsets = [0, 256], sizes = [32, 128], strides = [1, 1]} : vector<32x512xbf16> to vector<32x128xbf16>
    %79 = vector.extract_strided_slice %76 {offsets = [0, 0], sizes = [16, 64], strides = [1, 1]} : vector<16x128xbf16> to vector<16x64xbf16>
    %80 = vector.extract_strided_slice %77 {offsets = [0, 0], sizes = [32, 64], strides = [1, 1]} : vector<32x128xbf16> to vector<32x64xbf16>
    %cst_26 = arith.constant dense<0.000000e+00> : vector<16x32xf32>
    %81 = tpu.matmul %79, %80, %cst_26 {dimension_numbers = #tpu.dot_dimension_numbers<[1], [1], [0], [0], [0, 0, 1, 0], [], []>} : vector<16x64xbf16>, vector<32x64xbf16>, vector<16x32xf32> -> vector<16x32xf32>
    %82 = vector.extract_strided_slice %76 {offsets = [0, 64], sizes = [16, 64], strides = [1, 1]} : vector<16x128xbf16> to vector<16x64xbf16>
    %83 = vector.extract_strided_slice %77 {offsets = [0, 64], sizes = [32, 64], strides = [1, 1]} : vector<32x128xbf16> to vector<32x64xbf16>
    %cst_27 = arith.constant dense<0.000000e+00> : vector<16x32xf32>
    %84 = tpu.matmul %82, %83, %cst_27 {dimension_numbers = #tpu.dot_dimension_numbers<[1], [1], [0], [0], [0, 0, 1, 0], [], []>} : vector<16x64xbf16>, vector<32x64xbf16>, vector<16x32xf32> -> vector<16x32xf32>
    %85 = tpu.concatenate %81, %84 in 0 : vector<16x32xf32>, vector<16x32xf32> -> vector<32x32xf32>
    %cst_28 = arith.constant dense<0xFF800000> : vector<32xf32>
    %86 = vector.multi_reduction <maximumf>, %85, %cst_28 [1] : vector<32x32xf32> to vector<32xf32>
    %87 = vector.shape_cast %86 : vector<32xf32> to vector<32x1xf32>
    %88 = vector.broadcast %87 : vector<32x1xf32> to vector<32x32xf32>
    %89 = arith.subf %85, %88 : vector<32x32xf32>
    %90 = math.exp %89 : vector<32x32xf32>
    %cst_29 = arith.constant dense<0.000000e+00> : vector<32xf32>
    %91 = vector.multi_reduction <add>, %90, %cst_29 [1] : vector<32x32xf32> to vector<32xf32>
    %92 = vector.shape_cast %91 : vector<32xf32> to vector<32x1xf32>
    %93 = tpu.reciprocal %92 {approx = true} : vector<32x1xf32> -> vector<32x1xf32>
    %94 = vector.broadcast %93 : vector<32x1xf32> to vector<32x32xf32>
    %95 = arith.mulf %90, %94 : vector<32x32xf32>
    %96 = arith.truncf %95 : vector<32x32xf32> to vector<32x32xbf16>
    %97 = vector.extract_strided_slice %96 {offsets = [0, 0], sizes = [16, 32], strides = [1, 1]} : vector<32x32xbf16> to vector<16x32xbf16>
    %98 = vector.extract_strided_slice %78 {offsets = [0, 0], sizes = [32, 64], strides = [1, 1]} : vector<32x128xbf16> to vector<32x64xbf16>
    %cst_30 = arith.constant dense<0.000000e+00> : vector<16x64xf32>
    %99 = tpu.matmul %97, %98, %cst_30 {dimension_numbers = #tpu.dot_dimension_numbers<[1], [0], [0], [1], [0, 0, 1, 1], [], []>} : vector<16x32xbf16>, vector<32x64xbf16>, vector<16x64xf32> -> vector<16x64xf32>
    %c0_31 = arith.constant 0 : index
    %c256 = arith.constant 256 : index
    %100 = vector.load %arg8[%c0_31, %c256] : memref<32x512xf32, #tpu.memory_space<vmem>>, vector<16x64xf32>
    tpu.vector_store %arg8[%c0_31, %c256], %99 {strides = array<i32>} : memref<32x512xf32, #tpu.memory_space<vmem>>, vector<16x64xf32>,
    %101 = vector.extract_strided_slice %96 {offsets = [16, 0], sizes = [16, 32], strides = [1, 1]} : vector<32x32xbf16> to vector<16x32xbf16>
    %102 = vector.extract_strided_slice %78 {offsets = [0, 64], sizes = [32, 64], strides = [1, 1]} : vector<32x128xbf16> to vector<32x64xbf16>
    %cst_32 = arith.constant dense<0.000000e+00> : vector<16x64xf32>
    %103 = tpu.matmul %101, %102, %cst_32 {dimension_numbers = #tpu.dot_dimension_numbers<[1], [0], [0], [1], [0, 0, 1, 1], [], []>} : vector<16x32xbf16>, vector<32x64xbf16>, vector<16x64xf32> -> vector<16x64xf32>
    %c0_33 = arith.constant 0 : index
    %c320 = arith.constant 320 : index
    %104 = vector.load %arg8[%c0_33, %c320] : memref<32x512xf32, #tpu.memory_space<vmem>>, vector<16x64xf32>
    tpu.vector_store %arg8[%c0_33, %c320], %103 {strides = array<i32>} : memref<32x512xf32, #tpu.memory_space<vmem>>, vector<16x64xf32>,
    %105 = vector.extract_strided_slice %15 {offsets = [0, 384], sizes = [16, 128], strides = [1, 1]} : vector<16x512xbf16> to vector<16x128xbf16>
    %106 = vector.extract_strided_slice %16 {offsets = [0, 384], sizes = [32, 128], strides = [1, 1]} : vector<32x512xbf16> to vector<32x128xbf16>
    %107 = vector.extract_strided_slice %17 {offsets = [0, 384], sizes = [32, 128], strides = [1, 1]} : vector<32x512xbf16> to vector<32x128xbf16>
    %108 = vector.extract_strided_slice %105 {offsets = [0, 0], sizes = [16, 64], strides = [1, 1]} : vector<16x128xbf16> to vector<16x64xbf16>
    %109 = vector.extract_strided_slice %106 {offsets = [0, 0], sizes = [32, 64], strides = [1, 1]} : vector<32x128xbf16> to vector<32x64xbf16>
    %cst_34 = arith.constant dense<0.000000e+00> : vector<16x32xf32>
    %110 = tpu.matmul %108, %109, %cst_34 {dimension_numbers = #tpu.dot_dimension_numbers<[1], [1], [0], [0], [0, 0, 1, 0], [], []>} : vector<16x64xbf16>, vector<32x64xbf16>, vector<16x32xf32> -> vector<16x32xf32>
    %111 = vector.extract_strided_slice %105 {offsets = [0, 64], sizes = [16, 64], strides = [1, 1]} : vector<16x128xbf16> to vector<16x64xbf16>
    %112 = vector.extract_strided_slice %106 {offsets = [0, 64], sizes = [32, 64], strides = [1, 1]} : vector<32x128xbf16> to vector<32x64xbf16>
    %cst_35 = arith.constant dense<0.000000e+00> : vector<16x32xf32>
    %113 = tpu.matmul %111, %112, %cst_35 {dimension_numbers = #tpu.dot_dimension_numbers<[1], [1], [0], [0], [0, 0, 1, 0], [], []>} : vector<16x64xbf16>, vector<32x64xbf16>, vector<16x32xf32> -> vector<16x32xf32>
    %114 = tpu.concatenate %110, %113 in 0 : vector<16x32xf32>, vector<16x32xf32> -> vector<32x32xf32>
    %cst_36 = arith.constant dense<0xFF800000> : vector<32xf32>
    %115 = vector.multi_reduction <maximumf>, %114, %cst_36 [1] : vector<32x32xf32> to vector<32xf32>
    %116 = vector.shape_cast %115 : vector<32xf32> to vector<32x1xf32>
    %117 = vector.broadcast %116 : vector<32x1xf32> to vector<32x32xf32>
    %118 = arith.subf %114, %117 : vector<32x32xf32>
    %119 = math.exp %118 : vector<32x32xf32>
    %cst_37 = arith.constant dense<0.000000e+00> : vector<32xf32>
    %120 = vector.multi_reduction <add>, %119, %cst_37 [1] : vector<32x32xf32> to vector<32xf32>
    %121 = vector.shape_cast %120 : vector<32xf32> to vector<32x1xf32>
    %122 = tpu.reciprocal %121 {approx = true} : vector<32x1xf32> -> vector<32x1xf32>
    %123 = vector.broadcast %122 : vector<32x1xf32> to vector<32x32xf32>
    %124 = arith.mulf %119, %123 : vector<32x32xf32>
    %125 = arith.truncf %124 : vector<32x32xf32> to vector<32x32xbf16>
    %126 = vector.extract_strided_slice %125 {offsets = [0, 0], sizes = [16, 32], strides = [1, 1]} : vector<32x32xbf16> to vector<16x32xbf16>
    %127 = vector.extract_strided_slice %107 {offsets = [0, 0], sizes = [32, 64], strides = [1, 1]} : vector<32x128xbf16> to vector<32x64xbf16>
    %cst_38 = arith.constant dense<0.000000e+00> : vector<16x64xf32>
    %128 = tpu.matmul %126, %127, %cst_38 {dimension_numbers = #tpu.dot_dimension_numbers<[1], [0], [0], [1], [0, 0, 1, 1], [], []>} : vector<16x32xbf16>, vector<32x64xbf16>, vector<16x64xf32> -> vector<16x64xf32>
    %c0_39 = arith.constant 0 : index
    %c384 = arith.constant 384 : index
    %129 = vector.load %arg8[%c0_39, %c384] : memref<32x512xf32, #tpu.memory_space<vmem>>, vector<16x64xf32>
    tpu.vector_store %arg8[%c0_39, %c384], %128 {strides = array<i32>} : memref<32x512xf32, #tpu.memory_space<vmem>>, vector<16x64xf32>,
    %130 = vector.extract_strided_slice %125 {offsets = [16, 0], sizes = [16, 32], strides = [1, 1]} : vector<32x32xbf16> to vector<16x32xbf16>
    %131 = vector.extract_strided_slice %107 {offsets = [0, 64], sizes = [32, 64], strides = [1, 1]} : vector<32x128xbf16> to vector<32x64xbf16>
    %cst_40 = arith.constant dense<0.000000e+00> : vector<16x64xf32>
    %132 = tpu.matmul %130, %131, %cst_40 {dimension_numbers = #tpu.dot_dimension_numbers<[1], [0], [0], [1], [0, 0, 1, 1], [], []>} : vector<16x32xbf16>, vector<32x64xbf16>, vector<16x64xf32> -> vector<16x64xf32>
    %c0_41 = arith.constant 0 : index
    %c448 = arith.constant 448 : index
    %133 = vector.load %arg8[%c0_41, %c448] : memref<32x512xf32, #tpu.memory_space<vmem>>, vector<16x64xf32>
    tpu.vector_store %arg8[%c0_41, %c448], %132 {strides = array<i32>} : memref<32x512xf32, #tpu.memory_space<vmem>>, vector<16x64xf32>,
    %134 = vector.extract_strided_slice %10 {offsets = [16, 0], sizes = [16, 512], strides = [1, 1]} : vector<32x512xbf16> to vector<16x512xbf16>
    %135 = vector.extract_strided_slice %12 {offsets = [32, 0], sizes = [32, 512], strides = [1, 1]} : vector<64x512xbf16> to vector<32x512xbf16>
    %136 = vector.extract_strided_slice %14 {offsets = [32, 0], sizes = [32, 512], strides = [1, 1]} : vector<64x512xbf16> to vector<32x512xbf16>
    %137 = vector.extract_strided_slice %134 {offsets = [0, 0], sizes = [16, 128], strides = [1, 1]} : vector<16x512xbf16> to vector<16x128xbf16>
    %138 = vector.extract_strided_slice %135 {offsets = [0, 0], sizes = [32, 128], strides = [1, 1]} : vector<32x512xbf16> to vector<32x128xbf16>
    %139 = vector.extract_strided_slice %136 {offsets = [0, 0], sizes = [32, 128], strides = [1, 1]} : vector<32x512xbf16> to vector<32x128xbf16>
    %140 = vector.extract_strided_slice %137 {offsets = [0, 0], sizes = [16, 64], strides = [1, 1]} : vector<16x128xbf16> to vector<16x64xbf16>
    %141 = vector.extract_strided_slice %138 {offsets = [0, 0], sizes = [32, 64], strides = [1, 1]} : vector<32x128xbf16> to vector<32x64xbf16>
    %cst_42 = arith.constant dense<0.000000e+00> : vector<16x32xf32>
    %142 = tpu.matmul %140, %141, %cst_42 {dimension_numbers = #tpu.dot_dimension_numbers<[1], [1], [0], [0], [0, 0, 1, 0], [], []>} : vector<16x64xbf16>, vector<32x64xbf16>, vector<16x32xf32> -> vector<16x32xf32>
    %143 = vector.extract_strided_slice %137 {offsets = [0, 64], sizes = [16, 64], strides = [1, 1]} : vector<16x128xbf16> to vector<16x64xbf16>
    %144 = vector.extract_strided_slice %138 {offsets = [0, 64], sizes = [32, 64], strides = [1, 1]} : vector<32x128xbf16> to vector<32x64xbf16>
    %cst_43 = arith.constant dense<0.000000e+00> : vector<16x32xf32>
    %145 = tpu.matmul %143, %144, %cst_43 {dimension_numbers = #tpu.dot_dimension_numbers<[1], [1], [0], [0], [0, 0, 1, 0], [], []>} : vector<16x64xbf16>, vector<32x64xbf16>, vector<16x32xf32> -> vector<16x32xf32>
    %146 = tpu.concatenate %142, %145 in 0 : vector<16x32xf32>, vector<16x32xf32> -> vector<32x32xf32>
    %cst_44 = arith.constant dense<0xFF800000> : vector<32xf32>
    %147 = vector.multi_reduction <maximumf>, %146, %cst_44 [1] : vector<32x32xf32> to vector<32xf32>
    %148 = vector.shape_cast %147 : vector<32xf32> to vector<32x1xf32>
    %149 = vector.broadcast %148 : vector<32x1xf32> to vector<32x32xf32>
    %150 = arith.subf %146, %149 : vector<32x32xf32>
    %151 = math.exp %150 : vector<32x32xf32>
    %cst_45 = arith.constant dense<0.000000e+00> : vector<32xf32>
    %152 = vector.multi_reduction <add>, %151, %cst_45 [1] : vector<32x32xf32> to vector<32xf32>
    %153 = vector.shape_cast %152 : vector<32xf32> to vector<32x1xf32>
    %154 = tpu.reciprocal %153 {approx = true} : vector<32x1xf32> -> vector<32x1xf32>
    %155 = vector.broadcast %154 : vector<32x1xf32> to vector<32x32xf32>
    %156 = arith.mulf %151, %155 : vector<32x32xf32>
    %157 = arith.truncf %156 : vector<32x32xf32> to vector<32x32xbf16>
    %158 = vector.extract_strided_slice %157 {offsets = [0, 0], sizes = [16, 32], strides = [1, 1]} : vector<32x32xbf16> to vector<16x32xbf16>
    %159 = vector.extract_strided_slice %139 {offsets = [0, 0], sizes = [32, 64], strides = [1, 1]} : vector<32x128xbf16> to vector<32x64xbf16>
    %cst_46 = arith.constant dense<0.000000e+00> : vector<16x64xf32>
    %160 = tpu.matmul %158, %159, %cst_46 {dimension_numbers = #tpu.dot_dimension_numbers<[1], [0], [0], [1], [0, 0, 1, 1], [], []>} : vector<16x32xbf16>, vector<32x64xbf16>, vector<16x64xf32> -> vector<16x64xf32>
    %c16 = arith.constant 16 : index
    %c0_47 = arith.constant 0 : index
    %161 = vector.load %arg8[%c16, %c0_47] : memref<32x512xf32, #tpu.memory_space<vmem>>, vector<16x64xf32>
    tpu.vector_store %arg8[%c16, %c0_47], %160 {strides = array<i32>} : memref<32x512xf32, #tpu.memory_space<vmem>>, vector<16x64xf32>,
    %162 = vector.extract_strided_slice %157 {offsets = [16, 0], sizes = [16, 32], strides = [1, 1]} : vector<32x32xbf16> to vector<16x32xbf16>
    %163 = vector.extract_strided_slice %139 {offsets = [0, 64], sizes = [32, 64], strides = [1, 1]} : vector<32x128xbf16> to vector<32x64xbf16>
    %cst_48 = arith.constant dense<0.000000e+00> : vector<16x64xf32>
    %164 = tpu.matmul %162, %163, %cst_48 {dimension_numbers = #tpu.dot_dimension_numbers<[1], [0], [0], [1], [0, 0, 1, 1], [], []>} : vector<16x32xbf16>, vector<32x64xbf16>, vector<16x64xf32> -> vector<16x64xf32>
    %c16_49 = arith.constant 16 : index
    %c64_50 = arith.constant 64 : index
    %165 = vector.load %arg8[%c16_49, %c64_50] : memref<32x512xf32, #tpu.memory_space<vmem>>, vector<16x64xf32>
    tpu.vector_store %arg8[%c16_49, %c64_50], %164 {strides = array<i32>} : memref<32x512xf32, #tpu.memory_space<vmem>>, vector<16x64xf32>,
    %166 = vector.extract_strided_slice %134 {offsets = [0, 128], sizes = [16, 128], strides = [1, 1]} : vector<16x512xbf16> to vector<16x128xbf16>
    %167 = vector.extract_strided_slice %135 {offsets = [0, 128], sizes = [32, 128], strides = [1, 1]} : vector<32x512xbf16> to vector<32x128xbf16>
    %168 = vector.extract_strided_slice %136 {offsets = [0, 128], sizes = [32, 128], strides = [1, 1]} : vector<32x512xbf16> to vector<32x128xbf16>
    %169 = vector.extract_strided_slice %166 {offsets = [0, 0], sizes = [16, 64], strides = [1, 1]} : vector<16x128xbf16> to vector<16x64xbf16>
    %170 = vector.extract_strided_slice %167 {offsets = [0, 0], sizes = [32, 64], strides = [1, 1]} : vector<32x128xbf16> to vector<32x64xbf16>
    %cst_51 = arith.constant dense<0.000000e+00> : vector<16x32xf32>
    %171 = tpu.matmul %169, %170, %cst_51 {dimension_numbers = #tpu.dot_dimension_numbers<[1], [1], [0], [0], [0, 0, 1, 0], [], []>} : vector<16x64xbf16>, vector<32x64xbf16>, vector<16x32xf32> -> vector<16x32xf32>
    %172 = vector.extract_strided_slice %166 {offsets = [0, 64], sizes = [16, 64], strides = [1, 1]} : vector<16x128xbf16> to vector<16x64xbf16>
    %173 = vector.extract_strided_slice %167 {offsets = [0, 64], sizes = [32, 64], strides = [1, 1]} : vector<32x128xbf16> to vector<32x64xbf16>
    %cst_52 = arith.constant dense<0.000000e+00> : vector<16x32xf32>
    %174 = tpu.matmul %172, %173, %cst_52 {dimension_numbers = #tpu.dot_dimension_numbers<[1], [1], [0], [0], [0, 0, 1, 0], [], []>} : vector<16x64xbf16>, vector<32x64xbf16>, vector<16x32xf32> -> vector<16x32xf32>
    %175 = tpu.concatenate %171, %174 in 0 : vector<16x32xf32>, vector<16x32xf32> -> vector<32x32xf32>
    %cst_53 = arith.constant dense<0xFF800000> : vector<32xf32>
    %176 = vector.multi_reduction <maximumf>, %175, %cst_53 [1] : vector<32x32xf32> to vector<32xf32>
    %177 = vector.shape_cast %176 : vector<32xf32> to vector<32x1xf32>
    %178 = vector.broadcast %177 : vector<32x1xf32> to vector<32x32xf32>
    %179 = arith.subf %175, %178 : vector<32x32xf32>
    %180 = math.exp %179 : vector<32x32xf32>
    %cst_54 = arith.constant dense<0.000000e+00> : vector<32xf32>
    %181 = vector.multi_reduction <add>, %180, %cst_54 [1] : vector<32x32xf32> to vector<32xf32>
    %182 = vector.shape_cast %181 : vector<32xf32> to vector<32x1xf32>
    %183 = tpu.reciprocal %182 {approx = true} : vector<32x1xf32> -> vector<32x1xf32>
    %184 = vector.broadcast %183 : vector<32x1xf32> to vector<32x32xf32>
    %185 = arith.mulf %180, %184 : vector<32x32xf32>
    %186 = arith.truncf %185 : vector<32x32xf32> to vector<32x32xbf16>
    %187 = vector.extract_strided_slice %186 {offsets = [0, 0], sizes = [16, 32], strides = [1, 1]} : vector<32x32xbf16> to vector<16x32xbf16>
    %188 = vector.extract_strided_slice %168 {offsets = [0, 0], sizes = [32, 64], strides = [1, 1]} : vector<32x128xbf16> to vector<32x64xbf16>
    %cst_55 = arith.constant dense<0.000000e+00> : vector<16x64xf32>
    %189 = tpu.matmul %187, %188, %cst_55 {dimension_numbers = #tpu.dot_dimension_numbers<[1], [0], [0], [1], [0, 0, 1, 1], [], []>} : vector<16x32xbf16>, vector<32x64xbf16>, vector<16x64xf32> -> vector<16x64xf32>
    %c16_56 = arith.constant 16 : index
    %c128_57 = arith.constant 128 : index
    %190 = vector.load %arg8[%c16_56, %c128_57] : memref<32x512xf32, #tpu.memory_space<vmem>>, vector<16x64xf32>
    tpu.vector_store %arg8[%c16_56, %c128_57], %189 {strides = array<i32>} : memref<32x512xf32, #tpu.memory_space<vmem>>, vector<16x64xf32>,
    %191 = vector.extract_strided_slice %186 {offsets = [16, 0], sizes = [16, 32], strides = [1, 1]} : vector<32x32xbf16> to vector<16x32xbf16>
    %192 = vector.extract_strided_slice %168 {offsets = [0, 64], sizes = [32, 64], strides = [1, 1]} : vector<32x128xbf16> to vector<32x64xbf16>
    %cst_58 = arith.constant dense<0.000000e+00> : vector<16x64xf32>
    %193 = tpu.matmul %191, %192, %cst_58 {dimension_numbers = #tpu.dot_dimension_numbers<[1], [0], [0], [1], [0, 0, 1, 1], [], []>} : vector<16x32xbf16>, vector<32x64xbf16>, vector<16x64xf32> -> vector<16x64xf32>
    %c16_59 = arith.constant 16 : index
    %c192_60 = arith.constant 192 : index
    %194 = vector.load %arg8[%c16_59, %c192_60] : memref<32x512xf32, #tpu.memory_space<vmem>>, vector<16x64xf32>
    tpu.vector_store %arg8[%c16_59, %c192_60], %193 {strides = array<i32>} : memref<32x512xf32, #tpu.memory_space<vmem>>, vector<16x64xf32>,
    %195 = vector.extract_strided_slice %134 {offsets = [0, 256], sizes = [16, 128], strides = [1, 1]} : vector<16x512xbf16> to vector<16x128xbf16>
    %196 = vector.extract_strided_slice %135 {offsets = [0, 256], sizes = [32, 128], strides = [1, 1]} : vector<32x512xbf16> to vector<32x128xbf16>
    %197 = vector.extract_strided_slice %136 {offsets = [0, 256], sizes = [32, 128], strides = [1, 1]} : vector<32x512xbf16> to vector<32x128xbf16>
    %198 = vector.extract_strided_slice %195 {offsets = [0, 0], sizes = [16, 64], strides = [1, 1]} : vector<16x128xbf16> to vector<16x64xbf16>
    %199 = vector.extract_strided_slice %196 {offsets = [0, 0], sizes = [32, 64], strides = [1, 1]} : vector<32x128xbf16> to vector<32x64xbf16>
    %cst_61 = arith.constant dense<0.000000e+00> : vector<16x32xf32>
    %200 = tpu.matmul %198, %199, %cst_61 {dimension_numbers = #tpu.dot_dimension_numbers<[1], [1], [0], [0], [0, 0, 1, 0], [], []>} : vector<16x64xbf16>, vector<32x64xbf16>, vector<16x32xf32> -> vector<16x32xf32>
    %201 = vector.extract_strided_slice %195 {offsets = [0, 64], sizes = [16, 64], strides = [1, 1]} : vector<16x128xbf16> to vector<16x64xbf16>
    %202 = vector.extract_strided_slice %196 {offsets = [0, 64], sizes = [32, 64], strides = [1, 1]} : vector<32x128xbf16> to vector<32x64xbf16>
    %cst_62 = arith.constant dense<0.000000e+00> : vector<16x32xf32>
    %203 = tpu.matmul %201, %202, %cst_62 {dimension_numbers = #tpu.dot_dimension_numbers<[1], [1], [0], [0], [0, 0, 1, 0], [], []>} : vector<16x64xbf16>, vector<32x64xbf16>, vector<16x32xf32> -> vector<16x32xf32>
    %204 = tpu.concatenate %200, %203 in 0 : vector<16x32xf32>, vector<16x32xf32> -> vector<32x32xf32>
    %cst_63 = arith.constant dense<0xFF800000> : vector<32xf32>
    %205 = vector.multi_reduction <maximumf>, %204, %cst_63 [1] : vector<32x32xf32> to vector<32xf32>
    %206 = vector.shape_cast %205 : vector<32xf32> to vector<32x1xf32>
    %207 = vector.broadcast %206 : vector<32x1xf32> to vector<32x32xf32>
    %208 = arith.subf %204, %207 : vector<32x32xf32>
    %209 = math.exp %208 : vector<32x32xf32>
    %cst_64 = arith.constant dense<0.000000e+00> : vector<32xf32>
    %210 = vector.multi_reduction <add>, %209, %cst_64 [1] : vector<32x32xf32> to vector<32xf32>
    %211 = vector.shape_cast %210 : vector<32xf32> to vector<32x1xf32>
    %212 = tpu.reciprocal %211 {approx = true} : vector<32x1xf32> -> vector<32x1xf32>
    %213 = vector.broadcast %212 : vector<32x1xf32> to vector<32x32xf32>
    %214 = arith.mulf %209, %213 : vector<32x32xf32>
    %215 = arith.truncf %214 : vector<32x32xf32> to vector<32x32xbf16>
    %216 = vector.extract_strided_slice %215 {offsets = [0, 0], sizes = [16, 32], strides = [1, 1]} : vector<32x32xbf16> to vector<16x32xbf16>
    %217 = vector.extract_strided_slice %197 {offsets = [0, 0], sizes = [32, 64], strides = [1, 1]} : vector<32x128xbf16> to vector<32x64xbf16>
    %cst_65 = arith.constant dense<0.000000e+00> : vector<16x64xf32>
    %218 = tpu.matmul %216, %217, %cst_65 {dimension_numbers = #tpu.dot_dimension_numbers<[1], [0], [0], [1], [0, 0, 1, 1], [], []>} : vector<16x32xbf16>, vector<32x64xbf16>, vector<16x64xf32> -> vector<16x64xf32>
    %c16_66 = arith.constant 16 : index
    %c256_67 = arith.constant 256 : index
    %219 = vector.load %arg8[%c16_66, %c256_67] : memref<32x512xf32, #tpu.memory_space<vmem>>, vector<16x64xf32>
    tpu.vector_store %arg8[%c16_66, %c256_67], %218 {strides = array<i32>} : memref<32x512xf32, #tpu.memory_space<vmem>>, vector<16x64xf32>,
    %220 = vector.extract_strided_slice %215 {offsets = [16, 0], sizes = [16, 32], strides = [1, 1]} : vector<32x32xbf16> to vector<16x32xbf16>
    %221 = vector.extract_strided_slice %197 {offsets = [0, 64], sizes = [32, 64], strides = [1, 1]} : vector<32x128xbf16> to vector<32x64xbf16>
    %cst_68 = arith.constant dense<0.000000e+00> : vector<16x64xf32>
    %222 = tpu.matmul %220, %221, %cst_68 {dimension_numbers = #tpu.dot_dimension_numbers<[1], [0], [0], [1], [0, 0, 1, 1], [], []>} : vector<16x32xbf16>, vector<32x64xbf16>, vector<16x64xf32> -> vector<16x64xf32>
    %c16_69 = arith.constant 16 : index
    %c320_70 = arith.constant 320 : index
    %223 = vector.load %arg8[%c16_69, %c320_70] : memref<32x512xf32, #tpu.memory_space<vmem>>, vector<16x64xf32>
    tpu.vector_store %arg8[%c16_69, %c320_70], %222 {strides = array<i32>} : memref<32x512xf32, #tpu.memory_space<vmem>>, vector<16x64xf32>,
    %224 = vector.extract_strided_slice %134 {offsets = [0, 384], sizes = [16, 128], strides = [1, 1]} : vector<16x512xbf16> to vector<16x128xbf16>
    %225 = vector.extract_strided_slice %135 {offsets = [0, 384], sizes = [32, 128], strides = [1, 1]} : vector<32x512xbf16> to vector<32x128xbf16>
    %226 = vector.extract_strided_slice %136 {offsets = [0, 384], sizes = [32, 128], strides = [1, 1]} : vector<32x512xbf16> to vector<32x128xbf16>
    %227 = vector.extract_strided_slice %224 {offsets = [0, 0], sizes = [16, 64], strides = [1, 1]} : vector<16x128xbf16> to vector<16x64xbf16>
    %228 = vector.extract_strided_slice %225 {offsets = [0, 0], sizes = [32, 64], strides = [1, 1]} : vector<32x128xbf16> to vector<32x64xbf16>
    %cst_71 = arith.constant dense<0.000000e+00> : vector<16x32xf32>
    %229 = tpu.matmul %227, %228, %cst_71 {dimension_numbers = #tpu.dot_dimension_numbers<[1], [1], [0], [0], [0, 0, 1, 0], [], []>} : vector<16x64xbf16>, vector<32x64xbf16>, vector<16x32xf32> -> vector<16x32xf32>
    %230 = vector.extract_strided_slice %224 {offsets = [0, 64], sizes = [16, 64], strides = [1, 1]} : vector<16x128xbf16> to vector<16x64xbf16>
    %231 = vector.extract_strided_slice %225 {offsets = [0, 64], sizes = [32, 64], strides = [1, 1]} : vector<32x128xbf16> to vector<32x64xbf16>
    %cst_72 = arith.constant dense<0.000000e+00> : vector<16x32xf32>
    %232 = tpu.matmul %230, %231, %cst_72 {dimension_numbers = #tpu.dot_dimension_numbers<[1], [1], [0], [0], [0, 0, 1, 0], [], []>} : vector<16x64xbf16>, vector<32x64xbf16>, vector<16x32xf32> -> vector<16x32xf32>
    %233 = tpu.concatenate %229, %232 in 0 : vector<16x32xf32>, vector<16x32xf32> -> vector<32x32xf32>
    %cst_73 = arith.constant dense<0xFF800000> : vector<32xf32>
    %234 = vector.multi_reduction <maximumf>, %233, %cst_73 [1] : vector<32x32xf32> to vector<32xf32>
    %235 = vector.shape_cast %234 : vector<32xf32> to vector<32x1xf32>
    %236 = vector.broadcast %235 : vector<32x1xf32> to vector<32x32xf32>
    %237 = arith.subf %233, %236 : vector<32x32xf32>
    %238 = math.exp %237 : vector<32x32xf32>
    %cst_74 = arith.constant dense<0.000000e+00> : vector<32xf32>
    %239 = vector.multi_reduction <add>, %238, %cst_74 [1] : vector<32x32xf32> to vector<32xf32>
    %240 = vector.shape_cast %239 : vector<32xf32> to vector<32x1xf32>
    %241 = tpu.reciprocal %240 {approx = true} : vector<32x1xf32> -> vector<32x1xf32>
    %242 = vector.broadcast %241 : vector<32x1xf32> to vector<32x32xf32>
    %243 = arith.mulf %238, %242 : vector<32x32xf32>
    %244 = arith.truncf %243 : vector<32x32xf32> to vector<32x32xbf16>
    %245 = vector.extract_strided_slice %244 {offsets = [0, 0], sizes = [16, 32], strides = [1, 1]} : vector<32x32xbf16> to vector<16x32xbf16>
    %246 = vector.extract_strided_slice %226 {offsets = [0, 0], sizes = [32, 64], strides = [1, 1]} : vector<32x128xbf16> to vector<32x64xbf16>
    %cst_75 = arith.constant dense<0.000000e+00> : vector<16x64xf32>
    %247 = tpu.matmul %245, %246, %cst_75 {dimension_numbers = #tpu.dot_dimension_numbers<[1], [0], [0], [1], [0, 0, 1, 1], [], []>} : vector<16x32xbf16>, vector<32x64xbf16>, vector<16x64xf32> -> vector<16x64xf32>
    %c16_76 = arith.constant 16 : index
    %c384_77 = arith.constant 384 : index
    %248 = vector.load %arg8[%c16_76, %c384_77] : memref<32x512xf32, #tpu.memory_space<vmem>>, vector<16x64xf32>
    tpu.vector_store %arg8[%c16_76, %c384_77], %247 {strides = array<i32>} : memref<32x512xf32, #tpu.memory_space<vmem>>, vector<16x64xf32>,
    %249 = vector.extract_strided_slice %244 {offsets = [16, 0], sizes = [16, 32], strides = [1, 1]} : vector<32x32xbf16> to vector<16x32xbf16>
    %250 = vector.extract_strided_slice %226 {offsets = [0, 64], sizes = [32, 64], strides = [1, 1]} : vector<32x128xbf16> to vector<32x64xbf16>
    %cst_78 = arith.constant dense<0.000000e+00> : vector<16x64xf32>
    %251 = tpu.matmul %249, %250, %cst_78 {dimension_numbers = #tpu.dot_dimension_numbers<[1], [0], [0], [1], [0, 0, 1, 1], [], []>} : vector<16x32xbf16>, vector<32x64xbf16>, vector<16x64xf32> -> vector<16x64xf32>
    %c16_79 = arith.constant 16 : index
    %c448_80 = arith.constant 448 : index
    %252 = vector.load %arg8[%c16_79, %c448_80] : memref<32x512xf32, #tpu.memory_space<vmem>>, vector<16x64xf32>
    tpu.vector_store %arg8[%c16_79, %c448_80], %251 {strides = array<i32>} : memref<32x512xf32, #tpu.memory_space<vmem>>, vector<16x64xf32>,
    %c0_81 = arith.constant 0 : index
    %c0_82 = arith.constant 0 : index
    %253 = vector.load %arg8[%c0_81, %c0_82] : memref<32x512xf32, #tpu.memory_space<vmem>>, vector<32x512xf32>
    %254 = arith.truncf %253 : vector<32x512xf32> to vector<32x512xbf16>
    %c0_83 = arith.constant 0 : index
    %c0_84 = arith.constant 0 : index
    %255 = vector.load %arg5[%c0_83, %c0_84] : memref<512x128xbf16, #tpu.memory_space<vmem>>, vector<512x128xbf16>
    %cst_85 = arith.constant dense<0.000000e+00> : vector<32x128xf32>
    %256 = tpu.matmul %254, %255, %cst_85 {dimension_numbers = #tpu.dot_dimension_numbers<[1], [0], [0], [1], [0, 0, 1, 1], [], []>} : vector<32x512xbf16>, vector<512x128xbf16>, vector<32x128xf32> -> vector<32x128xf32>
    %c0_86 = arith.constant 0 : index
    %c0_87 = arith.constant 0 : index
    %257 = vector.load %arg6[%c0_86, %c0_87] : memref<1x128xf32, #tpu.memory_space<vmem>>, vector<1x128xf32>
    %258 = vector.broadcast %257 : vector<1x128xf32> to vector<32x128xf32>
    %259 = arith.addf %256, %258 : vector<32x128xf32>
    %c0_88 = arith.constant 0 : index
    %c0_89 = arith.constant 0 : index
    %260 = vector.load %arg7[%c0_88, %c0_89] : memref<32x128xf32, #tpu.memory_space<vmem>>, vector<32x128xf32>
    tpu.vector_store %arg7[%c0_88, %c0_89], %259 {strides = array<i32>} : memref<32x128xf32, #tpu.memory_space<vmem>>, vector<32x128xf32>,
    return
  }
  func.func @transform_0(%arg0: i32) -> (i32, i32) {
    %c0_i32 = arith.constant 0 : i32
    %c0_i32_0 = arith.constant 0 : i32
    %c0_i32_1 = arith.constant 0 : i32
    return %c0_i32, %c0_i32_0 : i32, i32
  }
  func.func @transform_1(%arg0: i32) -> (i32, i32) {
    %c0_i32 = arith.constant 0 : i32
    %c0_i32_0 = arith.constant 0 : i32
    %c0_i32_1 = arith.constant 0 : i32
    return %c0_i32, %c0_i32_0 : i32, i32
  }
  func.func @transform_2(%arg0: i32) -> (i32, i32) {
    %c0_i32 = arith.constant 0 : i32
    %c0_i32_0 = arith.constant 0 : i32
    %c0_i32_1 = arith.constant 0 : i32
    return %c0_i32, %c0_i32_0 : i32, i32
  }
  func.func @transform_3(%arg0: i32) -> (i32, i32) {
    %c0_i32 = arith.constant 0 : i32
    %c0_i32_0 = arith.constant 0 : i32
    %c0_i32_1 = arith.constant 0 : i32
    return %c0_i32, %c0_i32_0 : i32, i32
  }
  func.func @transform_4(%arg0: i32) -> (i32, i32) {
    %c0_i32 = arith.constant 0 : i32
    %c0_i32_0 = arith.constant 0 : i32
    %c0_i32_1 = arith.constant 0 : i32
    return %c0_i32, %c0_i32_0 : i32, i32
  }
  func.func @transform_5(%arg0: i32) -> (i32, i32) {
    %c0_i32 = arith.constant 0 : i32
    %c0_i32_0 = arith.constant 0 : i32
    %c0_i32_1 = arith.constant 0 : i32
    return %c0_i32, %c0_i32_0 : i32, i32
  }
  func.func @transform_6(%arg0: i32) -> (i32, i32) {
    %c0_i32 = arith.constant 0 : i32
    %c0_i32_0 = arith.constant 0 : i32
    %c0_i32_1 = arith.constant 0 : i32
    return %c0_i32, %c0_i32_0 : i32, i32
  }
}

</mosaic_0001>

<bundles_post_ra>
// kernel: tpu_custom_call.1
= control target key start
LH: loop header
LB: loop body
LE: loop exit
PB: predicated region body
PF: predicated region fallthrough
CT: control target
= control target key end

     0   :  { %11 = vsyncpa [#allocation4], 0  ;;  %s5260_s0 = inlined_call_operand.hbm [shape: f32[32,128], index: 0, kind: input, shape index: {}]   ;;  %s5261_s1 = inlined_call_operand.hbm [shape: f32[64,128], index: 1, kind: input, shape index: {}]   ;;  %s5262_s2 = inlined_call_operand.hbm [shape: bf16[128,512], index: 2, kind: input, shape index: {}]   ;;  %s5263_s3 = inlined_call_operand.hbm [shape: bf16[128,1024], index: 3, kind: input, shape index: {}]   ;;  %s5264_s4 = inlined_call_operand.hbm [shape: bf16[512,128], index: 4, kind: input, shape index: {}]   ;;  %s5265_s5 = inlined_call_operand.vmem [shape: f32[1,128], index: 5, kind: input, shape index: {}]   ;;  %s5266_s6 = inlined_call_operand.hbm [shape: f32[32,128], index: 6, kind: output, shape index: {}]  }
   0x1   :  { %12 = vsyncpa [#allocation7], 0 }
   0x2   :  { %13 = vsyncpa [#allocation10], 0 }
   0x3   :  { %14 = vsyncpa [#allocation5], 0  ;;  %s4578_s21 = smov [#allocation6]   ;;  %s4579_s23 = smov [#allocation9]  }
   0x4   :  { %s32_s22 = sshll.u32 %s4578_s21, 4  ;;  %s56_s24 = sshll.u32 %s4579_s23, 4  ;;  %s33_s22 = int_to_ptr.vmem [resolvable:$true] %s32_s22  ;;  %s57_s24 = int_to_ptr.vmem [resolvable:$true] %s56_s24 }
   0x5   :  { %s4458_s25 = scalar_lea.vmem %s33_s22, 1024  ;;  %p4463_p1 = scmp.lt.s32.totalorder %s33_s22, %s33_s22 }
   0x6   :  { %p4459_p0 = scmp.ne.s32.totalorder %s33_s22, %s4458_s25  ;;  %p4464_p2 = scmp.lt.s32.totalorder %s4458_s25, %s4458_s25 }
   0x8   :  { %p4465_p3 = por %p4464_p2, %p4463_p1 }
   0xa   :  { %p4466_p4 = pnand %p4465_p3, %p4459_p0 }
   0xc   :  { %4469 = shalt.err (!%p4466_p4)
}
   0xd   :  { %s4580_s26 = smov 128   ;;  %s4581_s27 = smov 8  }
   0xe   :  { %38 = dma.hbm_to_vmem [thread:$0]  %s5261_s1, 1024, %s33_s22, [#allocation7], %s4580_s26, %s4580_s26, %s4581_s27  }
   0xf   :  { %s4478_s30 = scalar_lea.vmem %s57_s24, 8192  ;;  %p4483_p6 = scmp.lt.s32.totalorder %s57_s24, %s57_s24 }
  0x10   :  { %p4479_p5 = scmp.ne.s32.totalorder %s57_s24, %s4478_s30  ;;  %p4484_p7 = scmp.lt.s32.totalorder %s4478_s30, %s4478_s30 }
  0x12   :  { %p4485_p8 = por %p4484_p7, %p4483_p6 }
  0x14   :  { %p4486_p9 = pnand %p4485_p8, %p4479_p5 }
  0x16   :  { %4489 = shalt.err (!%p4486_p9)
}
  0x17   :  { %s4582_s7 = smov 512   ;;  %s4583_s8 = smov 32  }
  0x18   :  { %62 = dma.hbm_to_vmem [thread:$0]  %s5263_s3, 8192, %s57_s24, [#allocation10], %s4582_s7, %s4582_s7, %s4583_s8  }
  0x19   :  { %s4584_s11 = smov [#allocation3]   ;;  %s4585_s13 = smov [#allocation8]  }
  0x1a   :  { %s20_s12 = sshll.u32 %s4584_s11, 4  ;;  %s44_s14 = sshll.u32 %s4585_s13, 4  ;;  %s21_s12 = int_to_ptr.vmem [resolvable:$true] %s20_s12  ;;  %s45_s14 = int_to_ptr.vmem [resolvable:$true] %s44_s14 }
  0x1b   :  { %s4498_s1 = scalar_lea.vmem %s21_s12, 512  ;;  %p4503_p11 = scmp.lt.s32.totalorder %s21_s12, %s21_s12 }
  0x1c   :  { %p4499_p10 = scmp.ne.s32.totalorder %s21_s12, %s4498_s1  ;;  %p4504_p12 = scmp.lt.s32.totalorder %s4498_s1, %s4498_s1 }
  0x1e   :  { %p4505_p13 = por %p4504_p12, %p4503_p11 }
  0x20   :  { %p4506_p0 = pnand %p4505_p13, %p4499_p10 }
  0x22   :  { %4509 = shalt.err (!%p4506_p0)
}
  0x23   :  { %26 = dma.hbm_to_vmem [thread:$0]  %s5260_s0, 512, %s21_s12, [#allocation4], %s4580_s26, %s4580_s26, %s4581_s27  }
  0x24   :  { %s4518_s3 = scalar_lea.vmem %s45_s14, 4096  ;;  %p4523_p2 = scmp.lt.s32.totalorder %s45_s14, %s45_s14 }
  0x25   :  { %p4519_p1 = scmp.ne.s32.totalorder %s45_s14, %s4518_s3  ;;  %p4524_p3 = scmp.lt.s32.totalorder %s4518_s3, %s4518_s3 }
  0x27   :  { %p4525_p4 = por %p4524_p3, %p4523_p2 }
  0x29   :  { %p4526_p5 = pnand %p4525_p4, %p4519_p1 }
  0x2b   :  { %4529 = shalt.err (!%p4526_p5)
}
  0x2c   :  { %s4586_s17 = smov 256   ;;  %s4587_s18 = smov 16  }
  0x2d   :  { %50 = dma.hbm_to_vmem [thread:$0]  %s5262_s2, 4096, %s45_s14, [#allocation7], %s4586_s17, %s4586_s17, %s4587_s18  }
  0x2e   :  { %s4588_s21 = smov [#allocation11]  }
  0x2f   :  { %s68_s22 = sshll.u32 %s4588_s21, 4  ;;  %s69_s22 = int_to_ptr.vmem [resolvable:$true] %s68_s22 }
  0x30   :  { %s4538_s23 = scalar_lea.vmem %s69_s22, 4096  ;;  %p4543_p7 = scmp.lt.s32.totalorder %s69_s22, %s69_s22 }
  0x31   :  { %p4539_p6 = scmp.ne.s32.totalorder %s69_s22, %s4538_s23  ;;  %p4544_p8 = scmp.lt.s32.totalorder %s4538_s23, %s4538_s23 }
  0x33   :  { %p4545_p9 = por %p4544_p8, %p4543_p7 }
  0x35   :  { %p4546_p10 = pnand %p4545_p9, %p4539_p6 }
  0x37   :  { %4549 = shalt.err (!%p4546_p10)
}
  0x38   :  { %s4589_s0 = smov 64   ;;  %s4590_s24 = smov 4  }
  0x39   :  { %74 = dma.hbm_to_vmem [thread:$0]  %s5264_s4, 4096, %s69_s22, [#allocation10], %s4589_s0, %s4589_s0, %s4590_s24  }
  0x3a   :  { %4570 = dma.done.wait [#allocation4], 512  }
  0x3b   :  { %4571 = vsyncadd [#allocation4], 4294966784 }
  0x3c   :  { %4572 = dma.done.wait [#allocation7], 5120  }
  0x3d   :  { %4573 = vsyncadd [#allocation7], 4294962176 }
  0x3e   :  { %4574 = dma.done.wait [#allocation10], 12288  }
  0x3f   :  { %4575 = vsyncadd [#allocation10], 4294955008  ;;  %v4591_v0 = vmov 0   ;;  %v4242_v1 = vld [vmem:[#allocation8 + $0xe4] ss:$16 sps:$4 sm:$0xff]   ;;  %v94_v20 = vld [vmem:[#allocation3 + $0x8] sm:$0xff] }
  0x40   :  { %335 = vmatprep.mubr.bf16.mxu0 %v4591_v0  ;;  %388 = vmatprep.mubr.bf16.mxu1 %v4591_v0  ;;  %v4244_v2 = vld [vmem:[#allocation8 + $0xe0] ss:$16 sps:$4 sm:$0xff]   ;;  %v4245_v3 = vld [vmem:[#allocation8 + $0xc4] ss:$16 sps:$4 sm:$0xff]   ;;  %v96_v30 = vld [vmem:[#allocation3 + $0x18] sm:$0xff]  ;;  %vm4593_vm0 = vmmov 0  }
  0x41   :  { %303 = vmatprep.subr.bf16.mxu0 %v4242_v1  ;;  %v4247_v4 = vld [vmem:[#allocation8 + $0xc0] ss:$16 sps:$4 sm:$0xff]   ;;  %v4248_v5 = vld [vmem:[#allocation8 + $0xa4] ss:$16 sps:$4 sm:$0xff]   ;;  %v100_v58 = vld [vmem:[#allocation6 + $0x8] sm:$0xff]  ;;  %vm1141_vm1 = vcmask 523264  }
  0x42   :  { %304 = vmatpush1.bf16.msra.mxu0 %v4244_v2  ;;  %v4250_v6 = vld [vmem:[#allocation8 + $0xa0] ss:$16 sps:$4 sm:$0xff]   ;;  %v4251_v7 = vld [vmem:[#allocation8 + $0x84] ss:$16 sps:$4 sm:$0xff]   ;;  %v102_v63 = vld [vmem:[#allocation6 + $0x18] sm:$0xff]  ;;  %vm1251_vm2 = vcmask 261120  }
  0x43   :  { %305 = vmatprep.subr.bf16.mxu0 %v4245_v3  ;;  %v4253_v8 = vld [vmem:[#allocation8 + $0x80] ss:$16 sps:$4 sm:$0xff]   ;;  %v4254_v9 = vld [vmem:[#allocation8 + $0x64] ss:$16 sps:$4 sm:$0xff]   ;;  %vm1404_vm3 = vcmask 1048064  }
  0x44   :  { %v4256_v10 = vld [vmem:[#allocation8 + $0x60] ss:$16 sps:$4 sm:$0xff]   ;;  %v4257_v11 = vld [vmem:[#allocation8 + $0x44] ss:$16 sps:$4 sm:$0xff]  }
  0x45   :  { %v4259_v12 = vld [vmem:[#allocation8 + $0x40] ss:$16 sps:$4 sm:$0xff]   ;;  %v4260_v13 = vld [vmem:[#allocation8 + $0x24] ss:$16 sps:$4 sm:$0xff]  }
  0x46   :  { %306 = vmatpush1.bf16.msra.mxu0 %v4247_v4  ;;  %v4262_v14 = vld [vmem:[#allocation8 + $0x20] ss:$16 sps:$4 sm:$0xff]   ;;  %v4263_v15 = vld [vmem:[#allocation8 + $0x4] ss:$16 sps:$4 sm:$0xff]  }
  0x47   :  { %307 = vmatprep.subr.bf16.mxu0 %v4248_v5  ;;  %v465_v16 = vld [vmem:[#allocation9 + $0x1c0] sm:$0xff]  ;;  %v95_v29 = vld [vmem:[#allocation3 + $0x10] sm:$0xff] }
  0x48   :  { %v469_v17 = vld [vmem:[#allocation9 + $0x1e0] sm:$0xff]  ;;  %v4659_v35 = vpack.c.bf16 %v96_v30, %v95_v29  ;;  %v467_v54 = vld [vmem:[#allocation9 + $0x1d0] sm:$0xff] }
  0x49   :  { %v4265_v18 = vld [vmem:[#allocation8] ss:$16 sps:$4 sm:$0xff]   ;;  %v3745_v23 = vcombine.high %v465_v16, %v469_v17  ;;  %v3744_v25 = vcombine.low %v465_v16, %v469_v17 }
  0x4a   :  { %308 = vmatpush1.bf16.msra.mxu0 %v4250_v6  ;;  %v93_v19 = vld [vmem:[#allocation3] sm:$0xff]  ;;  %v471_v55 = vld [vmem:[#allocation9 + $0x1f0] sm:$0xff] }
  0x4b   :  { %309 = vmatprep.subr.bf16.mxu0 %v4251_v7  ;;  %v457_v21 = vld [vmem:[#allocation9 + $0x180] sm:$0xff]  ;;  %v4655_v24 = vpack.c.bf16 %v94_v20, %v93_v19  ;;  %v3749_v59 = vcombine.high %v467_v54, %v471_v55  ;;  %v3748_v61 = vcombine.low %v467_v54, %v471_v55  ;;  %v101_v62 = vld [vmem:[#allocation6 + $0x10] sm:$0xff]  ;;  %v466_v54 = vld [vmem:[#allocation9 + $0x1c8] sm:$0xff] }
  0x4c   :  { %v461_v22 = vld [vmem:[#allocation9 + $0x1a0] sm:$0xff]  ;;  %v4667_v1 = vpack.c.bf16 %v102_v63, %v101_v62  ;;  %v459_v2 = vld [vmem:[#allocation9 + $0x190] sm:$0xff]  ;;  %v470_v55 = vld [vmem:[#allocation9 + $0x1e8] sm:$0xff] }
  0x4d   :  { %v449_v26 = vld [vmem:[#allocation9 + $0x140] sm:$0xff]  ;;  %v3737_v28 = vcombine.high %v457_v21, %v461_v22  ;;  %v3736_v31 = vcombine.low %v457_v21, %v461_v22  ;;  %v463_v3 = vld [vmem:[#allocation9 + $0x1b0] sm:$0xff]  ;;  %v450_v63 = vld [vmem:[#allocation9 + $0x148] sm:$0xff] }
  0x4e   :  { %310 = vmatpush1.bf16.msra.mxu0 %v4253_v8  ;;  %v453_v27 = vld [vmem:[#allocation9 + $0x160] sm:$0xff]  ;;  %v3741_v4 = vcombine.high %v459_v2, %v463_v3  ;;  %v3740_v5 = vcombine.low %v459_v2, %v463_v3  ;;  %v451_v6 = vld [vmem:[#allocation9 + $0x150] sm:$0xff]  ;;  %v454_v2 = vld [vmem:[#allocation9 + $0x168] sm:$0xff] }
  0x4f   :  { %311 = vmatprep.subr.bf16.mxu0 %v4254_v9  ;;  %v441_v32 = vld [vmem:[#allocation9 + $0x100] sm:$0xff]  ;;  %v3729_v34 = vcombine.high %v449_v26, %v453_v27  ;;  %v3728_v36 = vcombine.low %v449_v26, %v453_v27  ;;  %v455_v7 = vld [vmem:[#allocation9 + $0x170] sm:$0xff]  ;;  %v106_v26 = vld [vmem:[#allocation6 + $0x38] sm:$0xff] }
  0x50   :  { %v445_v33 = vld [vmem:[#allocation9 + $0x120] sm:$0xff]  ;;  %v3733_v8 = vcombine.high %v451_v6, %v455_v7  ;;  %v3732_v9 = vcombine.low %v451_v6, %v455_v7  ;;  %v435_v16 = vld [vmem:[#allocation9 + $0xd0] sm:$0xff]  ;;  %v446_v6 = vld [vmem:[#allocation9 + $0x128] sm:$0xff]  ;;  %v3730_v7 = vcombine.low %v450_v63, %v454_v2 }
  0x51   :  { %v433_v37 = vld [vmem:[#allocation9 + $0xc0] sm:$0xff]  ;;  %v3721_v39 = vcombine.high %v441_v32, %v445_v33  ;;  %v3720_v40 = vcombine.low %v441_v32, %v445_v33  ;;  %v427_v19 = vld [vmem:[#allocation9 + $0x90] sm:$0xff] }
  0x52   :  { %312 = vmatpush1.bf16.msra.mxu0 %v4256_v10  ;;  %v437_v38 = vld [vmem:[#allocation9 + $0xe0] sm:$0xff]  ;;  %v443_v10 = vld [vmem:[#allocation9 + $0x110] sm:$0xff] }
  0x53   :  { %313 = vmatprep.subr.bf16.mxu0 %v4257_v11  ;;  %v425_v41 = vld [vmem:[#allocation9 + $0x80] sm:$0xff]  ;;  %v3713_v43 = vcombine.high %v433_v37, %v437_v38  ;;  %v3712_v44 = vcombine.low %v433_v37, %v437_v38  ;;  %v447_v11 = vld [vmem:[#allocation9 + $0x130] sm:$0xff]  ;;  %v4266_v38 = vld [vmem:[#allocation8 + $0xec] ss:$16 sps:$4 sm:$0xff]  }
  0x54   :  { %v429_v42 = vld [vmem:[#allocation9 + $0xa0] sm:$0xff]  ;;  %v431_v20 = vld [vmem:[#allocation9 + $0xb0] sm:$0xff]  ;;  %356 = vmatprep.subr.bf16.mxu1 %v4266_v38 }
  0x55   :  { %v3705_v45 = vcombine.high %v425_v41, %v429_v42  ;;  %v417_v46 = vld [vmem:[#allocation9 + $0x40] sm:$0xff]  ;;  %v3704_v48 = vcombine.low %v425_v41, %v429_v42  ;;  %v419_v27 = vld [vmem:[#allocation9 + $0x50] sm:$0xff]  ;;  %v3708_v29 = vcombine.low %v427_v19, %v431_v20  ;;  %v4592_v41 = vmov 0.0   ;;  %v4271_v42 = vld [vmem:[#allocation8 + $0xc8] ss:$16 sps:$4 sm:$0xff]  }
  0x56   :  { %314 = vmatpush1.bf16.msra.mxu0 %v4259_v12  ;;  %v421_v47 = vld [vmem:[#allocation9 + $0x60] sm:$0xff]  ;;  %v3724_v12 = vcombine.low %v443_v10, %v447_v11  ;;  %v411_v32 = vld [vmem:[#allocation9 + $0x10] sm:$0xff] }
  0x57   :  { %315 = vmatprep.subr.bf16.mxu0 %v4260_v13  ;;  %v3697_v49 = vcombine.high %v417_v46, %v421_v47  ;;  %v409_v50 = vld [vmem:[#allocation9] sm:$0xff]  ;;  %v3696_v52 = vcombine.low %v417_v46, %v421_v47  ;;  %v3725_v13 = vcombine.high %v443_v10, %v447_v11  ;;  %v415_v33 = vld [vmem:[#allocation9 + $0x30] sm:$0xff]  ;;  %v4277_v46 = vld [vmem:[#allocation8 + $0x88] ss:$16 sps:$4 sm:$0xff]  }
  0x58   :  { %v413_v51 = vld [vmem:[#allocation9 + $0x20] sm:$0xff]  ;;  %v3692_v37 = vcombine.low %v411_v32, %v415_v33  ;;  %v4278_v47 = vld [vmem:[#allocation8 + $0x6c] ss:$16 sps:$4 sm:$0xff]  }
  0x59   :  { %v3689_v53 = vcombine.high %v409_v50, %v413_v51  ;;  %v3688_v56 = vcombine.low %v409_v50, %v413_v51  ;;  %v99_v57 = vld [vmem:[#allocation6] sm:$0xff]  ;;  %v4283_v50 = vld [vmem:[#allocation8 + $0x48] ss:$16 sps:$4 sm:$0xff]   ;;  %v4284_v51 = vld [vmem:[#allocation8 + $0x2c] ss:$16 sps:$4 sm:$0xff]  }
  0x5a   :  { %316 = vmatpush1.bf16.msra.mxu0 %v4262_v14  ;;  %v4663_v60 = vpack.c.bf16 %v100_v58, %v99_v57  ;;  %v103_v14 = vld [vmem:[#allocation6 + $0x20] sm:$0xff]  ;;  %v3747_v57 = vcombine.high %v466_v54, %v470_v55  ;;  %v458_v58 = vld [vmem:[#allocation9 + $0x188] sm:$0xff] }
  0x5b   :  { %317 = vmatprep.subr.bf16.mxu0 %v4263_v15  ;;  %v104_v15 = vld [vmem:[#allocation6 + $0x28] sm:$0xff] }
  0x5c   :  { %v4671_v17 = vpack.c.bf16 %v104_v15, %v103_v14  ;;  %v438_v10 = vld [vmem:[#allocation9 + $0xe8] sm:$0xff] }
  0x5e   :  { %318 = vmatpush1.bf16.msra.mxu0 %v4265_v18  ;;  %v439_v18 = vld [vmem:[#allocation9 + $0xf0] sm:$0xff] }
  0x5f   :  { %793 = vmatprep.subr.bf16.mxu0 %v3745_v23  ;;  %v3717_v21 = vcombine.high %v435_v16, %v439_v18  ;;  %v3716_v22 = vcombine.low %v435_v16, %v439_v18  ;;  %v3709_v23 = vcombine.high %v427_v19, %v431_v20  ;;  %v418_v16 = vld [vmem:[#allocation9 + $0x48] sm:$0xff] }
  0x60   :  { %v422_v18 = vld [vmem:[#allocation9 + $0x68] sm:$0xff] }
  0x61   :  { %336 = vmatmul.mubr.bf16.vlgmr.msra.gmra.mxu0 %v4655_v24  ;;  %v3699_v20 = vcombine.high %v418_v16, %v422_v18 }
  0x62   :  { %794 = vmatpush1.bf16.msra.mxu0 %v3744_v25  ;;  %345 = vmatprep.mubr.bf16.mxu0 %v4591_v0  ;;  %v105_v25 = vld [vmem:[#allocation6 + $0x30] sm:$0xff] }
  0x63   :  { %795 = vmatprep.subr.bf16.mxu0 %v3737_v28  ;;  %v423_v28 = vld [vmem:[#allocation9 + $0x70] sm:$0xff]  ;;  %v4675_v30 = vpack.c.bf16 %v106_v26, %v105_v25  ;;  %v468_v25 = vld [vmem:[#allocation9 + $0x1d8] sm:$0xff] }
  0x64   :  { %v472_v26 = vld [vmem:[#allocation9 + $0x1f8] sm:$0xff] }
  0x66   :  { %796 = vmatpush1.bf16.msra.mxu0 %v3736_v31  ;;  %v3701_v31 = vcombine.high %v419_v27, %v423_v28 }
  0x67   :  { %797 = vmatprep.subr.bf16.mxu0 %v3729_v34  ;;  %v3700_v34 = vcombine.low %v419_v27, %v423_v28  ;;  %v3751_v28 = vcombine.high %v468_v25, %v472_v26 }
  0x69   :  { %346 = vmatmul.mubr.bf16.gmra.mxu0 %v4659_v35 }
  0x6a   :  { %798 = vmatpush1.bf16.msra.mxu0 %v3728_v36  ;;  %825 = vmatprep.mubr.bf16.mxu0 %v4591_v0  ;;  %v3693_v36 = vcombine.high %v411_v32, %v415_v33  ;;  %v3750_v32 = vcombine.low %v468_v25, %v472_v26 }
  0x6b   :  { %799 = vmatprep.subr.bf16.mxu0 %v3721_v39  ;;  %v4268_v39 = vld [vmem:[#allocation8 + $0xe8] ss:$16 sps:$4 sm:$0xff]  }
  0x6c   :  { %357 = vmatpush1.bf16.msra.mxu1 %v4268_v39 }
  0x6e   :  { %800 = vmatpush1.bf16.msra.mxu0 %v3720_v40  ;;  %v4269_v40 = vld [vmem:[#allocation8 + $0xcc] ss:$16 sps:$4 sm:$0xff]  }
  0x6f   :  { %801 = vmatprep.subr.bf16.mxu0 %v3713_v43  ;;  %358 = vmatprep.subr.bf16.mxu1 %v4269_v40  ;;  %v4272_v43 = vld [vmem:[#allocation8 + $0xac] ss:$16 sps:$4 sm:$0xff]  }
  0x70   :  { %359 = vmatpush1.bf16.msra.mxu1 %v4271_v42  ;;  %v444_v40 = vld [vmem:[#allocation9 + $0x118] sm:$0xff] }
  0x71   :  { %360 = vmatprep.subr.bf16.mxu1 %v4272_v43  ;;  %v448_v42 = vld [vmem:[#allocation9 + $0x138] sm:$0xff] }
  0x72   :  { %802 = vmatpush1.bf16.msra.mxu0 %v3712_v44  ;;  %v4274_v44 = vld [vmem:[#allocation8 + $0xa8] ss:$16 sps:$4 sm:$0xff]   ;;  %v3727_v43 = vcombine.high %v444_v40, %v448_v42 }
  0x73   :  { %803 = vmatprep.subr.bf16.mxu0 %v3705_v45  ;;  %v4275_v45 = vld [vmem:[#allocation8 + $0x8c] ss:$16 sps:$4 sm:$0xff]  }
  0x74   :  { %361 = vmatpush1.bf16.msra.mxu1 %v4274_v44  ;;  %v3726_v44 = vcombine.low %v444_v40, %v448_v42 }
  0x75   :  { %362 = vmatprep.subr.bf16.mxu1 %v4275_v45  ;;  %v436_v45 = vld [vmem:[#allocation9 + $0xd8] sm:$0xff] }
  0x76   :  { %804 = vmatpush1.bf16.msra.mxu0 %v3704_v48  ;;  %v4280_v48 = vld [vmem:[#allocation8 + $0x68] ss:$16 sps:$4 sm:$0xff]  }
  0x77   :  { %805 = vmatprep.subr.bf16.mxu0 %v3697_v49  ;;  %v4281_v49 = vld [vmem:[#allocation8 + $0x4c] ss:$16 sps:$4 sm:$0xff]  }
  0x78   :  { %363 = vmatpush1.bf16.msra.mxu1 %v4277_v46  ;;  %v440_v46 = vld [vmem:[#allocation9 + $0xf8] sm:$0xff] }
  0x79   :  { %364 = vmatprep.subr.bf16.mxu1 %v4278_v47  ;;  %v3719_v47 = vcombine.high %v436_v45, %v440_v46 }
  0x7a   :  { %806 = vmatpush1.bf16.msra.mxu0 %v3696_v52  ;;  %v4286_v52 = vld [vmem:[#allocation8 + $0x28] ss:$16 sps:$4 sm:$0xff]  }
  0x7b   :  { %807 = vmatprep.subr.bf16.mxu0 %v3689_v53  ;;  %v4287_v53 = vld [vmem:[#allocation8 + $0xc] ss:$16 sps:$4 sm:$0xff]  }
  0x7c   :  { %365 = vmatpush1.bf16.msra.mxu1 %v4280_v48  ;;  %v3718_v48 = vcombine.low %v436_v45, %v440_v46 }
  0x7d   :  { %366 = vmatprep.subr.bf16.mxu1 %v4281_v49  ;;  %v428_v49 = vld [vmem:[#allocation9 + $0x98] sm:$0xff] }
  0x7e   :  { %808 = vmatpush1.bf16.msra.mxu0 %v3688_v56  ;;  %v4289_v56 = vld [vmem:[#allocation8 + $0x8] ss:$16 sps:$4 sm:$0xff]  }
  0x7f   :  { %939 = vmatprep.subr.bf16.mxu0 %v3749_v59  ;;  %v462_v59 = vld [vmem:[#allocation9 + $0x1a8] sm:$0xff] }
  0x80   :  { %367 = vmatpush1.bf16.msra.mxu1 %v4283_v50  ;;  %v3739_v62 = vcombine.high %v458_v58, %v462_v59  ;;  %v3738_v3 = vcombine.low %v458_v58, %v462_v59  ;;  %v432_v50 = vld [vmem:[#allocation9 + $0xb8] sm:$0xff] }
  0x81   :  { %826 = vmatmul.mubr.bf16.vlgmr.msra.gmra.mxu0 %v4663_v60  ;;  %368 = vmatprep.subr.bf16.mxu1 %v4284_v51  ;;  %v420_v51 = vld [vmem:[#allocation9 + $0x58] sm:$0xff] }
  0x82   :  { %835 = vmatprep.mubr.bf16.mxu0 %v4591_v0  ;;  %940 = vmatpush1.bf16.msra.mxu0 %v3748_v61  ;;  %v3746_v61 = vcombine.low %v466_v54, %v470_v55  ;;  %v3710_v54 = vcombine.low %v428_v49, %v432_v50 }
  0x83   :  { %941 = vmatprep.subr.bf16.mxu0 %v3741_v4  ;;  %v3731_v4 = vcombine.high %v450_v63, %v454_v2 }
  0x84   :  { %369 = vmatpush1.bf16.msra.mxu1 %v4286_v52  ;;  %v3711_v52 = vcombine.high %v428_v49, %v432_v50 }
  0x85   :  { %370 = vmatprep.subr.bf16.mxu1 %v4287_v53  ;;  %v424_v53 = vld [vmem:[#allocation9 + $0x78] sm:$0xff] }
  0x86   :  { %942 = vmatpush1.bf16.msra.mxu0 %v3740_v5  ;;  %v442_v5 = vld [vmem:[#allocation9 + $0x108] sm:$0xff]  ;;  %v3703_v55 = vcombine.high %v420_v51, %v424_v53  ;;  %v3702_v59 = vcombine.low %v420_v51, %v424_v53 }
  0x87   :  { %943 = vmatprep.subr.bf16.mxu0 %v3733_v8  ;;  %v3723_v8 = vcombine.high %v442_v5, %v446_v6  ;;  %v3722_v11 = vcombine.low %v442_v5, %v446_v6 }
  0x88   :  { %371 = vmatpush1.bf16.msra.mxu1 %v4289_v56  ;;  %v412_v56 = vld [vmem:[#allocation9 + $0x18] sm:$0xff] }
  0x89   :  { %836 = vmatmul.mubr.bf16.gmra.mxu0 %v4667_v1  ;;  %866 = vmatprep.subr.bf16.mxu1 %v3747_v57  ;;  %v416_v57 = vld [vmem:[#allocation9 + $0x38] sm:$0xff] }
  0x8a   :  { %845 = vmatprep.mubr.bf16.mxu0 %v4591_v0  ;;  %944 = vmatpush1.bf16.msra.mxu0 %v3732_v9  ;;  %v434_v9 = vld [vmem:[#allocation9 + $0xc8] sm:$0xff] }
  0x8b   :  { %945 = vmatprep.subr.bf16.mxu0 %v3725_v13  ;;  %389 = vmatmul.mubr.bf16.vlgmr.msra.gmra.mxu1 %v4655_v24  ;;  %v3715_v24 = vcombine.high %v434_v9, %v438_v10  ;;  %v430_v13 = vld [vmem:[#allocation9 + $0xa8] sm:$0xff]  ;;  %v3714_v14 = vcombine.low %v434_v9, %v438_v10 }
  0x8c   :  { %867 = vmatpush1.bf16.msra.mxu1 %v3746_v61  ;;  %398 = vmatprep.mubr.bf16.mxu1 %v4591_v0 }
  0x8d   :  { %868 = vmatprep.subr.bf16.mxu1 %v3739_v62  ;;  %v3695_v62 = vcombine.high %v412_v56, %v416_v57 }
  0x8e   :  { %946 = vmatpush1.bf16.msra.mxu0 %v3724_v12  ;;  %v426_v12 = vld [vmem:[#allocation9 + $0x88] sm:$0xff] }
  0x8f   :  { %947 = vmatprep.subr.bf16.mxu0 %v3717_v21  ;;  %v3707_v15 = vcombine.high %v426_v12, %v430_v13  ;;  %v3706_v19 = vcombine.low %v426_v12, %v430_v13  ;;  %v410_v21 = vld [vmem:[#allocation9 + $0x8] sm:$0xff] }
  0x90   :  { %869 = vmatpush1.bf16.msra.mxu1 %v3738_v3 }
  0x91   :  { %846 = vmatmul.mubr.bf16.gmra.mxu0 %v4671_v17  ;;  %870 = vmatprep.subr.bf16.mxu1 %v3731_v4  ;;  %v3694_v4 = vcombine.low %v412_v56, %v416_v57 }
  0x92   :  { %855 = vmatprep.mubr.bf16.mxu0 %v4591_v0  ;;  %948 = vmatpush1.bf16.msra.mxu0 %v3716_v22  ;;  %v3698_v22 = vcombine.low %v418_v16, %v422_v18 }
  0x93   :  { %949 = vmatprep.subr.bf16.mxu0 %v3709_v23  ;;  %399 = vmatmul.mubr.bf16.gmra.mxu1 %v4659_v35  ;;  %v414_v35 = vld [vmem:[#allocation9 + $0x28] sm:$0xff] }
  0x94   :  { %871 = vmatpush1.bf16.msra.mxu1 %v3730_v7  ;;  %898 = vmatprep.mubr.bf16.mxu1 %v4591_v0  ;;  %v3691_v23 = vcombine.high %v410_v21, %v414_v35  ;;  %v3690_v27 = vcombine.low %v410_v21, %v414_v35 }
  0x95   :  { %872 = vmatprep.subr.bf16.mxu1 %v3723_v8 }
  0x96   :  { %950 = vmatpush1.bf16.msra.mxu0 %v3708_v29  ;;  %v460_v29 = vld [vmem:[#allocation9 + $0x198] sm:$0xff] }
  0x97   :  { %951 = vmatprep.subr.bf16.mxu0 %v3701_v31  ;;  %v464_v31 = vld [vmem:[#allocation9 + $0x1b8] sm:$0xff] }
  0x98   :  { %873 = vmatpush1.bf16.msra.mxu1 %v3722_v11  ;;  %v3743_v33 = vcombine.high %v460_v29, %v464_v31 }
  0x99   :  { %856 = vmatmul.mubr.bf16.gmra.mxu0 %v4675_v30  ;;  %874 = vmatprep.subr.bf16.mxu1 %v3715_v24 }
  0x9a   :  { %971 = vmatprep.mubr.bf16.mxu0 %v4591_v0  ;;  %952 = vmatpush1.bf16.msra.mxu0 %v3700_v34  ;;  %v452_v34 = vld [vmem:[#allocation9 + $0x158] sm:$0xff] }
  0x9b   :  { %953 = vmatprep.subr.bf16.mxu0 %v3693_v36  ;;  %v456_v36 = vld [vmem:[#allocation9 + $0x178] sm:$0xff] }
  0x9c   :  { %875 = vmatpush1.bf16.msra.mxu1 %v3714_v14  ;;  %v3735_v38 = vcombine.high %v452_v34, %v456_v36  ;;  %v3734_v39 = vcombine.low %v452_v34, %v456_v36 }
  0x9d   :  { %876 = vmatprep.subr.bf16.mxu1 %v3707_v15 }
  0x9e   :  { %954 = vmatpush1.bf16.msra.mxu0 %v3692_v37  ;;  %v3742_v37 = vcombine.low %v460_v29, %v464_v31 }
  0x9f   :  { %3969 = vmatprep.subr.bf16.mxu0 %v4592_v41 }
  0xa0   :  { %877 = vmatpush1.bf16.msra.mxu1 %v3706_v19 }
  0xa1   :  { %972 = vmatmul.mubr.bf16.vlgmr.msra.gmra.mxu0 %v4663_v60  ;;  %878 = vmatprep.subr.bf16.mxu1 %v3699_v20 }
  0xa2   :  { %981 = vmatprep.mubr.bf16.mxu0 %v4591_v0 }
  0xa4   :  { %879 = vmatpush1.bf16.msra.mxu1 %v3698_v22 }
  0xa5   :  { %880 = vmatprep.subr.bf16.mxu1 %v3691_v23 }
  0xa8   :  { %881 = vmatpush1.bf16.msra.mxu1 %v3690_v27 }
  0xa9   :  { %982 = vmatmul.mubr.bf16.gmra.mxu0 %v4667_v1  ;;  %1012 = vmatprep.subr.bf16.mxu1 %v3751_v28 }
  0xaa   :  { %991 = vmatprep.mubr.bf16.mxu0 %v4591_v0 }
  0xab   :  { %899 = vmatmul.mubr.bf16.vlgmr.msra.gmra.mxu1 %v4663_v60 }
  0xac   :  { %1013 = vmatpush1.bf16.msra.mxu1 %v3750_v32  ;;  %908 = vmatprep.mubr.bf16.mxu1 %v4591_v0 }
  0xad   :  { %1014 = vmatprep.subr.bf16.mxu1 %v3743_v33 }
  0xb0   :  { %1015 = vmatpush1.bf16.msra.mxu1 %v3742_v37 }
  0xb1   :  { %992 = vmatmul.mubr.bf16.gmra.mxu0 %v4671_v17  ;;  %1016 = vmatprep.subr.bf16.mxu1 %v3735_v38 }
  0xb2   :  { %1001 = vmatprep.mubr.bf16.mxu0 %v4591_v0 }
  0xb3   :  { %909 = vmatmul.mubr.bf16.gmra.mxu1 %v4667_v1 }
  0xb4   :  { %1017 = vmatpush1.bf16.msra.mxu1 %v3734_v39  ;;  %918 = vmatprep.mubr.bf16.mxu1 %v4591_v0 }
  0xb5   :  { %1018 = vmatprep.subr.bf16.mxu1 %v3727_v43 }
  0xb8   :  { %1019 = vmatpush1.bf16.msra.mxu1 %v3726_v44 }
  0xb9   :  { %1002 = vmatmul.mubr.bf16.gmra.mxu0 %v4675_v30  ;;  %1020 = vmatprep.subr.bf16.mxu1 %v3719_v47 }
  0xba   :  { %3973 = vmatprep.mubr.msk.bf16.mxu0 %vm4593_vm0, %v4592_v41 }
  0xbb   :  { %919 = vmatmul.mubr.bf16.gmra.mxu1 %v4671_v17 }
  0xbc   :  { %1021 = vmatpush1.bf16.msra.mxu1 %v3718_v48  ;;  %928 = vmatprep.mubr.bf16.mxu1 %v4591_v0 }
  0xbd   :  { %1022 = vmatprep.subr.bf16.mxu1 %v3711_v52 }
  0xc0   :  { %1023 = vmatpush1.bf16.msra.mxu1 %v3710_v54 }
  0xc1   :  { %1024 = vmatprep.subr.bf16.mxu1 %v3703_v55 }
  0xc3   :  { %929 = vmatmul.mubr.bf16.gmra.mxu1 %v4675_v30 }
  0xc4   :  { %1025 = vmatpush1.bf16.msra.mxu1 %v3702_v59  ;;  %1044 = vmatprep.mubr.bf16.mxu1 %v4591_v0 }
  0xc5   :  { %1026 = vmatprep.subr.bf16.mxu1 %v3695_v62 }
  0xc8   :  { %1027 = vmatpush1.bf16.msra.mxu1 %v3694_v4 }
  0xc9   :  { %3977 = vmatprep.subr.bf16.mxu1 %v4592_v41 }
  0xcb   :  { %1045 = vmatmul.mubr.bf16.vlgmr.msra.gmra.mxu1 %v4663_v60 }
  0xcc   :  { %1054 = vmatprep.mubr.bf16.mxu1 %v4591_v0 }
  0xd3   :  { %1055 = vmatmul.mubr.bf16.gmra.mxu1 %v4667_v1 }
  0xd4   :  { %1064 = vmatprep.mubr.bf16.mxu1 %v4591_v0 }
  0xdb   :  { %1065 = vmatmul.mubr.bf16.gmra.mxu1 %v4671_v17 }
  0xdc   :  { %1074 = vmatprep.mubr.bf16.mxu1 %v4591_v0 }
  0xe3   :  { %1075 = vmatmul.mubr.bf16.gmra.mxu1 %v4675_v30 }
  0xe4   :  { %3981 = vmatprep.mubr.msk.bf16.mxu1 %vm4593_vm0, %v4592_v41 }
 0x121   :  { %v337_v58 = vpop.f32.mrf.mxu0 }
 0x122   :  { %v1085_v2 = vmul.f32 0.125, %v337_v58 }
 0x123   :  { %v339_v61 = vpop.f32.mrf.mxu0 }
 0x124   :  { %v1086_v6 = vmul.f32 0.125, %v339_v61 }
 0x125   :  { %v341_v63 = vpop.f32.mrf.mxu0 }
 0x126   :  { %v1089_v3 = vmul.f32 0.125, %v341_v63 }
 0x127   :  { %v343_v5 = vpop.f32.mrf.mxu0 }
 0x128   :  { %v1090_v7 = vmul.f32 0.125, %v343_v5  ;;  %v1101_v8 = vpack.c.bf16 %v1089_v3, %v1085_v2 }
 0x129   :  { %v347_v9 = vpop.f32.mrf.mxu0 }
 0x12a   :  { %1193 = vrot.lane.b32.xlu1 %v1101_v8, %s4589_s0  ;;  %v4702_v10 = vpack.c.bf16 %v1090_v7, %v1086_v6  ;;  %v1093_v24 = vmul.f32 0.125, %v347_v9 }
 0x12b   :  { %v349_v11 = vpop.f32.mrf.mxu0 }
 0x12c   :  { %v1094_v13 = vmul.f32 0.125, %v349_v11 }
 0x12d   :  { %v351_v12 = vpop.f32.mrf.mxu0 }
 0x12e   :  { %v1097_v14 = vmul.f32 0.125, %v351_v12 }
 0x12f   :  { %v353_v15 = vpop.f32.mrf.mxu0 }
 0x130   :  { %v1098_v16 = vmul.f32 0.125, %v353_v15  ;;  %v4707_v18 = vpack.c.bf16 %v1097_v14, %v1093_v24 }
 0x132   :  { %v4709_v19 = vpack.c.bf16 %v1098_v16, %v1094_v13 }
 0x141   :  { %v827_v20 = vpop.f32.mrf.mxu0 }
 0x143   :  { %v829_v60 = vpop.f32.mrf.mxu0 }
 0x145   :  { %v831_v21 = vpop.f32.mrf.mxu0 }
 0x146   :  { %v1109_v30 = vpack.c.bf16 %v831_v21, %v827_v20 }
 0x147   :  { %v833_v35 = vpop.f32.mrf.mxu0 }
 0x148   :  { %v4718_v22 = vpack.c.bf16 %v833_v35, %v829_v60  ;;  %v1146_v28 = vsel %vm1141_vm1, %v1109_v30, 0 }
 0x149   :  { %v837_v23 = vpop.f32.mrf.mxu0 }
 0x14b   :  { %v839_v25 = vpop.f32.mrf.mxu0  ;;  %v390_v5 = vpop.f32.mrf.mxu1 }
 0x14c   :  { %v1087_v9 = vmul.f32 0.125, %v390_v5 }
 0x14d   :  { %v841_v1 = vpop.f32.mrf.mxu0  ;;  %v392_v6 = vpop.f32.mrf.mxu1 }
 0x14e   :  { %v1113_v26 = vpack.c.bf16 %v841_v1, %v837_v23  ;;  %v1088_v24 = vmul.f32 0.125, %v392_v6 }
 0x14f   :  { %v843_v27 = vpop.f32.mrf.mxu0  ;;  %v394_v7 = vpop.f32.mrf.mxu1 }
 0x150   :  { %v1149_v17 = vsel %vm1141_vm1, %v1113_v26, 0  ;;  %v4721_v0 = vpack.c.bf16 %v843_v27, %v839_v25  ;;  %1199 = vrot.lane.b32.xlu0 %v1113_v26, %s4589_s0  ;;  %v1091_v11 = vmul.f32 0.125, %v394_v7 }
 0x151   :  { %3970 = vmatpush3.bf16.xpose.msra.mxu0 %v1149_v17  ;;  %v847_v29 = vpop.f32.mrf.mxu0 }
 0x152   :  { %3971 = vmatprep.subr.bf16.mxu0 %v4592_v41  ;;  %v4759_v13 = vpack.c.bf16 %v1091_v11, %v1087_v9 }
 0x153   :  { %v849_v31 = vpop.f32.mrf.mxu0 }
 0x154   :  { %1197 = vrot.lane.b32.xlu0 %v1109_v30, %s4589_s0 }
 0x155   :  { %v851_v32 = vpop.f32.mrf.mxu0 }
 0x156   :  { %v4731_v33 = vpack.c.bf16 %v851_v32, %v847_v29 }
 0x157   :  { %v853_v34 = vpop.f32.mrf.mxu0 }
 0x158   :  { %v4733_v36 = vpack.c.bf16 %v853_v34, %v849_v31 }
 0x159   :  { %3972 = vmatpush3.bf16.xpose.msra.mxu0 %v1146_v28  ;;  %v857_v37 = vpop.f32.mrf.mxu0 }
 0x15a   :  { %3985 = vmatprep.subr.bf16.mxu0 %v4592_v41 }
 0x15b   :  { %v859_v38 = vpop.f32.mrf.mxu0 }
 0x15d   :  { %v861_v39 = vpop.f32.mrf.mxu0 }
 0x15e   :  { %v4735_v40 = vpack.c.bf16 %v861_v39, %v857_v37 }
 0x15f   :  { %v863_v42 = vpop.f32.mrf.mxu0 }
 0x160   :  { %3974 = vmatmul.mubr.msk.bf16.vlgmr.msra.gmra.mxu0 %vm1141_vm1, %v1101_v8  ;;  %v4737_v43 = vpack.c.bf16 %v863_v42, %v859_v38  ;;  %v396_v8 = vpop.f32.mrf.mxu1 }
 0x161   :  { %3989 = vmatprep.mubr.msk.bf16.mxu0 %vm4593_vm0, %v4592_v41  ;;  %v973_v44 = vpop.f32.mrf.mxu0  ;;  %v1092_v12 = vmul.f32 0.125, %v396_v8 }
 0x162   :  { %v400_v15 = vpop.f32.mrf.mxu1 }
 0x163   :  { %v975_v45 = vpop.f32.mrf.mxu0  ;;  %v4761_v14 = vpack.c.bf16 %v1092_v12, %v1088_v24  ;;  %v1095_v26 = vmul.f32 0.125, %v400_v15 }
 0x164   :  { %v402_v16 = vpop.f32.mrf.mxu1 }
 0x165   :  { %v977_v46 = vpop.f32.mrf.mxu0  ;;  %v1096_v30 = vmul.f32 0.125, %v402_v16 }
 0x166   :  { %v4743_v54 = vpack.c.bf16 %v977_v46, %v973_v44  ;;  %v404_v21 = vpop.f32.mrf.mxu1 }
 0x167   :  { %v979_v47 = vpop.f32.mrf.mxu0  ;;  %v1099_v27 = vmul.f32 0.125, %v404_v21 }
 0x168   :  { %v4739_v48 = vpack.c.bf16 %v979_v47, %v975_v45  ;;  %v406_v23 = vpop.f32.mrf.mxu1 }
 0x169   :  { %v983_v49 = vpop.f32.mrf.mxu0  ;;  %v1100_v28 = vmul.f32 0.125, %v406_v23  ;;  %v4770_v37 = vpack.c.bf16 %v1099_v27, %v1095_v26 }
 0x16b   :  { %v985_v50 = vpop.f32.mrf.mxu0  ;;  %v900_v1 = vpop.f32.mrf.mxu1  ;;  %v4776_v39 = vpack.c.bf16 %v1100_v28, %v1096_v30 }
 0x16d   :  { %v987_v51 = vpop.f32.mrf.mxu0  ;;  %v902_v17 = vpop.f32.mrf.mxu1 }
 0x16e   :  { %v4741_v52 = vpack.c.bf16 %v987_v51, %v983_v49 }
 0x16f   :  { %v989_v53 = vpop.f32.mrf.mxu0  ;;  %v904_v29 = vpop.f32.mrf.mxu1 }
 0x170   :  { %v4745_v55 = vpack.c.bf16 %v989_v53, %v985_v50  ;;  %3986 = vmatpush3.bf16.msra.mxu0 %v4741_v52  ;;  %v4767_v32 = vpack.c.bf16 %v904_v29, %v900_v1 }
 0x171   :  { %v993_v56 = vpop.f32.mrf.mxu0  ;;  %3987 = vmatprep.subr.bf16.mxu0 %v4592_v41  ;;  %v906_v34 = vpop.f32.mrf.mxu1 }
 0x172   :  { %v4772_v38 = vpack.c.bf16 %v906_v34, %v902_v17 }
 0x173   :  { %v995_v57 = vpop.f32.mrf.mxu0  ;;  %v910_v42 = vpop.f32.mrf.mxu1 }
 0x174   :  { %3988 = vmatpush3.bf16.msra.mxu0 %v4743_v54 }
 0x175   :  { %v997_v58 = vpop.f32.mrf.mxu0  ;;  %4001 = vmatprep.subr.bf16.mxu0 %v4592_v41  ;;  %v912_v44 = vpop.f32.mrf.mxu1 }
 0x176   :  { %v4751_v59 = vpack.c.bf16 %v997_v58, %v993_v56 }
 0x177   :  { %v999_v61 = vpop.f32.mrf.mxu0  ;;  %v914_v45 = vpop.f32.mrf.mxu1 }
 0x178   :  { %v4753_v62 = vpack.c.bf16 %v999_v61, %v995_v57  ;;  %v4778_v46 = vpack.c.bf16 %v914_v45, %v910_v42 }
 0x179   :  { %v1003_v63 = vpop.f32.mrf.mxu0  ;;  %v916_v47 = vpop.f32.mrf.mxu1 }
 0x17a   :  { %v4780_v49 = vpack.c.bf16 %v916_v47, %v912_v44 }
 0x17b   :  { %v4755_v2 = vpop.f32.mrf.mxu0  ;;  %v920_v50 = vpop.f32.mrf.mxu1 }
 0x17d   :  { %v1007_v3 = vpop.f32.mrf.mxu0  ;;  %v922_v51 = vpop.f32.mrf.mxu1 }
 0x17e   :  { %v4757_v4 = vpack.c.bf16 %v1007_v3, %v1003_v63 }
 0x17f   :  { %v924_v53 = vpop.f32.mrf.mxu1  ;;  %v4806_v42 = vpop.f32.mrf.mxu0 }
 0x180   :  { %v4782_v56 = vpack.c.bf16 %v924_v53, %v920_v50 }
 0x181   :  { %v926_v57 = vpop.f32.mrf.mxu1 }
 0x182   :  { %v4784_v58 = vpack.c.bf16 %v926_v57, %v922_v51 }
 0x183   :  { %v930_v61 = vpop.f32.mrf.mxu1 }
 0x185   :  { %v932_v63 = vpop.f32.mrf.mxu1 }
 0x187   :  { %v934_v3 = vpop.f32.mrf.mxu1 }
 0x188   :  { %v4786_v5 = vpack.c.bf16 %v934_v3, %v930_v61 }
 0x189   :  { %v936_v6 = vpop.f32.mrf.mxu1 }
 0x18a   :  { %v4788_v7 = vpack.c.bf16 %v936_v6, %v932_v63 }
 0x18b   :  { %v1046_v8 = vpop.f32.mrf.mxu1 }
 0x18d   :  { %v1048_v9 = vpop.f32.mrf.mxu1 }
 0x18f   :  { %v1050_v11 = vpop.f32.mrf.mxu1 }
 0x190   :  { %v4790_v24 = vpack.c.bf16 %v1050_v11, %v1046_v8 }
 0x191   :  { %v1052_v12 = vpop.f32.mrf.mxu1 }
 0x192   :  { %v4792_v15 = vpack.c.bf16 %v1052_v12, %v1048_v9 }
 0x193   :  { %v1056_v16 = vpop.f32.mrf.mxu1 }
 0x19c   :  { %v1194_v31 = vpop.permute.xlu1 %1193 }
 0x1c2   :  { %v1200_v20 = vpop.permute.xlu0 %1199 }
 0x1c3   :  { %v1208_v60 = vsel %vm1141_vm1, %v1200_v20, 0  ;;  %v1058_v20 = vpop.f32.mrf.mxu1 }
 0x1c4   :  { %3978 = vmatpush3.bf16.xpose.msra.mxu1 %v1208_v60 }
 0x1c5   :  { %3979 = vmatprep.subr.bf16.mxu1 %v4592_v41  ;;  %v1060_v60 = vpop.f32.mrf.mxu1 }
 0x1c6   :  { %v1198_v35 = vpop.permute.xlu0 %1197  ;;  %v4794_v21 = vpack.c.bf16 %v1060_v60, %v1056_v16 }
 0x1c7   :  { %v1205_v25 = vsel %vm1141_vm1, %v1198_v35, 0  ;;  %v1062_v35 = vpop.f32.mrf.mxu1 }
 0x1c8   :  { %v4796_v23 = vpack.c.bf16 %v1062_v35, %v1058_v20 }
 0x1cc   :  { %3980 = vmatpush3.bf16.xpose.msra.mxu1 %v1205_v25  ;;  %v1066_v25 = vpop.f32.mrf.mxu1 }
 0x1cd   :  { %3993 = vmatprep.subr.bf16.mxu1 %v4592_v41 }
 0x1ce   :  { %v1068_v1 = vpop.f32.mrf.mxu1 }
 0x1d0   :  { %v1070_v26 = vpop.f32.mrf.mxu1 }
 0x1d1   :  { %v4798_v27 = vpack.c.bf16 %v1070_v26, %v1066_v25 }
 0x1d2   :  { %v1072_v17 = vpop.f32.mrf.mxu1 }
 0x1d3   :  { %3982 = vmatmul.mubr.msk.bf16.vlgmr.msra.gmra.mxu1 %vm1141_vm1, %v1194_v31  ;;  %v4800_v30 = vpack.c.bf16 %v1072_v17, %v1068_v1 }
 0x1d4   :  { %3997 = vmatprep.mubr.msk.bf16.mxu1 %vm4593_vm0, %v4592_v41  ;;  %v1076_v28 = vpop.f32.mrf.mxu1 }
 0x1d6   :  { %v4802_v29 = vpop.f32.mrf.mxu1 }
 0x1d8   :  { %v1080_v31 = vpop.f32.mrf.mxu1 }
 0x1d9   :  { %v4804_v34 = vpack.c.bf16 %v1080_v31, %v1076_v28 }
 0x1da   :  { %v4808_v51 = vpop.f32.mrf.mxu1 }
 0x220   :  { %v1185_v44 = vpop.f32.mrf.mxu0 }
 0x221   :  { %v1252_v9 = vsel %vm1251_vm2, %v1185_v44, -inf }
 0x222   :  { %v3975_v45 = vpop.f32.mrf.mxu0 }
 0x224   :  { %v1188_v47 = vpop.f32.mrf.mxu0 }
 0x225   :  { %v1255_v6 = vsel %vm1251_vm2, %v1188_v47, -inf }
 0x226   :  { %v3976_v50 = vpop.f32.mrf.mxu0 }
 0x293   :  { %v1244_v53 = vpop.f32.mrf.mxu1 }
 0x294   :  { %v1258_v57 = vsel %vm1251_vm2, %v1244_v53, -inf }
 0x295   :  { %1259 = vmax.xlane.f32.xlu1 %v1258_v57  ;;  %v3983_v61 = vpop.f32.mrf.mxu1 }
 0x297   :  { %v1247_v63 = vpop.f32.mrf.mxu1 }
 0x298   :  { %v1261_v3 = vsel %vm1251_vm2, %v1247_v63, -inf }
 0x299   :  { %1262 = vmax.xlane.f32.xlu0 %v1261_v3  ;;  %v3984_v8 = vpop.f32.mrf.mxu1  ;;  %1256 = vmax.xlane.f32.xlu1 %v1255_v6 }
 0x29d   :  { %1253 = vmax.xlane.f32.xlu0 %v1252_v9 }
 0x2aa   :  { %1346 = vrot.lane.b32.xlu1 %v4743_v54, %s4589_s0 }
 0x31e   :  { %v1260_v11 = vpop.xlane.xlu1 %1259 }
 0x31f   :  { %v1266_v12 = vsub.f32 %v1244_v53, %v1260_v11 }
 0x321   :  { %v1272_v16 = vmul.f32 1.442695, %v1266_v12 }
 0x322   :  { %v1263_v20 = vpop.xlane.xlu0 %1262  ;;  %v1257_v31 = vpop.xlane.xlu1 %1256 }
 0x323   :  { %4322 = vpow2.f32 %v1272_v16  ;;  %v1267_v60 = vsub.f32 %v1247_v63, %v1263_v20  ;;  %v1265_v45 = vsub.f32 %v1188_v47, %v1257_v31 }
 0x325   :  { %v1274_v35 = vmul.f32 1.442695, %v1267_v60  ;;  %v1270_v53 = vmul.f32 1.442695, %v1265_v45 }
 0x326   :  { %v1254_v54 = vpop.xlane.xlu0 %1253  ;;  %v1347_v3 = vpop.permute.xlu1 %1346 }
 0x327   :  { %4324 = vpow2.f32 %v1274_v35  ;;  %v1264_v28 = vsub.f32 %v1185_v44, %v1254_v54 }
 0x329   :  { %v1268_v50 = vmul.f32 1.442695, %v1264_v28 }
 0x32b   :  { %4326 = vpow2.f32 %v1268_v50 }
 0x32c   :  { %4328 = vpow2.f32 %v1270_v53  ;;  %v1414_v53 = vsel %vm1141_vm1, %v4721_v0, 0 }
 0x330   :  { %v4323_v25 = vpop.eup %4322 }
 0x331   :  { %v1282_v1 = vsel %vm1251_vm2, %v4323_v25, 0.0 }
 0x332   :  { %1283 = vadd.xlane.f32.xlu0 %v1282_v1 }
 0x334   :  { %v4325_v26 = vpop.eup %4324 }
 0x335   :  { %v1285_v17 = vsel %vm1251_vm2, %v4325_v26, 0.0 }
 0x336   :  { %1286 = vadd.xlane.f32.xlu1 %v1285_v17 }
 0x338   :  { %v4327_v57 = vpop.eup %4326 }
 0x339   :  { %v1276_v61 = vsel %vm1251_vm2, %v4327_v57, 0.0  ;;  %v4329_v63 = vpop.eup %4328 }
 0x347   :  { %1464 = vrot.lane.b32.xlu1 %v4721_v0, %s4589_s0 }
 0x348   :  { %1348 = vrot.lane.b32.xlu0 %v4741_v52, %s4589_s0  ;;  %v1279_v52 = vsel %vm1251_vm2, %v4329_v63, 0.0 }
 0x34b   :  { %1458 = vrot.lane.b32.xlu1 %v4702_v10, %s4589_s0 }
 0x34c   :  { %1462 = vrot.lane.b32.xlu0 %v4718_v22, %s4589_s0 }
 0x36b   :  { %1277 = vadd.xlane.f32.xlu0 %v1276_v61  ;;  %v1411_v61 = vsel %vm1141_vm1, %v4718_v22, 0 }
 0x36f   :  { %1280 = vadd.xlane.f32.xlu1 %v1279_v52 }
 0x3bb   :  { %v1284_v6 = vpop.xlane.xlu0 %1283 }
 0x3bc   :  { %4330 = vrcp.f32 %v1284_v6 }
 0x3bf   :  { %v1349_v8 = vpop.permute.xlu0 %1348  ;;  %v1287_v9 = vpop.xlane.xlu1 %1286 }
 0x3c0   :  { %4332 = vrcp.f32 %v1287_v9  ;;  %3994 = vmatpush3.bf16.msra.mxu1 %v1349_v8 }
 0x3c1   :  { %3995 = vmatprep.subr.bf16.mxu1 %v4592_v41 }
 0x3c3   :  { %v1465_v16 = vpop.permute.xlu1 %1464  ;;  %v1463_v35 = vpop.permute.xlu0 %1462 }
 0x3c4   :  { %3996 = vmatpush3.bf16.msra.mxu1 %v1347_v3  ;;  %v1473_v60 = vsel %vm1141_vm1, %v1465_v16, 0  ;;  %v1470_v1 = vsel %vm1141_vm1, %v1463_v35, 0 }
 0x3c5   :  { %4009 = vmatprep.subr.bf16.mxu1 %v4592_v41 }
 0x3c9   :  { %v4331_v44 = vpop.eup %4330 }
 0x3ca   :  { %v1294_v11 = vmul.f32 %v4331_v44, %v4323_v25  ;;  %v1459_v25 = vpop.permute.xlu1 %1458 }
 0x3cd   :  { %v4333_v47 = vpop.eup %4332 }
 0x3ce   :  { %v1295_v12 = vmul.f32 %v4333_v47, %v4325_v26 }
 0x3d0   :  { %v1297_v20 = vpack.c.bf16 %v1295_v12, %v1294_v11 }
 0x3d2   :  { %3998 = vmatmul.mubr.msk.bf16.vlgmr.msra.gmra.mxu1 %vm1251_vm2, %v1297_v20 }
 0x3d3   :  { %4010 = vmatpush3.bf16.xpose.msra.mxu1 %v1473_v60  ;;  %4013 = vmatprep.mubr.msk.bf16.mxu1 %vm4593_vm0, %v4592_v41 }
 0x3d4   :  { %4011 = vmatprep.subr.bf16.mxu1 %v4592_v41 }
 0x3db   :  { %4012 = vmatpush3.bf16.xpose.msra.mxu1 %v1470_v1 }
 0x3dc   :  { %4025 = vmatprep.subr.bf16.mxu1 %v4592_v41 }
 0x3e2   :  { %4014 = vmatmul.mubr.msk.bf16.vlgmr.msra.gmra.mxu1 %vm1141_vm1, %v1459_v25 }
 0x3e3   :  { %4029 = vmatprep.mubr.msk.bf16.mxu1 %vm4593_vm0, %v4592_v41 }
 0x3f4   :  { %v1278_v26 = vpop.xlane.xlu0 %1277 }
 0x3f5   :  { %4334 = vrcp.f32 %v1278_v26 }
 0x3f8   :  { %v1281_v17 = vpop.xlane.xlu1 %1280 }
 0x3f9   :  { %4336 = vrcp.f32 %v1281_v17 }
 0x402   :  { %v4335_v54 = vpop.eup %4334 }
 0x403   :  { %v1292_v31 = vmul.f32 %v4335_v54, %v4327_v57 }
 0x406   :  { %v4337_v28 = vpop.eup %4336 }
 0x407   :  { %v1293_v45 = vmul.f32 %v4337_v28, %v4329_v63 }
 0x409   :  { %v1296_v50 = vpack.c.bf16 %v1293_v45, %v1292_v31 }
 0x40b   :  { %3990 = vmatmul.mubr.msk.bf16.vlgmr.msra.gmra.mxu0 %vm1251_vm2, %v1296_v50 }
 0x40c   :  { %4002 = vmatpush3.bf16.xpose.msra.mxu0 %v1414_v53  ;;  %4005 = vmatprep.mubr.msk.bf16.mxu0 %vm4593_vm0, %v4592_v41 }
 0x40d   :  { %4003 = vmatprep.subr.bf16.mxu0 %v4592_v41 }
 0x414   :  { %4004 = vmatpush3.bf16.xpose.msra.mxu0 %v1411_v61 }
 0x415   :  { %4017 = vmatprep.subr.bf16.mxu0 %v4592_v41 }
 0x41b   :  { %4006 = vmatmul.mubr.msk.bf16.vlgmr.msra.gmra.mxu0 %vm1141_vm1, %v4702_v10 }
 0x41c   :  { %4018 = vmatpush3.bf16.msra.mxu0 %v4745_v55  ;;  %4021 = vmatprep.mubr.msk.bf16.mxu0 %vm4593_vm0, %v4592_v41 }
 0x41d   :  { %4019 = vmatprep.subr.bf16.mxu0 %v4592_v41 }
 0x420   :  { %4020 = vmatpush3.bf16.msra.mxu0 %v4739_v48 }
 0x421   :  { %4033 = vmatprep.subr.bf16.mxu0 %v4592_v41 }
 0x492   :  { %v4857_v0 = vpop.f32.mrf.mxu1 }
 0x494   :  { %v3999_v22 = vpop.f32.mrf.mxu1 }
 0x496   :  { %v4859_v57 = vpop.f32.mrf.mxu1 }
 0x498   :  { %v4000_v63 = vpop.f32.mrf.mxu1 }
 0x4a2   :  { %v1509_v52 = vpop.f32.mrf.mxu1 }
 0x4a3   :  { %v1522_v10 = vsel %vm1251_vm2, %v1509_v52, -inf }
 0x4a4   :  { %1523 = vmax.xlane.f32.xlu0 %v1522_v10  ;;  %v4015_v3 = vpop.f32.mrf.mxu1 }
 0x4a6   :  { %v1512_v6 = vpop.f32.mrf.mxu1 }
 0x4a7   :  { %v1525_v8 = vsel %vm1251_vm2, %v1512_v6, -inf }
 0x4a8   :  { %1526 = vmax.xlane.f32.xlu0 %v1525_v8  ;;  %v4016_v9 = vpop.f32.mrf.mxu1 }
 0x4cb   :  { %v1335_v44 = vpop.f32.mrf.mxu0 }
 0x4cc   :  { %1342 = vst.msk [vmem:[#allocation2] sm:$0xff] %vm1141_vm1, %v1335_v44 }
 0x4cd   :  { %v3991_v47 = vpop.f32.mrf.mxu0 }
 0x4cf   :  { %v1338_v11 = vpop.f32.mrf.mxu0 }
 0x4d0   :  { %1343 = vst.msk [vmem:[#allocation2 + $0x20] sm:$0xff] %vm1141_vm1, %v1338_v11 }
 0x4d1   :  { %v3992_v12 = vpop.f32.mrf.mxu0 }
 0x4db   :  { %v1450_v16 = vpop.f32.mrf.mxu0 }
 0x4dc   :  { %v1516_v20 = vsel %vm1251_vm2, %v1450_v16, -inf }
 0x4dd   :  { %1517 = vmax.xlane.f32.xlu1 %v1516_v20  ;;  %v4007_v60 = vpop.f32.mrf.mxu0 }
 0x4df   :  { %v1453_v35 = vpop.f32.mrf.mxu0 }
 0x4e0   :  { %v1519_v1 = vsel %vm1251_vm2, %v1453_v35, -inf }
 0x4e1   :  { %1520 = vmax.xlane.f32.xlu0 %v1519_v1  ;;  %v4008_v25 = vpop.f32.mrf.mxu0 }
 0x4ee   :  { %1612 = vrot.lane.b32.xlu1 %v4745_v55, %s4589_s0 }
 0x52d   :  { %v1524_v26 = vpop.xlane.xlu0 %1523 }
 0x52e   :  { %v1530_v17 = vsub.f32 %v1509_v52, %v1524_v26 }
 0x530   :  { %v1536_v54 = vmul.f32 1.442695, %v1530_v17 }
 0x531   :  { %v1527_v28 = vpop.xlane.xlu0 %1526 }
 0x532   :  { %4338 = vpow2.f32 %v1536_v54  ;;  %v1531_v31 = vsub.f32 %v1512_v6, %v1527_v28 }
 0x534   :  { %v1538_v45 = vmul.f32 1.442695, %v1531_v31 }
 0x536   :  { %4340 = vpow2.f32 %v1538_v45 }
 0x53f   :  { %v4339_v50 = vpop.eup %4338 }
 0x540   :  { %v1546_v53 = vsel %vm1251_vm2, %v4339_v50, 0.0 }
 0x541   :  { %1547 = vadd.xlane.f32.xlu1 %v1546_v53 }
 0x543   :  { %v4341_v61 = vpop.eup %4340 }
 0x544   :  { %v1549_v22 = vsel %vm1251_vm2, %v4341_v61, 0.0 }
 0x545   :  { %1550 = vadd.xlane.f32.xlu0 %v1549_v22 }
 0x552   :  { %1727 = vrot.lane.b32.xlu1 %v4778_v46, %s4589_s0 }
 0x556   :  { %1725 = vrot.lane.b32.xlu1 %v4767_v32, %s4589_s0 }
 0x55b   :  { %1610 = vrot.lane.b32.xlu0 %v4739_v48, %s4589_s0 }
 0x55f   :  { %1721 = vrot.lane.b32.xlu0 %v4759_v13, %s4589_s0 }
 0x566   :  { %v1518_v55 = vpop.xlane.xlu1 %1517 }
 0x567   :  { %v1528_v63 = vsub.f32 %v1450_v16, %v1518_v55 }
 0x569   :  { %v1532_v52 = vmul.f32 1.442695, %v1528_v63 }
 0x56a   :  { %v1613_v10 = vpop.permute.xlu1 %1612  ;;  %v1521_v3 = vpop.xlane.xlu0 %1520 }
 0x56b   :  { %4342 = vpow2.f32 %v1532_v52  ;;  %v1529_v6 = vsub.f32 %v1453_v35, %v1521_v3  ;;  %4026 = vmatpush3.bf16.msra.mxu1 %v1613_v10  ;;  %v1677_v52 = vsel %vm1141_vm1, %v4778_v46, 0  ;;  %v1674_v10 = vsel %vm1141_vm1, %v4767_v32, 0 }
 0x56c   :  { %4027 = vmatprep.subr.bf16.mxu1 %v4592_v41 }
 0x56d   :  { %v1534_v8 = vmul.f32 1.442695, %v1529_v6 }
 0x56f   :  { %4344 = vpow2.f32 %v1534_v8 }
 0x578   :  { %v4343_v9 = vpop.eup %4342 }
 0x579   :  { %v1540_v44 = vsel %vm1251_vm2, %v4343_v9, 0.0 }
 0x57a   :  { %1541 = vadd.xlane.f32.xlu1 %v1540_v44 }
 0x57c   :  { %v4345_v48 = vpop.eup %4344 }
 0x57d   :  { %v1543_v47 = vsel %vm1251_vm2, %v4345_v48, 0.0 }
 0x57e   :  { %1544 = vadd.xlane.f32.xlu0 %v1543_v47 }
 0x5ca   :  { %v1548_v11 = vpop.xlane.xlu1 %1547 }
 0x5cb   :  { %4346 = vrcp.f32 %v1548_v11 }
 0x5ce   :  { %v1551_v12 = vpop.xlane.xlu0 %1550  ;;  %v1728_v25 = vpop.permute.xlu1 %1727 }
 0x5cf   :  { %4348 = vrcp.f32 %v1551_v12  ;;  %v1736_v17 = vsel %vm1141_vm1, %v1728_v25, 0 }
 0x5d2   :  { %v1611_v16 = vpop.permute.xlu0 %1610  ;;  %v1726_v54 = vpop.permute.xlu1 %1725 }
 0x5d3   :  { %4028 = vmatpush3.bf16.msra.mxu1 %v1611_v16  ;;  %v1733_v28 = vsel %vm1141_vm1, %v1726_v54, 0 }
 0x5d4   :  { %4041 = vmatprep.subr.bf16.mxu1 %v4592_v41 }
 0x5d6   :  { %v1722_v31 = vpop.permute.xlu0 %1721 }
 0x5d8   :  { %v4347_v20 = vpop.eup %4346 }
 0x5d9   :  { %v1558_v35 = vmul.f32 %v4347_v20, %v4339_v50 }
 0x5dc   :  { %v4349_v60 = vpop.eup %4348 }
 0x5dd   :  { %v1559_v1 = vmul.f32 %v4349_v60, %v4341_v61 }
 0x5df   :  { %v1561_v26 = vpack.c.bf16 %v1559_v1, %v1558_v35 }
 0x5e1   :  { %4030 = vmatmul.mubr.msk.bf16.vlgmr.msra.gmra.mxu1 %vm1251_vm2, %v1561_v26 }
 0x5e2   :  { %4042 = vmatpush3.bf16.xpose.msra.mxu1 %v1736_v17  ;;  %4045 = vmatprep.mubr.msk.bf16.mxu1 %vm4593_vm0, %v4592_v41 }
 0x5e3   :  { %4043 = vmatprep.subr.bf16.mxu1 %v4592_v41 }
 0x5ea   :  { %4044 = vmatpush3.bf16.xpose.msra.mxu1 %v1733_v28 }
 0x5eb   :  { %4057 = vmatprep.subr.bf16.mxu1 %v4592_v41 }
 0x5f1   :  { %4046 = vmatmul.mubr.msk.bf16.vlgmr.msra.gmra.mxu1 %vm1141_vm1, %v1722_v31 }
 0x5f2   :  { %4061 = vmatprep.mubr.msk.bf16.mxu1 %vm4593_vm0, %v4592_v41 }
 0x603   :  { %v1542_v45 = vpop.xlane.xlu1 %1541 }
 0x604   :  { %4350 = vrcp.f32 %v1542_v45 }
 0x607   :  { %v1545_v50 = vpop.xlane.xlu0 %1544 }
 0x608   :  { %4352 = vrcp.f32 %v1545_v50 }
 0x611   :  { %v4351_v53 = vpop.eup %4350 }
 0x612   :  { %v1556_v22 = vmul.f32 %v4351_v53, %v4343_v9 }
 0x615   :  { %v4353_v61 = vpop.eup %4352 }
 0x616   :  { %v1557_v55 = vmul.f32 %v4353_v61, %v4345_v48 }
 0x618   :  { %v1560_v63 = vpack.c.bf16 %v1557_v55, %v1556_v22 }
 0x61a   :  { %4022 = vmatmul.mubr.msk.bf16.vlgmr.msra.gmra.mxu0 %vm1251_vm2, %v1560_v63 }
 0x61b   :  { %4034 = vmatpush3.bf16.xpose.msra.mxu0 %v1677_v52  ;;  %4037 = vmatprep.mubr.msk.bf16.mxu0 %vm4593_vm0, %v4592_v41 }
 0x61c   :  { %4035 = vmatprep.subr.bf16.mxu0 %v4592_v41 }
 0x623   :  { %4036 = vmatpush3.bf16.xpose.msra.mxu0 %v1674_v10 }
 0x624   :  { %4049 = vmatprep.subr.bf16.mxu0 %v4592_v41 }
 0x62a   :  { %4038 = vmatmul.mubr.msk.bf16.vlgmr.msra.gmra.mxu0 %vm1141_vm1, %v4759_v13 }
 0x62b   :  { %4050 = vmatpush3.bf16.msra.mxu0 %v4794_v21  ;;  %4053 = vmatprep.mubr.msk.bf16.mxu0 %vm4593_vm0, %v4592_v41 }
 0x62c   :  { %4051 = vmatprep.subr.bf16.mxu0 %v4592_v41 }
 0x62f   :  { %4052 = vmatpush3.bf16.msra.mxu0 %v4790_v24 }
 0x630   :  { %4065 = vmatprep.subr.bf16.mxu0 %v4592_v41 }
 0x6a1   :  { %v4910_v46 = vpop.f32.mrf.mxu1 }
 0x6a3   :  { %v4031_v32 = vpop.f32.mrf.mxu1 }
 0x6a5   :  { %v4912_v3 = vpop.f32.mrf.mxu1 }
 0x6a7   :  { %v4032_v6 = vpop.f32.mrf.mxu1 }
 0x6b1   :  { %v1772_v8 = vpop.f32.mrf.mxu1 }
 0x6b2   :  { %v1785_v13 = vsel %vm1251_vm2, %v1772_v8, -inf }
 0x6b3   :  { %1786 = vmax.xlane.f32.xlu0 %v1785_v13  ;;  %v4047_v9 = vpop.f32.mrf.mxu1 }
 0x6b5   :  { %v1775_v44 = vpop.f32.mrf.mxu1 }
 0x6b6   :  { %v1788_v48 = vsel %vm1251_vm2, %v1775_v44, -inf }
 0x6b7   :  { %1789 = vmax.xlane.f32.xlu1 %v1788_v48  ;;  %v4048_v47 = vpop.f32.mrf.mxu1 }
 0x6da   :  { %v1599_v11 = vpop.f32.mrf.mxu0 }
 0x6db   :  { %1606 = vst.msk [vmem:[#allocation2 + $0x8] sm:$0xff] %vm1141_vm1, %v1599_v11 }
 0x6dc   :  { %v4023_v12 = vpop.f32.mrf.mxu0 }
 0x6de   :  { %v1602_v16 = vpop.f32.mrf.mxu0 }
 0x6df   :  { %1607 = vst.msk [vmem:[#allocation2 + $0x28] sm:$0xff] %vm1141_vm1, %v1602_v16 }
 0x6e0   :  { %v4024_v20 = vpop.f32.mrf.mxu0 }
 0x6ea   :  { %v1713_v60 = vpop.f32.mrf.mxu0 }
 0x6eb   :  { %v1779_v35 = vsel %vm1251_vm2, %v1713_v60, -inf }
 0x6ec   :  { %1780 = vmax.xlane.f32.xlu0 %v1779_v35  ;;  %v4039_v1 = vpop.f32.mrf.mxu0 }
 0x6ee   :  { %v1716_v25 = vpop.f32.mrf.mxu0 }
 0x6ef   :  { %v1782_v26 = vsel %vm1251_vm2, %v1716_v25, -inf }
 0x6f0   :  { %1783 = vmax.xlane.f32.xlu1 %v1782_v26  ;;  %v4040_v17 = vpop.f32.mrf.mxu0 }
 0x701   :  { %1873 = vrot.lane.b32.xlu1 %v4790_v24, %s4589_s0 }
 0x73c   :  { %v1787_v54 = vpop.xlane.xlu0 %1786 }
 0x73d   :  { %v1793_v28 = vsub.f32 %v1772_v8, %v1787_v54 }
 0x73f   :  { %v1799_v31 = vmul.f32 1.442695, %v1793_v28 }
 0x740   :  { %v1790_v45 = vpop.xlane.xlu1 %1789 }
 0x741   :  { %4354 = vpow2.f32 %v1799_v31  ;;  %v1794_v50 = vsub.f32 %v1775_v44, %v1790_v45 }
 0x743   :  { %v1801_v53 = vmul.f32 1.442695, %v1794_v50 }
 0x745   :  { %4356 = vpow2.f32 %v1801_v53 }
 0x74e   :  { %v4355_v61 = vpop.eup %4354 }
 0x74f   :  { %v1809_v22 = vsel %vm1251_vm2, %v4355_v61, 0.0 }
 0x750   :  { %1810 = vadd.xlane.f32.xlu0 %v1809_v22 }
 0x752   :  { %v4357_v55 = vpop.eup %4356 }
 0x753   :  { %v1812_v63 = vsel %vm1251_vm2, %v4357_v55, 0.0 }
 0x754   :  { %1813 = vadd.xlane.f32.xlu1 %v1812_v63  ;;  %v1940_v63 = vsel %vm1141_vm1, %v4780_v49, 0 }
 0x765   :  { %1990 = vrot.lane.b32.xlu1 %v4780_v49, %s4589_s0 }
 0x766   :  { %1875 = vrot.lane.b32.xlu0 %v4794_v21, %s4589_s0 }
 0x769   :  { %1984 = vrot.lane.b32.xlu1 %v4761_v14, %s4589_s0 }
 0x76a   :  { %1988 = vrot.lane.b32.xlu0 %v4772_v38, %s4589_s0 }
 0x775   :  { %v1781_v24 = vpop.xlane.xlu0 %1780 }
 0x776   :  { %v1791_v52 = vsub.f32 %v1713_v60, %v1781_v24  ;;  %v1937_v24 = vsel %vm1141_vm1, %v4772_v38, 0 }
 0x778   :  { %v1795_v10 = vmul.f32 1.442695, %v1791_v52 }
 0x779   :  { %v1784_v32 = vpop.xlane.xlu1 %1783 }
 0x77a   :  { %4358 = vpow2.f32 %v1795_v10  ;;  %v1792_v6 = vsub.f32 %v1716_v25, %v1784_v32 }
 0x77c   :  { %v1797_v8 = vmul.f32 1.442695, %v1792_v6 }
 0x77d   :  { %v1874_v48 = vpop.permute.xlu1 %1873 }
 0x77e   :  { %4360 = vpow2.f32 %v1797_v8 }
 0x787   :  { %v4359_v13 = vpop.eup %4358 }
 0x788   :  { %v1803_v9 = vsel %vm1251_vm2, %v4359_v13, 0.0 }
 0x789   :  { %1804 = vadd.xlane.f32.xlu0 %v1803_v9 }
 0x78b   :  { %v4361_v44 = vpop.eup %4360 }
 0x78c   :  { %v1806_v21 = vsel %vm1251_vm2, %v4361_v44, 0.0 }
 0x78d   :  { %1807 = vadd.xlane.f32.xlu1 %v1806_v21 }
 0x7d9   :  { %v1811_v47 = vpop.xlane.xlu0 %1810 }
 0x7da   :  { %4362 = vrcp.f32 %v1811_v47 }
 0x7dd   :  { %v1876_v11 = vpop.permute.xlu0 %1875  ;;  %v1814_v12 = vpop.xlane.xlu1 %1813 }
 0x7de   :  { %4364 = vrcp.f32 %v1814_v12  ;;  %4058 = vmatpush3.bf16.msra.mxu1 %v1876_v11 }
 0x7df   :  { %4059 = vmatprep.subr.bf16.mxu1 %v4592_v41 }
 0x7e1   :  { %v1991_v1 = vpop.permute.xlu1 %1990  ;;  %v1989_v17 = vpop.permute.xlu0 %1988 }
 0x7e2   :  { %4060 = vmatpush3.bf16.msra.mxu1 %v1874_v48  ;;  %v1999_v26 = vsel %vm1141_vm1, %v1991_v1, 0  ;;  %v1996_v54 = vsel %vm1141_vm1, %v1989_v17, 0 }
 0x7e3   :  { %4073 = vmatprep.subr.bf16.mxu1 %v4592_v41 }
 0x7e5   :  { %v1985_v28 = vpop.permute.xlu1 %1984 }
 0x7e7   :  { %v4363_v16 = vpop.eup %4362 }
 0x7e8   :  { %v1821_v60 = vmul.f32 %v4363_v16, %v4355_v61 }
 0x7eb   :  { %v4365_v20 = vpop.eup %4364 }
 0x7ec   :  { %v1822_v35 = vmul.f32 %v4365_v20, %v4357_v55 }
 0x7ee   :  { %v1824_v25 = vpack.c.bf16 %v1822_v35, %v1821_v60 }
 0x7f0   :  { %4062 = vmatmul.mubr.msk.bf16.vlgmr.msra.gmra.mxu1 %vm1251_vm2, %v1824_v25 }
 0x7f1   :  { %4074 = vmatpush3.bf16.xpose.msra.mxu1 %v1999_v26  ;;  %4077 = vmatprep.mubr.msk.bf16.mxu1 %vm4593_vm0, %v4592_v41 }
 0x7f2   :  { %4075 = vmatprep.subr.bf16.mxu1 %v4592_v41 }
 0x7f9   :  { %4076 = vmatpush3.bf16.xpose.msra.mxu1 %v1996_v54 }
 0x7fa   :  { %4089 = vmatprep.subr.bf16.mxu1 %v4592_v41 }
 0x800   :  { %4078 = vmatmul.mubr.msk.bf16.vlgmr.msra.gmra.mxu1 %vm1141_vm1, %v1985_v28 }
 0x801   :  { %4093 = vmatprep.mubr.msk.bf16.mxu1 %vm4593_vm0, %v4592_v41 }
 0x812   :  { %v1805_v31 = vpop.xlane.xlu0 %1804 }
 0x813   :  { %4366 = vrcp.f32 %v1805_v31 }
 0x816   :  { %v1808_v45 = vpop.xlane.xlu1 %1807 }
 0x817   :  { %4368 = vrcp.f32 %v1808_v45 }
 0x820   :  { %v4367_v50 = vpop.eup %4366 }
 0x821   :  { %v1819_v61 = vmul.f32 %v4367_v50, %v4359_v13 }
 0x824   :  { %v4369_v53 = vpop.eup %4368 }
 0x825   :  { %v1820_v22 = vmul.f32 %v4369_v53, %v4361_v44 }
 0x827   :  { %v1823_v55 = vpack.c.bf16 %v1820_v22, %v1819_v61 }
 0x829   :  { %4054 = vmatmul.mubr.msk.bf16.vlgmr.msra.gmra.mxu0 %vm1251_vm2, %v1823_v55 }
 0x82a   :  { %4066 = vmatpush3.bf16.xpose.msra.mxu0 %v1940_v63  ;;  %4069 = vmatprep.mubr.msk.bf16.mxu0 %vm4593_vm0, %v4592_v41 }
 0x82b   :  { %4067 = vmatprep.subr.bf16.mxu0 %v4592_v41 }
 0x832   :  { %4068 = vmatpush3.bf16.xpose.msra.mxu0 %v1937_v24 }
 0x833   :  { %4081 = vmatprep.subr.bf16.mxu0 %v4592_v41 }
 0x839   :  { %4070 = vmatmul.mubr.msk.bf16.vlgmr.msra.gmra.mxu0 %vm1141_vm1, %v4761_v14 }
 0x83a   :  { %4082 = vmatpush3.bf16.msra.mxu0 %v4796_v23  ;;  %4085 = vmatprep.mubr.msk.bf16.mxu0 %vm4593_vm0, %v4592_v41 }
 0x83b   :  { %4083 = vmatprep.subr.bf16.mxu0 %v4592_v41 }
 0x83e   :  { %4084 = vmatpush3.bf16.msra.mxu0 %v4792_v15 }
 0x83f   :  { %4097 = vmatprep.subr.bf16.mxu0 %v4592_v41 }
 0x8b0   :  { %v4963_v49 = vpop.f32.mrf.mxu1 }
 0x8b2   :  { %v4063_v38 = vpop.f32.mrf.mxu1 }
 0x8b4   :  { %v4965_v52 = vpop.f32.mrf.mxu1 }
 0x8b6   :  { %v4064_v10 = vpop.f32.mrf.mxu1 }
 0x8c0   :  { %v2035_v32 = vpop.f32.mrf.mxu1 }
 0x8c1   :  { %v2048_v14 = vsel %vm1251_vm2, %v2035_v32, -inf }
 0x8c2   :  { %2049 = vmax.xlane.f32.xlu0 %v2048_v14  ;;  %v4079_v6 = vpop.f32.mrf.mxu1 }
 0x8c4   :  { %v2038_v8 = vpop.f32.mrf.mxu1 }
 0x8c5   :  { %v2051_v13 = vsel %vm1251_vm2, %v2038_v8, -inf }
 0x8c6   :  { %2052 = vmax.xlane.f32.xlu0 %v2051_v13  ;;  %v4080_v9 = vpop.f32.mrf.mxu1 }
 0x8e9   :  { %v1862_v44 = vpop.f32.mrf.mxu0 }
 0x8ea   :  { %1869 = vst.msk [vmem:[#allocation2 + $0x10] sm:$0xff] %vm1141_vm1, %v1862_v44 }
 0x8eb   :  { %v4055_v21 = vpop.f32.mrf.mxu0 }
 0x8ed   :  { %v1865_v48 = vpop.f32.mrf.mxu0 }
 0x8ee   :  { %1870 = vst.msk [vmem:[#allocation2 + $0x30] sm:$0xff] %vm1141_vm1, %v1865_v48 }
 0x8ef   :  { %v4056_v47 = vpop.f32.mrf.mxu0 }
 0x8f9   :  { %v1976_v11 = vpop.f32.mrf.mxu0 }
 0x8fa   :  { %v2042_v12 = vsel %vm1251_vm2, %v1976_v11, -inf }
 0x8fb   :  { %2043 = vmax.xlane.f32.xlu1 %v2042_v12  ;;  %v4071_v16 = vpop.f32.mrf.mxu0 }
 0x8fd   :  { %v1979_v20 = vpop.f32.mrf.mxu0 }
 0x8fe   :  { %v2045_v60 = vsel %vm1251_vm2, %v1979_v20, -inf }
 0x8ff   :  { %2046 = vmax.xlane.f32.xlu0 %v2045_v60  ;;  %v4072_v35 = vpop.f32.mrf.mxu0 }
 0x90c   :  { %2138 = vrot.lane.b32.xlu1 %v4796_v23, %s4589_s0 }
 0x94b   :  { %v2050_v1 = vpop.xlane.xlu0 %2049 }
 0x94c   :  { %v2056_v25 = vsub.f32 %v2035_v32, %v2050_v1 }
 0x94e   :  { %v2062_v26 = vmul.f32 1.442695, %v2056_v25 }
 0x94f   :  { %v2053_v17 = vpop.xlane.xlu0 %2052 }
 0x950   :  { %4370 = vpow2.f32 %v2062_v26  ;;  %v2057_v54 = vsub.f32 %v2038_v8, %v2053_v17 }
 0x952   :  { %v2064_v28 = vmul.f32 1.442695, %v2057_v54 }
 0x954   :  { %4372 = vpow2.f32 %v2064_v28 }
 0x95d   :  { %v4371_v31 = vpop.eup %4370 }
 0x95e   :  { %v2072_v45 = vsel %vm1251_vm2, %v4371_v31, 0.0 }
 0x95f   :  { %2073 = vadd.xlane.f32.xlu1 %v2072_v45  ;;  %v2200_v45 = vsel %vm1141_vm1, %v4731_v33, 0 }
 0x961   :  { %v4373_v50 = vpop.eup %4372 }
 0x962   :  { %v2075_v53 = vsel %vm1251_vm2, %v4373_v50, 0.0 }
 0x963   :  { %2076 = vadd.xlane.f32.xlu0 %v2075_v53 }
 0x970   :  { %2253 = vrot.lane.b32.xlu1 %v4735_v40, %s4589_s0 }
 0x974   :  { %2251 = vrot.lane.b32.xlu1 %v4731_v33, %s4589_s0 }
 0x979   :  { %2136 = vrot.lane.b32.xlu0 %v4792_v15, %s4589_s0 }
 0x97d   :  { %2247 = vrot.lane.b32.xlu0 %v4707_v18, %s4589_s0 }
 0x984   :  { %v2044_v23 = vpop.xlane.xlu1 %2043 }
 0x985   :  { %v2054_v61 = vsub.f32 %v1976_v11, %v2044_v23 }
 0x987   :  { %v2058_v22 = vmul.f32 1.442695, %v2054_v61 }
 0x988   :  { %v2139_v55 = vpop.permute.xlu1 %2138  ;;  %v2047_v63 = vpop.xlane.xlu0 %2046 }
 0x989   :  { %4374 = vpow2.f32 %v2058_v22  ;;  %v2055_v24 = vsub.f32 %v1979_v20, %v2047_v63  ;;  %4090 = vmatpush3.bf16.msra.mxu1 %v2139_v55 }
 0x98a   :  { %4091 = vmatprep.subr.bf16.mxu1 %v4592_v41 }
 0x98b   :  { %v2060_v38 = vmul.f32 1.442695, %v2055_v24 }
 0x98d   :  { %4376 = vpow2.f32 %v2060_v38 }
 0x996   :  { %v4375_v10 = vpop.eup %4374 }
 0x997   :  { %v2066_v32 = vsel %vm1251_vm2, %v4375_v10, 0.0 }
 0x998   :  { %2067 = vadd.xlane.f32.xlu1 %v2066_v32 }
 0x99a   :  { %v4377_v15 = vpop.eup %4376 }
 0x99b   :  { %v2069_v14 = vsel %vm1251_vm2, %v4377_v15, 0.0 }
 0x99c   :  { %2070 = vadd.xlane.f32.xlu0 %v2069_v14 }
 0x9e8   :  { %v2074_v6 = vpop.xlane.xlu1 %2073 }
 0x9e9   :  { %4378 = vrcp.f32 %v2074_v6 }
 0x9ec   :  { %v2077_v8 = vpop.xlane.xlu0 %2076  ;;  %v2254_v47 = vpop.permute.xlu1 %2253 }
 0x9ed   :  { %4380 = vrcp.f32 %v2077_v8  ;;  %v2262_v12 = vsel %vm1141_vm1, %v2254_v47, 0 }
 0x9f0   :  { %v2137_v13 = vpop.permute.xlu0 %2136  ;;  %v2252_v16 = vpop.permute.xlu1 %2251 }
 0x9f1   :  { %4092 = vmatpush3.bf16.msra.mxu1 %v2137_v13  ;;  %v2259_v20 = vsel %vm1141_vm1, %v2252_v16, 0 }
 0x9f2   :  { %4105 = vmatprep.subr.bf16.mxu1 %v4592_v41 }
 0x9f4   :  { %v2248_v60 = vpop.permute.xlu0 %2247 }
 0x9f6   :  { %v4379_v9 = vpop.eup %4378 }
 0x9f7   :  { %v2084_v21 = vmul.f32 %v4379_v9, %v4371_v31  ;;  %v2203_v31 = vsel %vm1141_vm1, %v4735_v40, 0 }
 0x9fa   :  { %v4381_v44 = vpop.eup %4380 }
 0x9fb   :  { %v2085_v48 = vmul.f32 %v4381_v44, %v4373_v50 }
 0x9fd   :  { %v2087_v11 = vpack.c.bf16 %v2085_v48, %v2084_v21 }
 0x9ff   :  { %4094 = vmatmul.mubr.msk.bf16.vlgmr.msra.gmra.mxu1 %vm1251_vm2, %v2087_v11 }
 0xa00   :  { %4106 = vmatpush3.bf16.xpose.msra.mxu1 %v2262_v12  ;;  %4109 = vmatprep.mubr.msk.bf16.mxu1 %vm4593_vm0, %v4592_v41 }
 0xa01   :  { %4107 = vmatprep.subr.bf16.mxu1 %v4592_v41 }
 0xa08   :  { %4108 = vmatpush3.bf16.xpose.msra.mxu1 %v2259_v20 }
 0xa09   :  { %4121 = vmatprep.subr.bf16.mxu1 %v4592_v41 }
 0xa0f   :  { %4110 = vmatmul.mubr.msk.bf16.vlgmr.msra.gmra.mxu1 %vm1141_vm1, %v2248_v60 }
 0xa10   :  { %4125 = vmatprep.mubr.msk.bf16.mxu1 %vm4593_vm0, %v4592_v41 }
 0xa21   :  { %v2068_v35 = vpop.xlane.xlu1 %2067 }
 0xa22   :  { %4382 = vrcp.f32 %v2068_v35 }
 0xa25   :  { %v2071_v1 = vpop.xlane.xlu0 %2070 }
 0xa26   :  { %4384 = vrcp.f32 %v2071_v1 }
 0xa2f   :  { %v4383_v25 = vpop.eup %4382 }
 0xa30   :  { %v2082_v17 = vmul.f32 %v4383_v25, %v4375_v10 }
 0xa33   :  { %v4385_v26 = vpop.eup %4384 }
 0xa34   :  { %v2083_v54 = vmul.f32 %v4385_v26, %v4377_v15 }
 0xa36   :  { %v2086_v28 = vpack.c.bf16 %v2083_v54, %v2082_v17 }
 0xa38   :  { %4086 = vmatmul.mubr.msk.bf16.vlgmr.msra.gmra.mxu0 %vm1251_vm2, %v2086_v28 }
 0xa39   :  { %4098 = vmatpush3.bf16.xpose.msra.mxu0 %v2203_v31  ;;  %4101 = vmatprep.mubr.msk.bf16.mxu0 %vm4593_vm0, %v4592_v41 }
 0xa3a   :  { %4099 = vmatprep.subr.bf16.mxu0 %v4592_v41 }
 0xa41   :  { %4100 = vmatpush3.bf16.xpose.msra.mxu0 %v2200_v45 }
 0xa42   :  { %4113 = vmatprep.subr.bf16.mxu0 %v4592_v41 }
 0xa48   :  { %4102 = vmatmul.mubr.msk.bf16.vlgmr.msra.gmra.mxu0 %vm1141_vm1, %v4707_v18 }
 0xa49   :  { %4114 = vmatpush3.bf16.msra.mxu0 %v4757_v4  ;;  %4117 = vmatprep.mubr.msk.bf16.mxu0 %vm4593_vm0, %v4592_v41 }
 0xa4a   :  { %4115 = vmatprep.subr.bf16.mxu0 %v4592_v41 }
 0xa4d   :  { %4116 = vmatpush3.bf16.msra.mxu0 %v4751_v59 }
 0xa4e   :  { %4129 = vmatprep.subr.bf16.mxu0 %v4592_v41 }
 0xabf   :  { %v5016_v40 = vpop.f32.mrf.mxu1 }
 0xac1   :  { %v4095_v33 = vpop.f32.mrf.mxu1 }
 0xac3   :  { %v5018_v50 = vpop.f32.mrf.mxu1 }
 0xac5   :  { %v4096_v53 = vpop.f32.mrf.mxu1 }
 0xacf   :  { %v2298_v23 = vpop.f32.mrf.mxu1 }
 0xad0   :  { %v2311_v18 = vsel %vm1251_vm2, %v2298_v23, -inf }
 0xad1   :  { %2312 = vmax.xlane.f32.xlu0 %v2311_v18  ;;  %v4111_v61 = vpop.f32.mrf.mxu1 }
 0xad3   :  { %v2301_v22 = vpop.f32.mrf.mxu1 }
 0xad4   :  { %v2314_v55 = vsel %vm1251_vm2, %v2301_v22, -inf }
 0xad5   :  { %2315 = vmax.xlane.f32.xlu1 %v2314_v55  ;;  %v4112_v63 = vpop.f32.mrf.mxu1 }
 0xaf8   :  { %v2125_v24 = vpop.f32.mrf.mxu0 }
 0xaf9   :  { %2132 = vst.msk [vmem:[#allocation2 + $0x18] sm:$0xff] %vm1141_vm1, %v2125_v24 }
 0xafa   :  { %v4087_v38 = vpop.f32.mrf.mxu0 }
 0xafc   :  { %v2128_v10 = vpop.f32.mrf.mxu0 }
 0xafd   :  { %2133 = vst.msk [vmem:[#allocation2 + $0x38] sm:$0xff] %vm1141_vm1, %v2128_v10 }
 0xafe   :  { %v4088_v32 = vpop.f32.mrf.mxu0 }
 0xb08   :  { %v2239_v15 = vpop.f32.mrf.mxu0 }
 0xb09   :  { %v2305_v14 = vsel %vm1251_vm2, %v2239_v15, -inf }
 0xb0a   :  { %2306 = vmax.xlane.f32.xlu0 %v2305_v14  ;;  %v4103_v6 = vpop.f32.mrf.mxu0 }
 0xb0c   :  { %v2242_v8 = vpop.f32.mrf.mxu0 }
 0xb0d   :  { %v2308_v13 = vsel %vm1251_vm2, %v2242_v8, -inf }
 0xb0e   :  { %2309 = vmax.xlane.f32.xlu1 %v2308_v13  ;;  %v4104_v9 = vpop.f32.mrf.mxu0 }
 0xb1f   :  { %2399 = vrot.lane.b32.xlu1 %v4751_v59, %s4589_s0 }
 0xb5a   :  { %v2313_v44 = vpop.xlane.xlu0 %2312 }
 0xb5b   :  { %v2319_v21 = vsub.f32 %v2298_v23, %v2313_v44 }
 0xb5d   :  { %v2325_v48 = vmul.f32 1.442695, %v2319_v21 }
 0xb5e   :  { %v2316_v47 = vpop.xlane.xlu1 %2315 }
 0xb5f   :  { %4386 = vpow2.f32 %v2325_v48  ;;  %v2320_v11 = vsub.f32 %v2301_v22, %v2316_v47  ;;  %v2466_v47 = vsel %vm1141_vm1, %v4737_v43, 0 }
 0xb61   :  { %v2327_v12 = vmul.f32 1.442695, %v2320_v11  ;;  %v2463_v11 = vsel %vm1141_vm1, %v4733_v36, 0 }
 0xb63   :  { %4388 = vpow2.f32 %v2327_v12  ;;  %v1138_v12 = vpack.c.bf16 %v4806_v42, %v4755_v2 }
 0xb6c   :  { %v4387_v16 = vpop.eup %4386 }
 0xb6d   :  { %v2335_v20 = vsel %vm1251_vm2, %v4387_v16, 0.0 }
 0xb6e   :  { %2336 = vadd.xlane.f32.xlu0 %v2335_v20 }
 0xb70   :  { %v4389_v60 = vpop.eup %4388 }
 0xb71   :  { %v2338_v35 = vsel %vm1251_vm2, %v4389_v60, 0.0 }
 0xb72   :  { %2339 = vadd.xlane.f32.xlu1 %v2338_v35 }
 0xb83   :  { %2516 = vrot.lane.b32.xlu1 %v4737_v43, %s4589_s0 }
 0xb84   :  { %2401 = vrot.lane.b32.xlu0 %v4757_v4, %s4589_s0 }
 0xb87   :  { %2510 = vrot.lane.b32.xlu1 %v4709_v19, %s4589_s0 }
 0xb88   :  { %2514 = vrot.lane.b32.xlu0 %v4733_v36, %s4589_s0 }
 0xb93   :  { %v2307_v59 = vpop.xlane.xlu0 %2306 }
 0xb94   :  { %v2317_v1 = vsub.f32 %v2239_v15, %v2307_v59 }
 0xb96   :  { %v2321_v25 = vmul.f32 1.442695, %v2317_v1 }
 0xb97   :  { %v2310_v26 = vpop.xlane.xlu1 %2309 }
 0xb98   :  { %4390 = vpow2.f32 %v2321_v25  ;;  %v2318_v17 = vsub.f32 %v2242_v8, %v2310_v26 }
 0xb9a   :  { %v2323_v54 = vmul.f32 1.442695, %v2318_v17 }
 0xb9b   :  { %v2400_v33 = vpop.permute.xlu1 %2399 }
 0xb9c   :  { %4392 = vpow2.f32 %v2323_v54 }
 0xba5   :  { %v4391_v28 = vpop.eup %4390 }
 0xba6   :  { %v2329_v31 = vsel %vm1251_vm2, %v4391_v28, 0.0 }
 0xba7   :  { %2330 = vadd.xlane.f32.xlu0 %v2329_v31 }
 0xba9   :  { %v4393_v45 = vpop.eup %4392 }
 0xbaa   :  { %v2332_v4 = vsel %vm1251_vm2, %v4393_v45, 0.0 }
 0xbab   :  { %2333 = vadd.xlane.f32.xlu1 %v2332_v4 }
 0xbf7   :  { %v2337_v53 = vpop.xlane.xlu0 %2336 }
 0xbf8   :  { %4394 = vrcp.f32 %v2337_v53 }
 0xbfb   :  { %v2402_v23 = vpop.permute.xlu0 %2401  ;;  %v2340_v18 = vpop.xlane.xlu1 %2339 }
 0xbfc   :  { %4396 = vrcp.f32 %v2340_v18  ;;  %4122 = vmatpush3.bf16.msra.mxu1 %v2402_v23 }
 0xbfd   :  { %4123 = vmatprep.subr.bf16.mxu1 %v4592_v41 }
 0xbff   :  { %v2517_v24 = vpop.permute.xlu1 %2516  ;;  %v2515_v32 = vpop.permute.xlu0 %2514 }
 0xc00   :  { %4124 = vmatpush3.bf16.msra.mxu1 %v2400_v33  ;;  %v2525_v10 = vsel %vm1141_vm1, %v2517_v24, 0  ;;  %v2522_v15 = vsel %vm1141_vm1, %v2515_v32, 0 }
 0xc01   :  { %4137 = vmatprep.subr.bf16.mxu1 %v4592_v41 }
 0xc03   :  { %v2511_v14 = vpop.permute.xlu1 %2510 }
 0xc05   :  { %v4395_v61 = vpop.eup %4394 }
 0xc06   :  { %v2347_v55 = vmul.f32 %v4395_v61, %v4387_v16 }
 0xc09   :  { %v4397_v22 = vpop.eup %4396 }
 0xc0a   :  { %v2348_v63 = vmul.f32 %v4397_v22, %v4389_v60 }
 0xc0c   :  { %v2350_v38 = vpack.c.bf16 %v2348_v63, %v2347_v55 }
 0xc0e   :  { %4126 = vmatmul.mubr.msk.bf16.vlgmr.msra.gmra.mxu1 %vm1251_vm2, %v2350_v38 }
 0xc0f   :  { %4138 = vmatpush3.bf16.xpose.msra.mxu1 %v2525_v10  ;;  %4141 = vmatprep.mubr.msk.bf16.mxu1 %vm4593_vm0, %v4592_v41 }
 0xc10   :  { %4139 = vmatprep.subr.bf16.mxu1 %v4592_v41 }
 0xc17   :  { %4140 = vmatpush3.bf16.xpose.msra.mxu1 %v2522_v15 }
 0xc18   :  { %4153 = vmatprep.subr.bf16.mxu1 %v4592_v41 }
 0xc1e   :  { %4142 = vmatmul.mubr.msk.bf16.vlgmr.msra.gmra.mxu1 %vm1141_vm1, %v2511_v14 }
 0xc1f   :  { %4157 = vmatprep.mubr.msk.bf16.mxu1 %vm4593_vm0, %v4592_v41 }
 0xc30   :  { %v2331_v6 = vpop.xlane.xlu0 %2330 }
 0xc31   :  { %4398 = vrcp.f32 %v2331_v6 }
 0xc34   :  { %v2334_v8 = vpop.xlane.xlu1 %2333 }
 0xc35   :  { %4400 = vrcp.f32 %v2334_v8 }
 0xc3e   :  { %v4399_v13 = vpop.eup %4398 }
 0xc3f   :  { %v2345_v44 = vmul.f32 %v4399_v13, %v4391_v28 }
 0xc42   :  { %v4401_v9 = vpop.eup %4400 }
 0xc43   :  { %v2346_v21 = vmul.f32 %v4401_v9, %v4393_v45 }
 0xc45   :  { %v2349_v48 = vpack.c.bf16 %v2346_v21, %v2345_v44 }
 0xc47   :  { %4118 = vmatmul.mubr.msk.bf16.vlgmr.msra.gmra.mxu0 %vm1251_vm2, %v2349_v48 }
 0xc48   :  { %4130 = vmatpush3.bf16.xpose.msra.mxu0 %v2466_v47  ;;  %4133 = vmatprep.mubr.msk.bf16.mxu0 %vm4593_vm0, %v4592_v41 }
 0xc49   :  { %4131 = vmatprep.subr.bf16.mxu0 %v4592_v41 }
 0xc50   :  { %4132 = vmatpush3.bf16.xpose.msra.mxu0 %v2463_v11 }
 0xc51   :  { %4145 = vmatprep.subr.bf16.mxu0 %v4592_v41 }
 0xc57   :  { %4134 = vmatmul.mubr.msk.bf16.vlgmr.msra.gmra.mxu0 %vm1141_vm1, %v4709_v19 }
 0xc58   :  { %4146 = vmatpush3.bf16.msra.mxu0 %v1138_v12  ;;  %4149 = vmatprep.mubr.msk.bf16.mxu0 %vm4593_vm0, %v4592_v41 }
 0xc59   :  { %4147 = vmatprep.subr.bf16.mxu0 %v4592_v41 }
 0xc5c   :  { %4148 = vmatpush3.bf16.msra.mxu0 %v4753_v62 }
 0xc5d   :  { %4161 = vmatprep.subr.bf16.mxu0 %v4592_v41 }
 0xcce   :  { %v5070_v36 = vpop.f32.mrf.mxu1 }
 0xcd0   :  { %v4127_v43 = vpop.f32.mrf.mxu1 }
 0xcd2   :  { %v5072_v16 = vpop.f32.mrf.mxu1 }
 0xcd4   :  { %v4128_v20 = vpop.f32.mrf.mxu1 }
 0xcde   :  { %v2561_v2 = vpop.f32.mrf.mxu1 }
 0xcdf   :  { %v2574_v42 = vsel %vm1251_vm2, %v2561_v2, -inf }
 0xce0   :  { %2575 = vmax.xlane.f32.xlu0 %v2574_v42  ;;  %v4143_v19 = vpop.f32.mrf.mxu1 }
 0xce2   :  { %v2564_v60 = vpop.f32.mrf.mxu1 }
 0xce3   :  { %v2577_v35 = vsel %vm1251_vm2, %v2564_v60, -inf }
 0xce4   :  { %2578 = vmax.xlane.f32.xlu0 %v2577_v35  ;;  %v4144_v59 = vpop.f32.mrf.mxu1 }
 0xd07   :  { %v2388_v1 = vpop.f32.mrf.mxu0 }
 0xd08   :  { %2395 = vst.msk [vmem:[#allocation2 + $0x40] sm:$0xff] %vm1141_vm1, %v2388_v1 }
 0xd09   :  { %v4119_v25 = vpop.f32.mrf.mxu0 }
 0xd0b   :  { %v2391_v26 = vpop.f32.mrf.mxu0 }
 0xd0c   :  { %2396 = vst.msk [vmem:[#allocation2 + $0x60] sm:$0xff] %vm1141_vm1, %v2391_v26 }
 0xd0d   :  { %v4120_v17 = vpop.f32.mrf.mxu0 }
 0xd17   :  { %v2502_v54 = vpop.f32.mrf.mxu0 }
 0xd18   :  { %v2568_v28 = vsel %vm1251_vm2, %v2502_v54, -inf }
 0xd19   :  { %2569 = vmax.xlane.f32.xlu1 %v2568_v28  ;;  %v4135_v31 = vpop.f32.mrf.mxu0 }
 0xd1b   :  { %v2505_v45 = vpop.f32.mrf.mxu0 }
 0xd1c   :  { %v2571_v4 = vsel %vm1251_vm2, %v2505_v45, -inf }
 0xd1d   :  { %2572 = vmax.xlane.f32.xlu0 %v2571_v4  ;;  %v4136_v33 = vpop.f32.mrf.mxu0 }
 0xd1e   :  { %v2729_v33 = vsel %vm1141_vm1, %v4786_v5, 0 }
 0xd2a   :  { %2664 = vrot.lane.b32.xlu1 %v1138_v12, %s4589_s0 }
 0xd69   :  { %v2576_v53 = vpop.xlane.xlu0 %2575 }
 0xd6a   :  { %v2582_v23 = vsub.f32 %v2561_v2, %v2576_v53  ;;  %v2726_v53 = vsel %vm1141_vm1, %v4782_v56, 0 }
 0xd6c   :  { %v2588_v18 = vmul.f32 1.442695, %v2582_v23 }
 0xd6d   :  { %v2579_v61 = vpop.xlane.xlu0 %2578 }
 0xd6e   :  { %4402 = vpow2.f32 %v2588_v18  ;;  %v2583_v22 = vsub.f32 %v2564_v60, %v2579_v61 }
 0xd70   :  { %v2590_v55 = vmul.f32 1.442695, %v2583_v22 }
 0xd72   :  { %4404 = vpow2.f32 %v2590_v55 }
 0xd7b   :  { %v4403_v63 = vpop.eup %4402 }
 0xd7c   :  { %v2598_v24 = vsel %vm1251_vm2, %v4403_v63, 0.0 }
 0xd7d   :  { %2599 = vadd.xlane.f32.xlu1 %v2598_v24 }
 0xd7f   :  { %v4405_v38 = vpop.eup %4404 }
 0xd80   :  { %v2601_v10 = vsel %vm1251_vm2, %v4405_v38, 0.0 }
 0xd81   :  { %2602 = vadd.xlane.f32.xlu0 %v2601_v10 }
 0xd8e   :  { %2779 = vrot.lane.b32.xlu1 %v4786_v5, %s4589_s0 }
 0xd92   :  { %2777 = vrot.lane.b32.xlu1 %v4782_v56, %s4589_s0 }
 0xd97   :  { %2662 = vrot.lane.b32.xlu0 %v4753_v62, %s4589_s0 }
 0xd9b   :  { %2773 = vrot.lane.b32.xlu0 %v4770_v37, %s4589_s0 }
 0xda2   :  { %v2570_v32 = vpop.xlane.xlu1 %2569 }
 0xda3   :  { %v2580_v15 = vsub.f32 %v2502_v54, %v2570_v32 }
 0xda5   :  { %v2584_v14 = vmul.f32 1.442695, %v2580_v15 }
 0xda6   :  { %v2573_v6 = vpop.xlane.xlu0 %2572  ;;  %v2665_v8 = vpop.permute.xlu1 %2664 }
 0xda7   :  { %4406 = vpow2.f32 %v2584_v14  ;;  %v2581_v13 = vsub.f32 %v2505_v45, %v2573_v6  ;;  %4154 = vmatpush3.bf16.msra.mxu1 %v2665_v8 }
 0xda8   :  { %4155 = vmatprep.subr.bf16.mxu1 %v4592_v41 }
 0xda9   :  { %v2586_v9 = vmul.f32 1.442695, %v2581_v13 }
 0xdab   :  { %4408 = vpow2.f32 %v2586_v9 }
 0xdb4   :  { %v4407_v44 = vpop.eup %4406 }
 0xdb5   :  { %v2592_v21 = vsel %vm1251_vm2, %v4407_v44, 0.0 }
 0xdb6   :  { %2593 = vadd.xlane.f32.xlu1 %v2592_v21 }
 0xdb8   :  { %v4409_v62 = vpop.eup %4408 }
 0xdb9   :  { %v2595_v48 = vsel %vm1251_vm2, %v4409_v62, 0.0 }
 0xdba   :  { %2596 = vadd.xlane.f32.xlu0 %v2595_v48 }
 0xe06   :  { %v2600_v47 = vpop.xlane.xlu1 %2599 }
 0xe07   :  { %4410 = vrcp.f32 %v2600_v47 }
 0xe0a   :  { %v2603_v11 = vpop.xlane.xlu0 %2602  ;;  %v2780_v19 = vpop.permute.xlu1 %2779 }
 0xe0b   :  { %4412 = vrcp.f32 %v2603_v11  ;;  %v2788_v35 = vsel %vm1141_vm1, %v2780_v19, 0 }
 0xe0e   :  { %v2663_v12 = vpop.permute.xlu0 %2662  ;;  %v2778_v59 = vpop.permute.xlu1 %2777 }
 0xe0f   :  { %4156 = vmatpush3.bf16.msra.mxu1 %v2663_v12  ;;  %v2785_v1 = vsel %vm1141_vm1, %v2778_v59, 0 }
 0xe10   :  { %4169 = vmatprep.subr.bf16.mxu1 %v4592_v41 }
 0xe12   :  { %v2774_v25 = vpop.permute.xlu0 %2773 }
 0xe14   :  { %v4411_v43 = vpop.eup %4410 }
 0xe15   :  { %v2610_v2 = vmul.f32 %v4411_v43, %v4403_v63 }
 0xe18   :  { %v4413_v20 = vpop.eup %4412 }
 0xe19   :  { %v2611_v42 = vmul.f32 %v4413_v20, %v4405_v38 }
 0xe1b   :  { %v2613_v60 = vpack.c.bf16 %v2611_v42, %v2610_v2 }
 0xe1d   :  { %4158 = vmatmul.mubr.msk.bf16.vlgmr.msra.gmra.mxu1 %vm1251_vm2, %v2613_v60 }
 0xe1e   :  { %4170 = vmatpush3.bf16.xpose.msra.mxu1 %v2788_v35  ;;  %4173 = vmatprep.mubr.msk.bf16.mxu1 %vm4593_vm0, %v4592_v41 }
 0xe1f   :  { %4171 = vmatprep.subr.bf16.mxu1 %v4592_v41 }
 0xe26   :  { %4172 = vmatpush3.bf16.xpose.msra.mxu1 %v2785_v1 }
 0xe27   :  { %4185 = vmatprep.subr.bf16.mxu1 %v4592_v41 }
 0xe2d   :  { %4174 = vmatmul.mubr.msk.bf16.vlgmr.msra.gmra.mxu1 %vm1141_vm1, %v2774_v25 }
 0xe2e   :  { %4189 = vmatprep.mubr.msk.bf16.mxu1 %vm4593_vm0, %v4592_v41 }
 0xe3f   :  { %v2594_v26 = vpop.xlane.xlu1 %2593 }
 0xe40   :  { %4414 = vrcp.f32 %v2594_v26 }
 0xe43   :  { %v2597_v17 = vpop.xlane.xlu0 %2596 }
 0xe44   :  { %4416 = vrcp.f32 %v2597_v17 }
 0xe4d   :  { %v4415_v54 = vpop.eup %4414 }
 0xe4e   :  { %v2608_v31 = vmul.f32 %v4415_v54, %v4407_v44 }
 0xe51   :  { %v4417_v28 = vpop.eup %4416 }
 0xe52   :  { %v2609_v45 = vmul.f32 %v4417_v28, %v4409_v62 }
 0xe54   :  { %v2612_v4 = vpack.c.bf16 %v2609_v45, %v2608_v31 }
 0xe56   :  { %4150 = vmatmul.mubr.msk.bf16.vlgmr.msra.gmra.mxu0 %vm1251_vm2, %v2612_v4 }
 0xe57   :  { %4162 = vmatpush3.bf16.xpose.msra.mxu0 %v2729_v33  ;;  %4165 = vmatprep.mubr.msk.bf16.mxu0 %vm4593_vm0, %v4592_v41 }
 0xe58   :  { %4163 = vmatprep.subr.bf16.mxu0 %v4592_v41 }
 0xe5f   :  { %4164 = vmatpush3.bf16.xpose.msra.mxu0 %v2726_v53 }
 0xe60   :  { %4177 = vmatprep.subr.bf16.mxu0 %v4592_v41 }
 0xe66   :  { %4166 = vmatmul.mubr.msk.bf16.vlgmr.msra.gmra.mxu0 %vm1141_vm1, %v4770_v37 }
 0xe67   :  { %4178 = vmatpush3.bf16.msra.mxu0 %v4804_v34  ;;  %4181 = vmatprep.mubr.msk.bf16.mxu0 %vm4593_vm0, %v4592_v41 }
 0xe68   :  { %4179 = vmatprep.subr.bf16.mxu0 %v4592_v41 }
 0xe6b   :  { %4180 = vmatpush3.bf16.msra.mxu0 %v4798_v27 }
 0xe6c   :  { %4193 = vmatprep.subr.bf16.mxu0 %v4592_v41 }
 0xedd   :  { %v5122_v5 = vpop.f32.mrf.mxu1 }
 0xedf   :  { %v4159_v56 = vpop.f32.mrf.mxu1 }
 0xee1   :  { %v5124_v23 = vpop.f32.mrf.mxu1 }
 0xee3   :  { %v4160_v18 = vpop.f32.mrf.mxu1 }
 0xeed   :  { %v2824_v61 = vpop.f32.mrf.mxu1 }
 0xeee   :  { %v2837_v37 = vsel %vm1251_vm2, %v2824_v61, -inf }
 0xeef   :  { %2838 = vmax.xlane.f32.xlu0 %v2837_v37  ;;  %v4175_v22 = vpop.f32.mrf.mxu1 }
 0xef1   :  { %v2827_v55 = vpop.f32.mrf.mxu1 }
 0xef2   :  { %v2840_v63 = vsel %vm1251_vm2, %v2827_v55, -inf }
 0xef3   :  { %2841 = vmax.xlane.f32.xlu1 %v2840_v63  ;;  %v4176_v24 = vpop.f32.mrf.mxu1 }
 0xf16   :  { %v2651_v38 = vpop.f32.mrf.mxu0 }
 0xf17   :  { %2658 = vst.msk [vmem:[#allocation2 + $0x48] sm:$0xff] %vm1141_vm1, %v2651_v38 }
 0xf18   :  { %v4151_v10 = vpop.f32.mrf.mxu0 }
 0xf1a   :  { %v2654_v32 = vpop.f32.mrf.mxu0 }
 0xf1b   :  { %2659 = vst.msk [vmem:[#allocation2 + $0x68] sm:$0xff] %vm1141_vm1, %v2654_v32 }
 0xf1c   :  { %v4152_v15 = vpop.f32.mrf.mxu0 }
 0xf26   :  { %v2765_v14 = vpop.f32.mrf.mxu0 }
 0xf27   :  { %v2831_v6 = vsel %vm1251_vm2, %v2765_v14, -inf }
 0xf28   :  { %2832 = vmax.xlane.f32.xlu0 %v2831_v6  ;;  %v4167_v8 = vpop.f32.mrf.mxu0 }
 0xf29   :  { %v2992_v8 = vsel %vm1141_vm1, %v4788_v7, 0 }
 0xf2a   :  { %v2768_v13 = vpop.f32.mrf.mxu0 }
 0xf2b   :  { %v2834_v9 = vsel %vm1251_vm2, %v2768_v13, -inf }
 0xf2c   :  { %2835 = vmax.xlane.f32.xlu1 %v2834_v9  ;;  %v4168_v44 = vpop.f32.mrf.mxu0  ;;  %v1140_v9 = vpack.c.bf16 %v4808_v51, %v4802_v29 }
 0xf3d   :  { %2925 = vrot.lane.b32.xlu1 %v4798_v27, %s4589_s0 }
 0xf78   :  { %v2839_v21 = vpop.xlane.xlu0 %2838 }
 0xf79   :  { %v2845_v62 = vsub.f32 %v2824_v61, %v2839_v21 }
 0xf7b   :  { %v2851_v48 = vmul.f32 1.442695, %v2845_v62 }
 0xf7c   :  { %v2842_v47 = vpop.xlane.xlu1 %2841 }
 0xf7d   :  { %4418 = vpow2.f32 %v2851_v48  ;;  %v2846_v11 = vsub.f32 %v2827_v55, %v2842_v47 }
 0xf7f   :  { %v2853_v12 = vmul.f32 1.442695, %v2846_v11 }
 0xf81   :  { %4420 = vpow2.f32 %v2853_v12 }
 0xf8a   :  { %v4419_v43 = vpop.eup %4418 }
 0xf8b   :  { %v2861_v20 = vsel %vm1251_vm2, %v4419_v43, 0.0 }
 0xf8c   :  { %2862 = vadd.xlane.f32.xlu0 %v2861_v20 }
 0xf8e   :  { %v4421_v2 = vpop.eup %4420 }
 0xf8f   :  { %v2864_v42 = vsel %vm1251_vm2, %v4421_v2, 0.0 }
 0xf90   :  { %2865 = vadd.xlane.f32.xlu1 %v2864_v42 }
 0xfa1   :  { %3042 = vrot.lane.b32.xlu1 %v4788_v7, %s4589_s0 }
 0xfa2   :  { %2927 = vrot.lane.b32.xlu0 %v4804_v34, %s4589_s0 }
 0xfa5   :  { %3036 = vrot.lane.b32.xlu1 %v4776_v39, %s4589_s0 }
 0xfa6   :  { %3040 = vrot.lane.b32.xlu0 %v4784_v58, %s4589_s0 }
 0xfb1   :  { %v2833_v27 = vpop.xlane.xlu0 %2832 }
 0xfb2   :  { %v2843_v19 = vsub.f32 %v2765_v14, %v2833_v27 }
 0xfb4   :  { %v2847_v60 = vmul.f32 1.442695, %v2843_v19 }
 0xfb5   :  { %v2836_v35 = vpop.xlane.xlu1 %2835 }
 0xfb6   :  { %4422 = vpow2.f32 %v2847_v60  ;;  %v2844_v59 = vsub.f32 %v2768_v13, %v2836_v35  ;;  %v2989_v13 = vsel %vm1141_vm1, %v4784_v58, 0 }
 0xfb8   :  { %v2849_v1 = vmul.f32 1.442695, %v2844_v59 }
 0xfb9   :  { %v2926_v54 = vpop.permute.xlu1 %2925 }
 0xfba   :  { %4424 = vpow2.f32 %v2849_v1 }
 0xfc3   :  { %v4423_v25 = vpop.eup %4422 }
 0xfc4   :  { %v2855_v26 = vsel %vm1251_vm2, %v4423_v25, 0.0 }
 0xfc5   :  { %2856 = vadd.xlane.f32.xlu0 %v2855_v26 }
 0xfc7   :  { %v4425_v17 = vpop.eup %4424 }
 0xfc8   :  { %v2858_v34 = vsel %vm1251_vm2, %v4425_v17, 0.0 }
 0xfc9   :  { %2859 = vadd.xlane.f32.xlu1 %v2858_v34 }
0x1015   :  { %v2863_v28 = vpop.xlane.xlu0 %2862 }
0x1016   :  { %4426 = vrcp.f32 %v2863_v28 }
0x1019   :  { %v2928_v31 = vpop.permute.xlu0 %2927  ;;  %v2866_v45 = vpop.xlane.xlu1 %2865 }
0x101a   :  { %4428 = vrcp.f32 %v2866_v45  ;;  %4186 = vmatpush3.bf16.msra.mxu1 %v2928_v31 }
0x101b   :  { %4187 = vmatprep.subr.bf16.mxu1 %v4592_v41 }
0x101d   :  { %v3043_v18 = vpop.permute.xlu1 %3042  ;;  %v3041_v22 = vpop.permute.xlu0 %3040 }
0x101e   :  { %4188 = vmatpush3.bf16.msra.mxu1 %v2926_v54  ;;  %v3051_v37 = vsel %vm1141_vm1, %v3043_v18, 0  ;;  %v3048_v55 = vsel %vm1141_vm1, %v3041_v22, 0 }
0x101f   :  { %4201 = vmatprep.subr.bf16.mxu1 %v4592_v41 }
0x1021   :  { %v3037_v63 = vpop.permute.xlu1 %3036 }
0x1023   :  { %v4427_v4 = vpop.eup %4426 }
0x1024   :  { %v2873_v53 = vmul.f32 %v4427_v4, %v4419_v43 }
0x1027   :  { %v4429_v33 = vpop.eup %4428 }
0x1028   :  { %v2874_v56 = vmul.f32 %v4429_v33, %v4421_v2 }
0x102a   :  { %v2876_v61 = vpack.c.bf16 %v2874_v56, %v2873_v53 }
0x102c   :  { %4190 = vmatmul.mubr.msk.bf16.vlgmr.msra.gmra.mxu1 %vm1251_vm2, %v2876_v61 }
0x102d   :  { %4202 = vmatpush3.bf16.xpose.msra.mxu1 %v3051_v37  ;;  %4205 = vmatprep.mubr.msk.bf16.mxu1 %vm4593_vm0, %v4592_v41 }
0x102e   :  { %4203 = vmatprep.subr.bf16.mxu1 %v4592_v41 }
0x1035   :  { %4204 = vmatpush3.bf16.xpose.msra.mxu1 %v3048_v55 }
0x1036   :  { %4217 = vmatprep.subr.bf16.mxu1 %v4592_v41 }
0x103c   :  { %4206 = vmatmul.mubr.msk.bf16.vlgmr.msra.gmra.mxu1 %vm1141_vm1, %v3037_v63 }
0x103d   :  { %4221 = vmatprep.mubr.msk.bf16.mxu1 %vm4593_vm0, %v4592_v41 }
0x104e   :  { %v2857_v24 = vpop.xlane.xlu0 %2856 }
0x104f   :  { %4430 = vrcp.f32 %v2857_v24  ;;  %v4292_v24 = vld [vmem:[#allocation11 + $0xf0] sm:$0xff]  }
0x1052   :  { %v2860_v38 = vpop.xlane.xlu1 %2859 }
0x1053   :  { %4432 = vrcp.f32 %v2860_v38  ;;  %v4294_v38 = vld [vmem:[#allocation11 + $0xe8] sm:$0xff]  }
0x105c   :  { %v4431_v10 = vpop.eup %4430 }
0x105d   :  { %v2871_v15 = vmul.f32 %v4431_v10, %v4423_v25  ;;  %v4295_v10 = vld [vmem:[#allocation11 + $0xa8] sm:$0xff]  }
0x1060   :  { %v4433_v32 = vpop.eup %4432 }
0x1061   :  { %v2872_v14 = vmul.f32 %v4433_v32, %v4425_v17  ;;  %v4297_v32 = vld [vmem:[#allocation11 + $0xa0] sm:$0xff]  }
0x1063   :  { %v2875_v6 = vpack.c.bf16 %v2872_v14, %v2871_v15  ;;  %v4298_v15 = vld [vmem:[#allocation11 + $0xd8] sm:$0xff]  }
0x1064   :  { %v4299_v14 = vld [vmem:[#allocation11 + $0x98] sm:$0xff]  }
0x1065   :  { %4182 = vmatmul.mubr.msk.bf16.vlgmr.msra.gmra.mxu0 %vm1251_vm2, %v2875_v6  ;;  %v4300_v6 = vld [vmem:[#allocation11 + $0xd0] sm:$0xff]  }
0x1066   :  { %4194 = vmatpush3.bf16.xpose.msra.mxu0 %v2992_v8  ;;  %4197 = vmatprep.mubr.msk.bf16.mxu0 %vm4593_vm0, %v4592_v41  ;;  %v4301_v8 = vld [vmem:[#allocation11 + $0x90] sm:$0xff]  }
0x1067   :  { %4195 = vmatprep.subr.bf16.mxu0 %v4592_v41 }
0x106e   :  { %4196 = vmatpush3.bf16.xpose.msra.mxu0 %v2989_v13  ;;  %v4304_v13 = vld [vmem:[#allocation11 + $0xc8] sm:$0xff]  }
0x106f   :  { %4209 = vmatprep.subr.bf16.mxu0 %v4592_v41 }
0x1075   :  { %4198 = vmatmul.mubr.msk.bf16.vlgmr.msra.gmra.mxu0 %vm1141_vm1, %v4776_v39 }
0x1076   :  { %4210 = vmatpush3.bf16.msra.mxu0 %v1140_v9  ;;  %4213 = vmatprep.mubr.msk.bf16.mxu0 %vm4593_vm0, %v4592_v41 }
0x1077   :  { %4211 = vmatprep.subr.bf16.mxu0 %v4592_v41 }
0x107a   :  { %4212 = vmatpush3.bf16.msra.mxu0 %v4800_v30 }
0x10ec   :  { %v5175_v7 = vpop.f32.mrf.mxu1 }
0x10ee   :  { %v4191_v58 = vpop.f32.mrf.mxu1 }
0x10ef   :  { %v4308_v58 = vld [vmem:[#allocation11 + $0xc0] sm:$0xff]  }
0x10f0   :  { %v5177_v44 = vpop.f32.mrf.mxu1 }
0x10f2   :  { %v4192_v21 = vpop.f32.mrf.mxu1 }
0x10f3   :  { %v4309_v21 = vld [vmem:[#allocation11 + $0x80] sm:$0xff]  }
0x10fc   :  { %v3087_v62 = vpop.f32.mrf.mxu1 }
0x10fd   :  { %v3100_v29 = vsel %vm1251_vm2, %v3087_v62, -inf }
0x10fe   :  { %3101 = vmax.xlane.f32.xlu0 %v3100_v29  ;;  %v4207_v51 = vpop.f32.mrf.mxu1 }
0x1100   :  { %v3090_v39 = vpop.f32.mrf.mxu1 }
0x1101   :  { %v3103_v48 = vsel %vm1251_vm2, %v3090_v39, -inf }
0x1102   :  { %3104 = vmax.xlane.f32.xlu0 %v3103_v48  ;;  %v4208_v47 = vpop.f32.mrf.mxu1 }
0x1125   :  { %v2914_v11 = vpop.f32.mrf.mxu0 }
0x1126   :  { %2921 = vst.msk [vmem:[#allocation2 + $0x50] sm:$0xff] %vm1141_vm1, %v2914_v11 }
0x1127   :  { %v4183_v12 = vpop.f32.mrf.mxu0 }
0x1129   :  { %v2917_v43 = vpop.f32.mrf.mxu0 }
0x112a   :  { %2922 = vst.msk [vmem:[#allocation2 + $0x70] sm:$0xff] %vm1141_vm1, %v2917_v43 }
0x112b   :  { %v4184_v20 = vpop.f32.mrf.mxu0 }
0x1135   :  { %v3028_v2 = vpop.f32.mrf.mxu0 }
0x1136   :  { %v3094_v42 = vsel %vm1251_vm2, %v3028_v2, -inf }
0x1137   :  { %3095 = vmax.xlane.f32.xlu1 %v3094_v42  ;;  %v4199_v27 = vpop.f32.mrf.mxu0 }
0x1139   :  { %v3031_v19 = vpop.f32.mrf.mxu0 }
0x113a   :  { %v3097_v60 = vsel %vm1251_vm2, %v3031_v19, -inf }
0x113b   :  { %3098 = vmax.xlane.f32.xlu0 %v3097_v60  ;;  %v4200_v35 = vpop.f32.mrf.mxu0 }
0x1187   :  { %v3102_v59 = vpop.xlane.xlu0 %3101 }
0x1188   :  { %v3108_v1 = vsub.f32 %v3087_v62, %v3102_v59  ;;  %v4303_v59 = vld [vmem:[#allocation11 + $0x38] sm:$0xff]  }
0x118a   :  { %v3114_v25 = vmul.f32 1.442695, %v3108_v1 }
0x118b   :  { %v3105_v26 = vpop.xlane.xlu0 %3104 }
0x118c   :  { %4434 = vpow2.f32 %v3114_v25  ;;  %v3109_v17 = vsub.f32 %v3090_v39, %v3105_v26  ;;  %v4306_v26 = vld [vmem:[#allocation11 + $0x70] sm:$0xff]  }
0x118e   :  { %v3116_v34 = vmul.f32 1.442695, %v3109_v17 }
0x1190   :  { %4436 = vpow2.f32 %v3116_v34 }
0x1199   :  { %v4435_v54 = vpop.eup %4434 }
0x119a   :  { %v3124_v28 = vsel %vm1251_vm2, %v4435_v54, 0.0 }
0x119b   :  { %3125 = vadd.xlane.f32.xlu1 %v3124_v28  ;;  %v4307_v28 = vld [vmem:[#allocation11 + $0x30] sm:$0xff]  }
0x119d   :  { %v4437_v31 = vpop.eup %4436 }
0x119e   :  { %v3127_v45 = vsel %vm1251_vm2, %v4437_v31, 0.0 }
0x119f   :  { %3128 = vadd.xlane.f32.xlu0 %v3127_v45 }
0x11ac   :  { %3190 = vrot.lane.b32.xlu1 %v1140_v9, %s4589_s0  ;;  %v4305_v9 = vld [vmem:[#allocation11 + $0x88] sm:$0xff]  }
0x11b5   :  { %3188 = vrot.lane.b32.xlu0 %v4800_v30, %s4589_s0  ;;  %v4302_v30 = vld [vmem:[#allocation11 + $0x78] sm:$0xff]  }
0x11b6   :  { %3913 = vmatprep.subr.bf16.mxu0 %v4302_v30  ;;  %v4315_v30 = vld [vmem:[#allocation11 + $0x18] sm:$0xff]  }
0x11c0   :  { %v3096_v4 = vpop.xlane.xlu1 %3095 }
0x11c1   :  { %v3106_v33 = vsub.f32 %v3028_v2, %v3096_v4 }
0x11c3   :  { %v3110_v53 = vmul.f32 1.442695, %v3106_v33  ;;  %v4310_v33 = vld [vmem:[#allocation11 + $0x68] sm:$0xff]  }
0x11c4   :  { %v3099_v56 = vpop.xlane.xlu0 %3098 }
0x11c5   :  { %4438 = vpow2.f32 %v3110_v53  ;;  %v3107_v18 = vsub.f32 %v3031_v19, %v3099_v56  ;;  %v4311_v56 = vld [vmem:[#allocation11 + $0x28] sm:$0xff]  }
0x11c7   :  { %v3112_v61 = vmul.f32 1.442695, %v3107_v18 }
0x11c9   :  { %4440 = vpow2.f32 %v3112_v61 }
0x11d2   :  { %v5190_v37 = vpop.eup %4438 }
0x11d3   :  { %v3118_v22 = vsel %vm1251_vm2, %v5190_v37, 0.0 }
0x11d4   :  { %3119 = vadd.xlane.f32.xlu1 %v3118_v22  ;;  %v4312_v22 = vld [vmem:[#allocation11 + $0x60] sm:$0xff]  }
0x11d6   :  { %v5194_v55 = vpop.eup %4440 }
0x11d7   :  { %v3121_v63 = vsel %vm1251_vm2, %v5194_v55, 0.0 }
0x11d8   :  { %3122 = vadd.xlane.f32.xlu0 %v3121_v63  ;;  %v4314_v63 = vld [vmem:[#allocation11 + $0x58] sm:$0xff]  }
0x11e5   :  { %1662 = vrot.lane.b32.xlu1 %v4910_v46, %s4589_s0 }
0x11e9   :  { %1398 = vrot.lane.b32.xlu1 %v4857_v0, %s4589_s0 }
0x11ed   :  { %1400 = vrot.lane.b32.xlu1 %v4859_v57, %s4589_s0 }
0x11ee   :  { %1664 = vrot.lane.b32.xlu0 %v4912_v3, %s4589_s0  ;;  %v4290_v3 = vld [vmem:[#allocation11 + $0xf8] sm:$0xff]  }
0x11f1   :  { %2190 = vrot.lane.b32.xlu1 %v5018_v50, %s4589_s0 }
0x11f2   :  { %2188 = vrot.lane.b32.xlu0 %v5016_v40, %s4589_s0 }
0x11f5   :  { %1927 = vrot.lane.b32.xlu1 %v4965_v52, %s4589_s0 }
0x11f6   :  { %1925 = vrot.lane.b32.xlu0 %v4963_v49, %s4589_s0 }
0x11f9   :  { %2716 = vrot.lane.b32.xlu1 %v5124_v23, %s4589_s0 }
0x11fa   :  { %2714 = vrot.lane.b32.xlu0 %v5122_v5, %s4589_s0 }
0x11fd   :  { %2453 = vrot.lane.b32.xlu1 %v5072_v16, %s4589_s0  ;;  %v4291_v16 = vld [vmem:[#allocation11 + $0xb8] sm:$0xff]  }
0x11fe   :  { %2451 = vrot.lane.b32.xlu0 %v5070_v36, %s4589_s0  ;;  %v4293_v36 = vld [vmem:[#allocation11 + $0xb0] sm:$0xff]  }
0x1224   :  { %v3126_v0 = vpop.xlane.xlu1 %3125 }
0x1225   :  { %4442 = vrcp.f32 %v3126_v0  ;;  %v4316_v0 = vld [vmem:[#allocation11 + $0x50] sm:$0xff]  }
0x1228   :  { %v3191_v57 = vpop.permute.xlu1 %3190  ;;  %v3129_v46 = vpop.xlane.xlu0 %3128 }
0x1229   :  { %4444 = vrcp.f32 %v3129_v46  ;;  %4218 = vmatpush3.bf16.msra.mxu1 %v3191_v57  ;;  %v4317_v57 = vld [vmem:[#allocation11 + $0x10] sm:$0xff]   ;;  %v4318_v46 = vld [vmem:[#allocation11 + $0x48] sm:$0xff]  }
0x122a   :  { %4219 = vmatprep.subr.bf16.mxu1 %v4592_v41  ;;  %v4296_v41 = vld [vmem:[#allocation11 + $0xe0] sm:$0xff]  }
0x122c   :  { %v3189_v49 = vpop.permute.xlu0 %3188 }
0x122d   :  { %4220 = vmatpush3.bf16.msra.mxu1 %v3189_v49  ;;  %v4320_v49 = vld [vmem:[#allocation11 + $0x40] sm:$0xff]  }
0x122e   :  { %3941 = vmatprep.subr.bf16.mxu1 %v4290_v3  ;;  %v4319_v3 = vld [vmem:[#allocation11 + $0x8] sm:$0xff]  }
0x1232   :  { %v4443_v52 = vpop.eup %4442 }
0x1233   :  { %v3136_v50 = vmul.f32 %v4443_v52, %v4435_v54  ;;  %v4321_v52 = vld [vmem:[#allocation11] sm:$0xff]  }
0x1236   :  { %v4445_v40 = vpop.eup %4444 }
0x1237   :  { %v3137_v5 = vmul.f32 %v4445_v40, %v4437_v31 }
0x1239   :  { %v3139_v23 = vpack.c.bf16 %v3137_v5, %v3136_v50 }
0x123b   :  { %4222 = vmatmul.mubr.msk.bf16.vlgmr.msra.gmra.mxu1 %vm1251_vm2, %v3139_v23 }
0x123c   :  { %3942 = vmatpush3.bf16.msra.mxu1 %v4291_v16 }
0x123d   :  { %3943 = vmatprep.subr.bf16.mxu1 %v4292_v24 }
0x1240   :  { %3944 = vmatpush3.bf16.msra.mxu1 %v4293_v36 }
0x1241   :  { %3945 = vmatprep.subr.bf16.mxu1 %v4294_v38 }
0x1244   :  { %3946 = vmatpush3.bf16.msra.mxu1 %v4295_v10 }
0x1245   :  { %3947 = vmatprep.subr.bf16.mxu1 %v4296_v41 }
0x1248   :  { %3948 = vmatpush3.bf16.msra.mxu1 %v4297_v32 }
0x1249   :  { %3949 = vmatprep.subr.bf16.mxu1 %v4298_v15 }
0x124c   :  { %3950 = vmatpush3.bf16.msra.mxu1 %v4299_v14 }
0x124d   :  { %3951 = vmatprep.subr.bf16.mxu1 %v4300_v6 }
0x1250   :  { %3952 = vmatpush3.bf16.msra.mxu1 %v4301_v8 }
0x1251   :  { %3953 = vmatprep.subr.bf16.mxu1 %v4304_v13 }
0x1254   :  { %3954 = vmatpush3.bf16.msra.mxu1 %v4305_v9 }
0x1255   :  { %3955 = vmatprep.subr.bf16.mxu1 %v4308_v58 }
0x1258   :  { %3956 = vmatpush3.bf16.msra.mxu1 %v4309_v21 }
0x125d   :  { %v3120_v62 = vpop.xlane.xlu1 %3119 }
0x125e   :  { %4446 = vrcp.f32 %v3120_v62 }
0x1261   :  { %v1663_v29 = vpop.permute.xlu1 %1662  ;;  %v3123_v51 = vpop.xlane.xlu0 %3122 }
0x1262   :  { %1668 = vst.msk [vmem:[#allocation2 + $0x8] sm:$0xff] %vm1404_vm3, %v1663_v29  ;;  %4448 = vrcp.f32 %v3123_v51 }
0x1265   :  { %v1399_v39 = vpop.permute.xlu1 %1398  ;;  %v1665_v48 = vpop.permute.xlu0 %1664 }
0x1266   :  { %1405 = vst.msk [vmem:[#allocation2] sm:$0xff] %vm1404_vm3, %v1399_v39  ;;  %1669 = vst.msk [vmem:[#allocation2 + $0x28] sm:$0xff] %vm1404_vm3, %v1665_v48 }
0x1269   :  { %v1401_v47 = vpop.permute.xlu1 %1400  ;;  %v2189_v11 = vpop.permute.xlu0 %2188  ;;  %v3249_v25 = vld [vmem:[#allocation2 + $0x8] sm:$0xff] }
0x126a   :  { %1406 = vst.msk [vmem:[#allocation2 + $0x20] sm:$0xff] %vm1404_vm3, %v1401_v47  ;;  %2194 = vst.msk [vmem:[#allocation2 + $0x18] sm:$0xff] %vm1404_vm3, %v2189_v11 }
0x126b   :  { %v4447_v12 = vpop.eup %4446 }
0x126c   :  { %v3134_v42 = vmul.f32 %v4447_v12, %v5190_v37 }
0x126d   :  { %v2191_v43 = vpop.permute.xlu1 %2190  ;;  %v1926_v20 = vpop.permute.xlu0 %1925  ;;  %v3253_v19 = vld [vmem:[#allocation2 + $0x28] sm:$0xff]  ;;  %v3248_v5 = vld [vmem:[#allocation2] sm:$0xff] }
0x126e   :  { %2195 = vst.msk [vmem:[#allocation2 + $0x38] sm:$0xff] %vm1404_vm3, %v2191_v43  ;;  %1931 = vst.msk [vmem:[#allocation2 + $0x10] sm:$0xff] %vm1404_vm3, %v1926_v20  ;;  %v3265_v17 = vpack.c.bf16 %v3253_v19, %v3249_v25 }
0x126f   :  { %v4449_v2 = vpop.eup %4448 }
0x1270   :  { %v3135_v27 = vmul.f32 %v4449_v2, %v5194_v55  ;;  %v4313_v55 = vld [vmem:[#allocation11 + $0x20] sm:$0xff]  }
0x1271   :  { %v1928_v60 = vpop.permute.xlu1 %1927  ;;  %v2715_v35 = vpop.permute.xlu0 %2714  ;;  %v3251_v31 = vld [vmem:[#allocation2 + $0x18] sm:$0xff]  ;;  %v3252_v40 = vld [vmem:[#allocation2 + $0x20] sm:$0xff] }
0x1272   :  { %1932 = vst.msk [vmem:[#allocation2 + $0x30] sm:$0xff] %vm1404_vm3, %v1928_v60  ;;  %2720 = vst.msk [vmem:[#allocation2 + $0x48] sm:$0xff] %vm1404_vm3, %v2715_v35  ;;  %v3138_v1 = vpack.c.bf16 %v3135_v27, %v3134_v42  ;;  %v3264_v16 = vpack.c.bf16 %v3252_v40, %v3248_v5 }
0x1274   :  { %4214 = vmatmul.mubr.msk.bf16.vlgmr.msra.gmra.mxu0 %vm1251_vm2, %v3138_v1 }
0x1275   :  { %3914 = vmatpush3.bf16.msra.mxu0 %v4303_v59  ;;  %v2717_v34 = vpop.permute.xlu1 %2716  ;;  %3567 = vmatprep.mubr.bf16.mxu0 %v3265_v17  ;;  %v2452_v54 = vpop.permute.xlu0 %2451  ;;  %v3255_v45 = vld [vmem:[#allocation2 + $0x38] sm:$0xff]  ;;  %v3250_v18 = vld [vmem:[#allocation2 + $0x10] sm:$0xff] }
0x1276   :  { %2721 = vst.msk [vmem:[#allocation2 + $0x68] sm:$0xff] %vm1404_vm3, %v2717_v34  ;;  %2457 = vst.msk [vmem:[#allocation2 + $0x40] sm:$0xff] %vm1404_vm3, %v2452_v54  ;;  %3915 = vmatprep.subr.bf16.mxu0 %v4306_v26  ;;  %v3267_v4 = vpack.c.bf16 %v3255_v45, %v3251_v31 }
0x1278   :  { %3616 = vmatprep.mubr.bf16.mxu1 %v3267_v4 }
0x1279   :  { %3916 = vmatpush3.bf16.msra.mxu0 %v4307_v28  ;;  %v2454_v53 = vpop.permute.xlu1 %2453  ;;  %v3254_v61 = vld [vmem:[#allocation2 + $0x30] sm:$0xff]  ;;  %v3257_v23 = vld [vmem:[#allocation2 + $0x48] sm:$0xff] }
0x127a   :  { %2458 = vst.msk [vmem:[#allocation2 + $0x60] sm:$0xff] %vm1404_vm3, %v2454_v53  ;;  %3917 = vmatprep.subr.bf16.mxu0 %v4310_v33  ;;  %v3266_v37 = vpack.c.bf16 %v3254_v61, %v3250_v18 }
0x127c   :  { %3617 = vmatmul.mubr.bf16.vlgmr.msra.gmra.mxu1 %v3266_v37 }
0x127d   :  { %3918 = vmatpush3.bf16.msra.mxu0 %v4311_v56  ;;  %v3261_v50 = vld [vmem:[#allocation2 + $0x68] sm:$0xff]  ;;  %v3256_v38 = vld [vmem:[#allocation2 + $0x40] sm:$0xff] }
0x127e   :  { %3919 = vmatprep.subr.bf16.mxu0 %v4312_v22  ;;  %v3269_v24 = vpack.c.bf16 %v3261_v50, %v3257_v23 }
0x1281   :  { %3920 = vmatpush3.bf16.msra.mxu0 %v4313_v55  ;;  %v3260_v36 = vld [vmem:[#allocation2 + $0x60] sm:$0xff] }
0x1282   :  { %3921 = vmatprep.subr.bf16.mxu0 %v4314_v63  ;;  %v3268_v10 = vpack.c.bf16 %v3260_v36, %v3256_v38 }
0x1285   :  { %3922 = vmatpush3.bf16.msra.mxu0 %v4315_v30 }
0x1286   :  { %3923 = vmatprep.subr.bf16.mxu0 %v4316_v0 }
0x1289   :  { %3924 = vmatpush3.bf16.msra.mxu0 %v4317_v57 }
0x128a   :  { %3925 = vmatprep.subr.bf16.mxu0 %v4318_v46 }
0x128d   :  { %3926 = vmatpush3.bf16.msra.mxu0 %v4319_v3 }
0x128e   :  { %3927 = vmatprep.subr.bf16.mxu0 %v4320_v49 }
0x1291   :  { %3928 = vmatpush3.bf16.msra.mxu0 %v4321_v52 }
0x1294   :  { %3568 = vmatmul.mubr.bf16.vlgmr.msra.gmra.mxu0 %v3264_v16 }
0x1295   :  { %3575 = vmatprep.mubr.bf16.mxu0 %v3269_v24 }
0x129c   :  { %3576 = vmatmul.mubr.bf16.gmra.mxu0 %v3268_v10 }
0x12fb   :  { %v3231_v41 = vpop.f32.mrf.mxu1 }
0x12fc   :  { %3240 = vrot.lane.b32.xlu0 %v3231_v41, %s4589_s0 }
0x12fd   :  { %v4223_v32 = vpop.f32.mrf.mxu1 }
0x12ff   :  { %v3234_v15 = vpop.f32.mrf.mxu1 }
0x1300   :  { %2977 = vrot.lane.b32.xlu0 %v5175_v7, %s4589_s0  ;;  %3242 = vrot.lane.b32.xlu1 %v3234_v15, %s4589_s0  ;;  %v3784_v7 = vld [vmem:[%s5265_s5] ss:$0 sm:$0xff]  ;;  %s4594_s5 = smov [#allocation12]  }
0x1301   :  { %v4224_v14 = vpop.f32.mrf.mxu1  ;;  %s3642_s29 = sshll.u32 %s4594_s5, 4  ;;  %s3643_s29 = int_to_ptr.vmem [resolvable:$true] %s3642_s29 }
0x1302   :  { %s4550_s30 = scalar_lea.vmem %s3643_s29, 512  ;;  %p4555_p12 = scmp.lt.s32.totalorder %s3643_s29, %s3643_s29 }
0x1303   :  { %p4551_p11 = scmp.ne.s32.totalorder %s3643_s29, %s4550_s30  ;;  %p4556_p13 = scmp.lt.s32.totalorder %s4550_s30, %s4550_s30 }
0x1304   :  { %2979 = vrot.lane.b32.xlu1 %v5177_v44, %s4589_s0 }
0x1305   :  { %p4557_p0 = por %p4556_p13, %p4555_p12 }
0x1307   :  { %p4558_p1 = pnand %p4557_p0, %p4551_p11 }
0x1334   :  { %v3177_v6 = vpop.f32.mrf.mxu0 }
0x1335   :  { %3184 = vst.msk [vmem:[#allocation2 + $0x58] sm:$0xff] %vm1141_vm1, %v3177_v6 }
0x1336   :  { %v4215_v8 = vpop.f32.mrf.mxu0 }
0x1338   :  { %v3180_v13 = vpop.f32.mrf.mxu0 }
0x1339   :  { %3185 = vst.msk [vmem:[#allocation2 + $0x78] sm:$0xff] %vm1141_vm1, %v3180_v13 }
0x133a   :  { %v4216_v9 = vpop.f32.mrf.mxu0 }
0x133c   :  { %v3957_v58 = vpop.f32.mrf.mxu1 }
0x133e   :  { %v3958_v21 = vpop.f32.mrf.mxu1 }
0x133f   :  { %v3959_v44 = vadd.f32 %v3958_v21, %v3957_v58 }
0x1340   :  { %v3960_v29 = vpop.f32.mrf.mxu1 }
0x1342   :  { %v3961_v11 = vpop.f32.mrf.mxu1 }
0x1343   :  { %v3962_v2 = vadd.f32 %v3961_v11, %v3960_v29 }
0x1354   :  { %v3929_v62 = vpop.f32.mrf.mxu0 }
0x1356   :  { %v3930_v51 = vpop.f32.mrf.mxu0 }
0x1357   :  { %v3931_v39 = vadd.f32 %v3930_v51, %v3929_v62 }
0x1358   :  { %v3932_v48 = vpop.f32.mrf.mxu0 }
0x1359   :  { %v3570_v47 = vadd.f32 %v3931_v39, %v3784_v7 }
0x135a   :  { %v3933_v12 = vpop.f32.mrf.mxu0 }
0x135b   :  { %v3619_v43 = vadd.f32 %v3959_v44, %v3570_v47  ;;  %v3934_v20 = vadd.f32 %v3933_v12, %v3932_v48 }
0x135c   :  { %v3935_v28 = vpop.f32.mrf.mxu0 }
0x135d   :  { %3633 = vst [vmem:[#allocation12] sm:$0xff] %v3619_v43  ;;  %v3573_v42 = vadd.f32 %v3934_v20, %v3784_v7 }
0x135e   :  { %v3936_v31 = vpop.f32.mrf.mxu0 }
0x135f   :  { %v3622_v27 = vadd.f32 %v3962_v2, %v3573_v42  ;;  %v3937_v4 = vadd.f32 %v3936_v31, %v3935_v28 }
0x1360   :  { %v3938_v45 = vpop.f32.mrf.mxu0 }
0x1361   :  { %3634 = vst [vmem:[#allocation12 + $0x8] sm:$0xff] %v3622_v27  ;;  %v3578_v18 = vadd.f32 %v3937_v4, %v3784_v7 }
0x1362   :  { %v3939_v33 = vpop.f32.mrf.mxu0 }
0x1363   :  { %v3940_v61 = vadd.f32 %v3939_v33, %v3938_v45 }
0x1365   :  { %v3581_v30 = vadd.f32 %v3940_v61, %v3784_v7 }
0x136e   :  { %v3241_v19 = vpop.permute.xlu0 %3240 }
0x136f   :  { %3246 = vst.msk [vmem:[#allocation2 + $0x58] sm:$0xff] %vm1404_vm3, %v3241_v19 }
0x1372   :  { %v3243_v60 = vpop.permute.xlu1 %3242  ;;  %v2978_v35 = vpop.permute.xlu0 %2977 }
0x1373   :  { %3247 = vst.msk [vmem:[#allocation2 + $0x78] sm:$0xff] %vm1404_vm3, %v3243_v60  ;;  %2983 = vst.msk [vmem:[#allocation2 + $0x50] sm:$0xff] %vm1404_vm3, %v2978_v35 }
0x1376   :  { %v2980_v59 = vpop.permute.xlu1 %2979  ;;  %v3259_v1 = vld [vmem:[#allocation2 + $0x58] sm:$0xff] }
0x1377   :  { %2984 = vst.msk [vmem:[#allocation2 + $0x70] sm:$0xff] %vm1404_vm3, %v2980_v59 }
0x137a   :  { %v3263_v25 = vld [vmem:[#allocation2 + $0x78] sm:$0xff]  ;;  %v3258_v17 = vld [vmem:[#allocation2 + $0x50] sm:$0xff] }
0x137b   :  { %v3271_v26 = vpack.c.bf16 %v3263_v25, %v3259_v1 }
0x137d   :  { %3624 = vmatprep.mubr.bf16.mxu1 %v3271_v26 }
0x137e   :  { %v3262_v34 = vld [vmem:[#allocation2 + $0x70] sm:$0xff] }
0x137f   :  { %v3270_v54 = vpack.c.bf16 %v3262_v34, %v3258_v17 }
0x1381   :  { %3625 = vmatmul.mubr.bf16.gmra.mxu1 %v3270_v54 }
0x1441   :  { %v3963_v53 = vpop.f32.mrf.mxu1 }
0x1443   :  { %v3964_v56 = vpop.f32.mrf.mxu1 }
0x1444   :  { %v3965_v37 = vadd.f32 %v3964_v56, %v3963_v53 }
0x1445   :  { %v3966_v22 = vpop.f32.mrf.mxu1 }
0x1446   :  { %v3627_v55 = vadd.f32 %v3965_v37, %v3578_v18 }
0x1447   :  { %v3967_v63 = vpop.f32.mrf.mxu1 }
0x1448   :  { %3635 = vst [vmem:[#allocation12 + $0x10] sm:$0xff] %v3627_v55  ;;  %v3968_v0 = vadd.f32 %v3967_v63, %v3966_v22 }
0x144a   :  { %v3630_v57 = vadd.f32 %v3968_v0, %v3581_v30 }
0x144c   :  { %3636 = vst [vmem:[#allocation12 + $0x18] sm:$0xff] %v3630_v57 }
0x144d   :  { %4561 = shalt.err (!%p4558_p1)
}
0x144e   :  { %3648 = dma.vmem_to_hbm [thread:$0]  %s3643_s29, 512, %s5266_s6, [#allocation5], %s4580_s26, %s4580_s26, %s4581_s27  }
0x144f   :  { %4576 = dma.done.wait [#allocation5], 512  }
0x1450   :  { %4577 = vsyncadd [#allocation5], 4294966784 }
0x1451   :  { %3652 = vsyncpa [#allocation4], 1 }
0x1452   :  { %3653 = vsyncpa [#allocation7], 1 }
0x1453   :  { %3654 = vsyncpa [#allocation10], 1 }
0x1454   :  { %3655 = vsyncpa [#allocation5], 1 }

</bundles_post_ra>
